<compile_context>
chip_gen: v7x
topology: tpu7x:2x2x1
jax: 0.10.0
libtpu: 0.0.40
codegen_flags: <defaults>
</compile_context>

<pallas_src>
import functools

import jax
import jax.numpy as jnp
from jax import lax
from jax.experimental import pallas as pl
from jax.experimental.pallas import tpu as pltpu

EQNUM = 3                  # forced by the class-level grouped conv + residual add
CFACT = 7                  # block.c
C_IN = EQNUM               # 3
C0 = 6 * EQNUM             # 18  (grouped conv out / conv1 in)
C1 = CFACT * EQNUM         # 21  (conv1 out / conv2 in)
BN_EPS = 1e-5
SELU_ALPHA = 1.6732632423543772
SELU_SCALE = 1.0507009873554805


# --------------------------------------------------------------------------------------
# In-kernel helpers
# --------------------------------------------------------------------------------------
def _taps(X, P, Wp):
    """Nine 3x3-conv taps as STATIC lane-offset slices of one over-padded flat image."""
    return [X[:, dy * Wp + dx: dy * Wp + dx + P] for dy in range(3) for dx in range(3)]


def _interior_mask(P, Wp, H, W):
    """(1, P) f32 mask of the real (interior) pixels, built from an iota.

    Row index is recovered with floor((p + 0.5) / Wp) in f32: the +0.5 keeps the value a
    comfortable 0.5/Wp away from every integer boundary, so f32 rounding cannot flip it.
    Avoids vector integer div/mod.
    """
    pos = lax.broadcasted_iota(jnp.int32, (1, P), 1).astype(jnp.float32)
    r = jnp.floor((pos + 0.5) * (1.0 / Wp))
    c = pos - r * Wp                       # exactly integer-valued in f32 here
    inside = (r >= 1.0) & (r <= float(H)) & (c >= 1.0) & (c <= float(W))
    return inside.astype(jnp.float32)


# --------------------------------------------------------------------------------------
# Kernels (one per pass)
# --------------------------------------------------------------------------------------
def _stats1_kernel(P, Wp, H, W, Nb, x_ref, w10_ref, out_ref):
    """Partial (sum, sum-of-squares) of the bn1 input y1 = w10 @ im2col(x) for Nb images."""
    mask = _interior_mask(P, Wp, H, W)
    s = jnp.zeros((C1, 1), jnp.float32)
    q = jnp.zeros((C1, 1), jnp.float32)
    for i in range(Nb):                                            # static unroll, Nb small
        xcol = jnp.concatenate(_taps(x_ref[i], P, Wp), axis=0)     # (27, P)
        y1 = jnp.dot(w10_ref[...], xcol, preferred_element_type=jnp.float32)   # (21, P)
        y1m = y1 * mask
        s = s + jnp.sum(y1m, axis=1, keepdims=True)
        q = q + jnp.sum(y1m * y1, axis=1, keepdims=True)
    out_ref[0] = jnp.concatenate([s, q], axis=1)                   # (21, 2)


def _stats2_kernel(P, Wp, H, W, Nb, x_ref, w10_ref, sc1_ref, sh1_ref, w2_ref, out_ref):
    """Partial (sum, sum-of-squares) of the bn2 input y2 = conv2(relu(bn1(y1)))."""
    mask = _interior_mask(P, Wp, H, W)
    s = jnp.zeros((C_IN, 1), jnp.float32)
    q = jnp.zeros((C_IN, 1), jnp.float32)
    for i in range(Nb):
        xcol = jnp.concatenate(_taps(x_ref[i], P, Wp), axis=0)
        y1 = jnp.dot(w10_ref[...], xcol, preferred_element_type=jnp.float32)
        z = jnp.maximum(y1 * sc1_ref[...] + sh1_ref[...], 0.0)     # bn1 (affine, f32) + relu
        y2 = jnp.dot(w2_ref[...], z.astype(w2_ref.dtype),
                     preferred_element_type=jnp.float32)           # (3, P)
        y2m = y2 * mask
        s = s + jnp.sum(y2m, axis=1, keepdims=True)
        q = q + jnp.sum(y2m * y2, axis=1, keepdims=True)
    out_ref[0] = jnp.concatenate([s, q], axis=1)                   # (3, 2)


def _emit_kernel(P, Wp, Nb, mdt, x_ref, w10_ref, sc1_ref, sh1_ref,
                 w2_ref, sc2_ref, sh2_ref, out_ref):
    """bn2 + SELU + f32 residual, lane-dense (C, P) stores.

    x_ref holds the f32 over-padded images: the matmul operands are cast to `mdt`
    in-register, while the residual uses the untouched f32 centre tap (== padded x).
    """
    for i in range(Nb):
        taps = _taps(x_ref[i], P, Wp)                              # f32 views
        xcol = jnp.concatenate(taps, axis=0).astype(mdt)
        y1 = jnp.dot(w10_ref[...], xcol, preferred_element_type=jnp.float32)
        z = jnp.maximum(y1 * sc1_ref[...] + sh1_ref[...], 0.0)
        y2 = jnp.dot(w2_ref[...], z.astype(w2_ref.dtype),
                     preferred_element_type=jnp.float32)
        y3 = y2 * sc2_ref[...] + sh2_ref[...]
        neg = SELU_ALPHA * (jnp.exp(jnp.minimum(y3, 0.0)) - 1.0)   # expm1-safe formulation
        y3 = SELU_SCALE * jnp.where(y3 > 0.0, y3, neg)
        out_ref[i] = (taps[4] + y3).astype(out_ref.dtype)          # f32 skip connection


# --------------------------------------------------------------------------------------
# Wrapper
# --------------------------------------------------------------------------------------
def _pick_images_per_step(N, C, Lbig, P, budget_bytes=8 * 1024 * 1024, max_nb=16):
    """Largest divisor of N whose per-step VMEM footprint stays under a conservative
    budget (safe on v5e/v6e/v7x): double-buffered in/out blocks + f32 temporaries."""
    per_img = (2 * C * Lbig + 2 * C * P + 80 * P) * 4
    cap = max(1, min(max_nb, budget_bytes // per_img))
    nb = 1
    for d in range(1, min(N, cap) + 1):
        if N % d == 0:
            nb = d
    return nb


def _bn_affine(stats, gamma, beta, inv_cnt):
    """Combine per-block partial sums into the BN (scale, shift) affine."""
    tot = jnp.sum(stats, axis=0)                                   # (C, 2)
    mu = tot[:, 0:1] * inv_cnt
    var = jnp.maximum(tot[:, 1:2] * inv_cnt - mu * mu, 0.0)        # clamp single-pass variance
    scale = gamma * lax.rsqrt(var + BN_EPS)
    shift = beta - mu * scale
    return scale, shift


def block_forward(x_nchw, params, *, bf16_matmuls=True):
    w0, w1, b1, g1, be1, w2, b2, g2, be2 = params
    # conv1/conv2 biases are NOT passed to the kernels: a per-channel constant added right
    # before a training-mode BatchNorm is cancelled exactly by the mean subtraction.
    del b1, b2

    N, C, H, W = x_nchw.shape
    assert C == EQNUM, "class-level grouped conv + residual force 3 input channels"
    Hp, Wp = H + 2, W + 2
    P = Hp * Wp                          # padded flat spatial length (lane axis)
    margin = Wp + 1                      # flat halo so every 3x3 tap is a static slice
    Lbig = P + 2 * margin
    inv_cnt = 1.0 / float(N * H * W)
    mdt = jnp.bfloat16 if bf16_matmuls else jnp.float32

    x = x_nchw.astype(jnp.float32)
    # NCHW kept: pad + row-major reshape only (no transposes, no 9x im2col HBM buffer).
    xp = jnp.pad(x, ((0, 0), (0, 0), (1, 1), (1, 1)))                          # (N,C,Hp,Wp)
    xbig = jnp.pad(xp.reshape(N, C, P), ((0, 0), (0, 0), (margin, margin)))    # (N,C,Lbig) f32
    xbig_m = xbig.astype(jnp.bfloat16) if bf16_matmuls else xbig

    # Fused first stage: conv1(grouped3x3(x)) == (w1 @ w0) @ im2col(x) — exact (both are
    # linear, grouped conv has no bias, conv1's bias is cancelled by bn1).
    w10 = jnp.dot(w1, w0, precision=lax.Precision.HIGHEST).astype(mdt)         # (21, 27)
    w2m = w2.astype(mdt)                                                        # (3, 21)

    Nb = _pick_images_per_step(N, C, Lbig, P)
    G = N // Nb
    const2 = lambda i: (0, 0)
    cparams = pltpu.CompilerParams(
        dimension_semantics=("parallel",),          # per-block partial stats -> no carried state
        vmem_limit_bytes=32 * 1024 * 1024)

    xm_spec = pl.BlockSpec((Nb, C, Lbig), lambda i: (i, 0, 0))
    w10_spec = pl.BlockSpec((C1, 9 * C), const2)
    vecC1_spec = pl.BlockSpec((C1, 1), const2)
    w2_spec = pl.BlockSpec((C, C1), const2)
    vecC_spec = pl.BlockSpec((C, 1), const2)

    # ---- pass 1: partial bn1 statistics ------------------------------------------------
    stats1 = pl.pallas_call(
        functools.partial(_stats1_kernel, P, Wp, H, W, Nb),
        out_shape=jax.ShapeDtypeStruct((G, C1, 2), jnp.float32),
        grid_spec=pltpu.PrefetchScalarGridSpec(
            num_scalar_prefetch=0, grid=(G,),
            in_specs=[xm_spec, w10_spec],
            out_specs=pl.BlockSpec((1, C1, 2), lambda i: (i, 0, 0))),
        compiler_params=cparams,
    )(xbig_m, w10)
    scale1, shift1 = _bn_affine(stats1, g1, be1, inv_cnt)

    # ---- pass 2: partial bn2 statistics ------------------------------------------------
    stats2 = pl.pallas_call(
        functools.partial(_stats2_kernel, P, Wp, H, W, Nb),
        out_shape=jax.ShapeDtypeStruct((G, C, 2), jnp.float32),
        grid_spec=pltpu.PrefetchScalarGridSpec(
            num_scalar_prefetch=0, grid=(G,),
            in_specs=[xm_spec, w10_spec, vecC1_spec, vecC1_spec, w2_spec],
            out_specs=pl.BlockSpec((1, C, 2), lambda i: (i, 0, 0))),
        compiler_params=cparams,
    )(xbig_m, w10, scale1, shift1, w2m)
    scale2, shift2 = _bn_affine(stats2, g2, be2, inv_cnt)

    # ---- pass 3: normalize, SELU, residual (f32 x), lane-dense store -------------------
    out_pad = pl.pallas_call(
        functools.partial(_emit_kernel, P, Wp, Nb, mdt),
        out_shape=jax.ShapeDtypeStruct((N, C, P), jnp.float32),
        grid_spec=pltpu.PrefetchScalarGridSpec(
            num_scalar_prefetch=0, grid=(G,),
            in_specs=[pl.BlockSpec((Nb, C, Lbig), lambda i: (i, 0, 0)),   # f32 over-padded x
                      w10_spec, vecC1_spec, vecC1_spec,
                      w2_spec, vecC_spec, vecC_spec],
            out_specs=pl.BlockSpec((Nb, C, P), lambda i: (i, 0, 0))),
        compiler_params=cparams,
    )(xbig, w10, scale1, shift1, w2m, scale2, shift2)

    # Drop the padding ring (values there are don't-care); output stays NCHW.
    return out_pad.reshape(N, C, Hp, Wp)[:, :, 1:H + 1, 1:W + 1]


# --------------------------------------------------------------------------------------
# Parameters + pure-JAX reference
# --------------------------------------------------------------------------------------
def init_params(key):
    ks = jax.random.split(key, 9)
    # Class-level grouped conv weight, PyTorch shape (18, 1, 3, 3), groups=3.
    w0_g = 0.2 * jax.random.normal(ks[0], (C0, 1, 3, 3), jnp.float32)
    # Fold the group structure into a dense (18, 27) matrix with column index tap*3 + cin.
    tap_w = w0_g[:, 0].reshape(C0, 9)                                          # (18, 9)
    onehot = jax.nn.one_hot(jnp.arange(C0) // (C0 // EQNUM), EQNUM,
                            dtype=jnp.float32)                                 # (18, 3)
    w0 = (tap_w[:, :, None] * onehot[:, None, :]).reshape(C0, 9 * EQNUM)       # (18, 27)

    w1 = 0.2 * jax.random.normal(ks[1], (C1, C0), jnp.float32)       # conv1 weight (out, in)
    b1 = 0.1 * jax.random.normal(ks[2], (C1, 1), jnp.float32)        # conv1 bias (cancelled by bn1)
    g1 = 1.0 + 0.1 * jax.random.normal(ks[3], (C1, 1), jnp.float32)
    be1 = 0.1 * jax.random.normal(ks[4], (C1, 1), jnp.float32)
    w2 = 0.2 * jax.random.normal(ks[5], (EQNUM, C1), jnp.float32)    # conv2 weight (out, in)
    b2 = 0.1 * jax.random.normal(ks[6], (EQNUM, 1), jnp.float32)     # conv2 bias (cancelled by bn2)
    g2 = 1.0 + 0.1 * jax.random.normal(ks[7], (EQNUM, 1), jnp.float32)
    be2 = 0.1 * jax.random.normal(ks[8], (EQNUM, 1), jnp.float32)
    return (w0, w1, b1, g1, be1, w2, b2, g2, be2)


def reference_forward(x, params):
    """Pure-JAX reference with exact PyTorch semantics (biases included, highest precision)."""
    w0, w1, b1, g1, be1, w2, b2, g2, be2 = params
    hp = lax.Precision.HIGHEST
    N, C, H, W = x.shape
    xp = jnp.pad(x, ((0, 0), (0, 0), (1, 1), (1, 1)))
    taps = [xp[:, :, dy:dy + H, dx:dx + W] for dy in range(3) for dx in range(3)]
    cols = jnp.stack(taps, axis=1).reshape(N, 9 * C, H, W)          # rows ordered tap*3+cin
    y0 = jnp.einsum('ok,nkhw->nohw', w0, cols, precision=hp)
    y1 = jnp.einsum('oc,nchw->nohw', w1, y0, precision=hp) + b1.reshape(1, -1, 1, 1)
    mu = y1.mean(axis=(0, 2, 3), keepdims=True)
    var = ((y1 - mu) ** 2).mean(axis=(0, 2, 3), keepdims=True)
    y1 = (y1 - mu) * lax.rsqrt(var + BN_EPS) * g1.reshape(1, -1, 1, 1) + be1.reshape(1, -1, 1, 1)
    y1 = jnp.maximum(y1, 0.0)
    y2 = jnp.einsum('oc,nchw->nohw', w2, y1, precision=hp) + b2.reshape(1, -1, 1, 1)
    mu2 = y2.mean(axis=(0, 2, 3), keepdims=True)
    var2 = ((y2 - mu2) ** 2).mean(axis=(0, 2, 3), keepdims=True)
    y2 = (y2 - mu2) * lax.rsqrt(var2 + BN_EPS) * g2.reshape(1, -1, 1, 1) + be2.reshape(1, -1, 1, 1)
    y2 = SELU_SCALE * jnp.where(y2 > 0.0, y2, SELU_ALPHA * jnp.expm1(y2))
    return x + y2


if __name__ == "__main__":
    key = jax.random.PRNGKey(0)
    kx, kp = jax.random.split(key)
    params = init_params(kp)
    x = jax.random.normal(kx, (2, EQNUM, 16, 16), jnp.float32)       # NCHW; forward forces C=3

    ref = reference_forward(x, params)

    # f32-operand path: exact module semantics up to MXU default-precision rounding.
    out_f32 = jax.jit(functools.partial(block_forward, bf16_matmuls=False))(x, params)
    jax.block_until_ready(out_f32)
    assert out_f32.shape == x.shape and out_f32.dtype == jnp.float32
    err_f32 = float(jnp.max(jnp.abs(out_f32 - ref)))
    assert err_f32 < 8e-2, f"f32 kernel/reference mismatch: max abs err = {err_f32}"

    # Default path (perf review): bf16 matmul operands, residual kept in f32.
    out = jax.jit(block_forward)(x, params)
    jax.block_until_ready(out)
    assert out.shape == x.shape and bool(jnp.isfinite(out).all())
    err_bf16 = float(jnp.max(jnp.abs(out - ref)))
    assert err_bf16 < 3e-1, f"bf16 kernel/reference mismatch: max abs err = {err_bf16}"

    print("KERNEL_OK")
</pallas_src>

<mosaic_0001>
module attributes {stable_mosaic.version = 11 : i64} {
  func.func @_stats1_kernel(%arg0: i32, %arg1: memref<2x3x362xf32, #tpu.memory_space<vmem>>, %arg2: memref<21x27xf32, #tpu.memory_space<vmem>>, %arg3: memref<1x21x2xf32, #tpu.memory_space<vmem>>) attributes {dimension_semantics = [#tpu.dimension_semantics<parallel>], iteration_bounds = array<i64: 1>, scalar_prefetch = 0 : i64, scratch_operands = 0 : i64, tpu.core_type = #tpu.core_type<tc>, window_params = [{transform_indices = @transform_0, window_bounds = array<i64: 2, 3, 362>}, {pipeline_mode = #tpu.pipeline_mode<synchronous>, transform_indices = @transform_1, window_bounds = array<i64: 21, 27>}, {transform_indices = @transform_2, window_bounds = array<i64: 1, 21, 2>}]} {
    %0 = tpu.iota {dimensions = array<i32: 1>} : vector<1x324xi32>
    %1 = arith.sitofp %0 : vector<1x324xi32> to vector<1x324xf32>
    %cst = arith.constant 5.000000e-01 : f32
    %2 = vector.broadcast %cst : f32 to vector<1x324xf32>
    %3 = arith.addf %1, %2 : vector<1x324xf32>
    %cst_0 = arith.constant 0.055555556 : f32
    %4 = vector.broadcast %cst_0 : f32 to vector<1x324xf32>
    %5 = arith.mulf %3, %4 : vector<1x324xf32>
    %6 = math.floor %5 : vector<1x324xf32>
    %cst_1 = arith.constant 1.800000e+01 : f32
    %7 = vector.broadcast %cst_1 : f32 to vector<1x324xf32>
    %8 = arith.mulf %6, %7 : vector<1x324xf32>
    %9 = arith.subf %1, %8 : vector<1x324xf32>
    %cst_2 = arith.constant 1.000000e+00 : f32
    %10 = vector.broadcast %cst_2 : f32 to vector<1x324xf32>
    %11 = arith.cmpf oge, %6, %10 : vector<1x324xf32>
    %cst_3 = arith.constant 1.600000e+01 : f32
    %12 = vector.broadcast %cst_3 : f32 to vector<1x324xf32>
    %13 = arith.cmpf ole, %6, %12 : vector<1x324xf32>
    %14 = arith.andi %11, %13 : vector<1x324xi1>
    %cst_4 = arith.constant 1.000000e+00 : f32
    %15 = vector.broadcast %cst_4 : f32 to vector<1x324xf32>
    %16 = arith.cmpf oge, %9, %15 : vector<1x324xf32>
    %17 = arith.andi %14, %16 : vector<1x324xi1>
    %cst_5 = arith.constant 1.600000e+01 : f32
    %18 = vector.broadcast %cst_5 : f32 to vector<1x324xf32>
    %19 = arith.cmpf ole, %9, %18 : vector<1x324xf32>
    %20 = arith.andi %17, %19 : vector<1x324xi1>
    %21 = arith.extui %20 : vector<1x324xi1> to vector<1x324xi32>
    %22 = arith.sitofp %21 : vector<1x324xi32> to vector<1x324xf32>
    %cst_6 = arith.constant 0.000000e+00 : f32
    %23 = vector.broadcast %cst_6 : f32 to vector<21x1xf32>
    %cst_7 = arith.constant 0.000000e+00 : f32
    %24 = vector.broadcast %cst_7 : f32 to vector<21x1xf32>
    %c0 = arith.constant 0 : index
    %c0_8 = arith.constant 0 : index
    %c0_9 = arith.constant 0 : index
    %25 = vector.load %arg1[%c0, %c0_8, %c0_9] : memref<2x3x362xf32, #tpu.memory_space<vmem>>, vector<1x3x362xf32>
    %26 = vector.shape_cast %25 : vector<1x3x362xf32> to vector<3x362xf32>
    %27 = vector.extract_strided_slice %26 {offsets = [0, 0], sizes = [3, 324], strides = [1, 1]} : vector<3x362xf32> to vector<3x324xf32>
    %28 = vector.extract_strided_slice %26 {offsets = [0, 1], sizes = [3, 324], strides = [1, 1]} : vector<3x362xf32> to vector<3x324xf32>
    %29 = vector.extract_strided_slice %26 {offsets = [0, 2], sizes = [3, 324], strides = [1, 1]} : vector<3x362xf32> to vector<3x324xf32>
    %30 = vector.extract_strided_slice %26 {offsets = [0, 18], sizes = [3, 324], strides = [1, 1]} : vector<3x362xf32> to vector<3x324xf32>
    %31 = vector.extract_strided_slice %26 {offsets = [0, 19], sizes = [3, 324], strides = [1, 1]} : vector<3x362xf32> to vector<3x324xf32>
    %32 = vector.extract_strided_slice %26 {offsets = [0, 20], sizes = [3, 324], strides = [1, 1]} : vector<3x362xf32> to vector<3x324xf32>
    %33 = vector.extract_strided_slice %26 {offsets = [0, 36], sizes = [3, 324], strides = [1, 1]} : vector<3x362xf32> to vector<3x324xf32>
    %34 = vector.extract_strided_slice %26 {offsets = [0, 37], sizes = [3, 324], strides = [1, 1]} : vector<3x362xf32> to vector<3x324xf32>
    %35 = vector.extract_strided_slice %26 {offsets = [0, 38], sizes = [3, 324], strides = [1, 1]} : vector<3x362xf32> to vector<3x324xf32>
    %36 = tpu.concatenate %27, %28, %29, %30, %31, %32, %33, %34, %35 in 0 : vector<3x324xf32>, vector<3x324xf32>, vector<3x324xf32>, vector<3x324xf32>, vector<3x324xf32>, vector<3x324xf32>, vector<3x324xf32>, vector<3x324xf32>, vector<3x324xf32> -> vector<27x324xf32>
    %c0_10 = arith.constant 0 : index
    %c0_11 = arith.constant 0 : index
    %37 = vector.load %arg2[%c0_10, %c0_11] : memref<21x27xf32, #tpu.memory_space<vmem>>, vector<21x27xf32>
    %cst_12 = arith.constant dense<0.000000e+00> : vector<21x324xf32>
    %38 = tpu.matmul %37, %36, %cst_12 {dimension_numbers = #tpu.dot_dimension_numbers<[1], [0], [0], [1], [0, 0, 1, 1], [], []>} : vector<21x27xf32>, vector<27x324xf32>, vector<21x324xf32> -> vector<21x324xf32>
    %39 = vector.broadcast %22 : vector<1x324xf32> to vector<21x324xf32>
    %40 = arith.mulf %38, %39 : vector<21x324xf32>
    %cst_13 = arith.constant dense<0.000000e+00> : vector<21xf32>
    %41 = vector.multi_reduction <add>, %40, %cst_13 [1] : vector<21x324xf32> to vector<21xf32>
    %42 = vector.shape_cast %41 : vector<21xf32> to vector<21x1xf32>
    %43 = arith.addf %23, %42 : vector<21x1xf32>
    %44 = arith.mulf %40, %38 : vector<21x324xf32>
    %cst_14 = arith.constant dense<0.000000e+00> : vector<21xf32>
    %45 = vector.multi_reduction <add>, %44, %cst_14 [1] : vector<21x324xf32> to vector<21xf32>
    %46 = vector.shape_cast %45 : vector<21xf32> to vector<21x1xf32>
    %47 = arith.addf %24, %46 : vector<21x1xf32>
    %c1 = arith.constant 1 : index
    %c0_15 = arith.constant 0 : index
    %c0_16 = arith.constant 0 : index
    %48 = vector.load %arg1[%c1, %c0_15, %c0_16] : memref<2x3x362xf32, #tpu.memory_space<vmem>>, vector<1x3x362xf32>
    %49 = vector.shape_cast %48 : vector<1x3x362xf32> to vector<3x362xf32>
    %50 = vector.extract_strided_slice %49 {offsets = [0, 0], sizes = [3, 324], strides = [1, 1]} : vector<3x362xf32> to vector<3x324xf32>
    %51 = vector.extract_strided_slice %49 {offsets = [0, 1], sizes = [3, 324], strides = [1, 1]} : vector<3x362xf32> to vector<3x324xf32>
    %52 = vector.extract_strided_slice %49 {offsets = [0, 2], sizes = [3, 324], strides = [1, 1]} : vector<3x362xf32> to vector<3x324xf32>
    %53 = vector.extract_strided_slice %49 {offsets = [0, 18], sizes = [3, 324], strides = [1, 1]} : vector<3x362xf32> to vector<3x324xf32>
    %54 = vector.extract_strided_slice %49 {offsets = [0, 19], sizes = [3, 324], strides = [1, 1]} : vector<3x362xf32> to vector<3x324xf32>
    %55 = vector.extract_strided_slice %49 {offsets = [0, 20], sizes = [3, 324], strides = [1, 1]} : vector<3x362xf32> to vector<3x324xf32>
    %56 = vector.extract_strided_slice %49 {offsets = [0, 36], sizes = [3, 324], strides = [1, 1]} : vector<3x362xf32> to vector<3x324xf32>
    %57 = vector.extract_strided_slice %49 {offsets = [0, 37], sizes = [3, 324], strides = [1, 1]} : vector<3x362xf32> to vector<3x324xf32>
    %58 = vector.extract_strided_slice %49 {offsets = [0, 38], sizes = [3, 324], strides = [1, 1]} : vector<3x362xf32> to vector<3x324xf32>
    %59 = tpu.concatenate %50, %51, %52, %53, %54, %55, %56, %57, %58 in 0 : vector<3x324xf32>, vector<3x324xf32>, vector<3x324xf32>, vector<3x324xf32>, vector<3x324xf32>, vector<3x324xf32>, vector<3x324xf32>, vector<3x324xf32>, vector<3x324xf32> -> vector<27x324xf32>
    %c0_17 = arith.constant 0 : index
    %c0_18 = arith.constant 0 : index
    %60 = vector.load %arg2[%c0_17, %c0_18] : memref<21x27xf32, #tpu.memory_space<vmem>>, vector<21x27xf32>
    %cst_19 = arith.constant dense<0.000000e+00> : vector<21x324xf32>
    %61 = tpu.matmul %60, %59, %cst_19 {dimension_numbers = #tpu.dot_dimension_numbers<[1], [0], [0], [1], [0, 0, 1, 1], [], []>} : vector<21x27xf32>, vector<27x324xf32>, vector<21x324xf32> -> vector<21x324xf32>
    %62 = vector.broadcast %22 : vector<1x324xf32> to vector<21x324xf32>
    %63 = arith.mulf %61, %62 : vector<21x324xf32>
    %cst_20 = arith.constant dense<0.000000e+00> : vector<21xf32>
    %64 = vector.multi_reduction <add>, %63, %cst_20 [1] : vector<21x324xf32> to vector<21xf32>
    %65 = vector.shape_cast %64 : vector<21xf32> to vector<21x1xf32>
    %66 = arith.addf %43, %65 : vector<21x1xf32>
    %67 = arith.mulf %63, %61 : vector<21x324xf32>
    %cst_21 = arith.constant dense<0.000000e+00> : vector<21xf32>
    %68 = vector.multi_reduction <add>, %67, %cst_21 [1] : vector<21x324xf32> to vector<21xf32>
    %69 = vector.shape_cast %68 : vector<21xf32> to vector<21x1xf32>
    %70 = arith.addf %47, %69 : vector<21x1xf32>
    %71 = tpu.concatenate %66, %70 in 1 : vector<21x1xf32>, vector<21x1xf32> -> vector<21x2xf32>
    %c0_22 = arith.constant 0 : index
    %c0_23 = arith.constant 0 : index
    %c0_24 = arith.constant 0 : index
    %72 = vector.load %arg3[%c0_22, %c0_23, %c0_24] : memref<1x21x2xf32, #tpu.memory_space<vmem>>, vector<1x21x2xf32>
    %73 = vector.shape_cast %72 : vector<1x21x2xf32> to vector<21x2xf32>
    %74 = vector.shape_cast %71 : vector<21x2xf32> to vector<1x21x2xf32>
    tpu.vector_store %arg3[%c0_22, %c0_23, %c0_24], %74 {strides = array<i32>} : memref<1x21x2xf32, #tpu.memory_space<vmem>>, vector<1x21x2xf32>,
    return
  }
  func.func @transform_0(%arg0: i32) -> (i32, i32, i32) {
    %c0_i32 = arith.constant 0 : i32
    %c0_i32_0 = arith.constant 0 : i32
    %c0_i32_1 = arith.constant 0 : i32
    return %arg0, %c0_i32, %c0_i32_0 : i32, i32, i32
  }
  func.func @transform_1(%arg0: i32) -> (i32, i32) {
    %c0_i32 = arith.constant 0 : i32
    %c0_i32_0 = arith.constant 0 : i32
    %c0_i32_1 = arith.constant 0 : i32
    return %c0_i32, %c0_i32_0 : i32, i32
  }
  func.func @transform_2(%arg0: i32) -> (i32, i32, i32) {
    %c0_i32 = arith.constant 0 : i32
    %c0_i32_0 = arith.constant 0 : i32
    %c0_i32_1 = arith.constant 0 : i32
    return %arg0, %c0_i32, %c0_i32_0 : i32, i32, i32
  }
}

module attributes {stable_mosaic.version = 11 : i64} {
  func.func @_stats2_kernel(%arg0: i32, %arg1: memref<2x3x362xf32, #tpu.memory_space<vmem>>, %arg2: memref<21x27xf32, #tpu.memory_space<vmem>>, %arg3: memref<21x1xf32, #tpu.memory_space<vmem>>, %arg4: memref<21x1xf32, #tpu.memory_space<vmem>>, %arg5: memref<3x21xf32, #tpu.memory_space<vmem>>, %arg6: memref<1x3x2xf32, #tpu.memory_space<vmem>>) attributes {dimension_semantics = [#tpu.dimension_semantics<parallel>], iteration_bounds = array<i64: 1>, scalar_prefetch = 0 : i64, scratch_operands = 0 : i64, tpu.core_type = #tpu.core_type<tc>, window_params = [{transform_indices = @transform_0, window_bounds = array<i64: 2, 3, 362>}, {pipeline_mode = #tpu.pipeline_mode<synchronous>, transform_indices = @transform_1, window_bounds = array<i64: 21, 27>}, {pipeline_mode = #tpu.pipeline_mode<synchronous>, transform_indices = @transform_2, window_bounds = array<i64: 21, 1>}, {pipeline_mode = #tpu.pipeline_mode<synchronous>, transform_indices = @transform_3, window_bounds = array<i64: 21, 1>}, {pipeline_mode = #tpu.pipeline_mode<synchronous>, transform_indices = @transform_4, window_bounds = array<i64: 3, 21>}, {transform_indices = @transform_5, window_bounds = array<i64: 1, 3, 2>}]} {
    %0 = tpu.iota {dimensions = array<i32: 1>} : vector<1x324xi32>
    %1 = arith.sitofp %0 : vector<1x324xi32> to vector<1x324xf32>
    %cst = arith.constant 5.000000e-01 : f32
    %2 = vector.broadcast %cst : f32 to vector<1x324xf32>
    %3 = arith.addf %1, %2 : vector<1x324xf32>
    %cst_0 = arith.constant 0.055555556 : f32
    %4 = vector.broadcast %cst_0 : f32 to vector<1x324xf32>
    %5 = arith.mulf %3, %4 : vector<1x324xf32>
    %6 = math.floor %5 : vector<1x324xf32>
    %cst_1 = arith.constant 1.800000e+01 : f32
    %7 = vector.broadcast %cst_1 : f32 to vector<1x324xf32>
    %8 = arith.mulf %6, %7 : vector<1x324xf32>
    %9 = arith.subf %1, %8 : vector<1x324xf32>
    %cst_2 = arith.constant 1.000000e+00 : f32
    %10 = vector.broadcast %cst_2 : f32 to vector<1x324xf32>
    %11 = arith.cmpf oge, %6, %10 : vector<1x324xf32>
    %cst_3 = arith.constant 1.600000e+01 : f32
    %12 = vector.broadcast %cst_3 : f32 to vector<1x324xf32>
    %13 = arith.cmpf ole, %6, %12 : vector<1x324xf32>
    %14 = arith.andi %11, %13 : vector<1x324xi1>
    %cst_4 = arith.constant 1.000000e+00 : f32
    %15 = vector.broadcast %cst_4 : f32 to vector<1x324xf32>
    %16 = arith.cmpf oge, %9, %15 : vector<1x324xf32>
    %17 = arith.andi %14, %16 : vector<1x324xi1>
    %cst_5 = arith.constant 1.600000e+01 : f32
    %18 = vector.broadcast %cst_5 : f32 to vector<1x324xf32>
    %19 = arith.cmpf ole, %9, %18 : vector<1x324xf32>
    %20 = arith.andi %17, %19 : vector<1x324xi1>
    %21 = arith.extui %20 : vector<1x324xi1> to vector<1x324xi32>
    %22 = arith.sitofp %21 : vector<1x324xi32> to vector<1x324xf32>
    %cst_6 = arith.constant 0.000000e+00 : f32
    %23 = vector.broadcast %cst_6 : f32 to vector<3x1xf32>
    %cst_7 = arith.constant 0.000000e+00 : f32
    %24 = vector.broadcast %cst_7 : f32 to vector<3x1xf32>
    %c0 = arith.constant 0 : index
    %c0_8 = arith.constant 0 : index
    %c0_9 = arith.constant 0 : index
    %25 = vector.load %arg1[%c0, %c0_8, %c0_9] : memref<2x3x362xf32, #tpu.memory_space<vmem>>, vector<1x3x362xf32>
    %26 = vector.shape_cast %25 : vector<1x3x362xf32> to vector<3x362xf32>
    %27 = vector.extract_strided_slice %26 {offsets = [0, 0], sizes = [3, 324], strides = [1, 1]} : vector<3x362xf32> to vector<3x324xf32>
    %28 = vector.extract_strided_slice %26 {offsets = [0, 1], sizes = [3, 324], strides = [1, 1]} : vector<3x362xf32> to vector<3x324xf32>
    %29 = vector.extract_strided_slice %26 {offsets = [0, 2], sizes = [3, 324], strides = [1, 1]} : vector<3x362xf32> to vector<3x324xf32>
    %30 = vector.extract_strided_slice %26 {offsets = [0, 18], sizes = [3, 324], strides = [1, 1]} : vector<3x362xf32> to vector<3x324xf32>
    %31 = vector.extract_strided_slice %26 {offsets = [0, 19], sizes = [3, 324], strides = [1, 1]} : vector<3x362xf32> to vector<3x324xf32>
    %32 = vector.extract_strided_slice %26 {offsets = [0, 20], sizes = [3, 324], strides = [1, 1]} : vector<3x362xf32> to vector<3x324xf32>
    %33 = vector.extract_strided_slice %26 {offsets = [0, 36], sizes = [3, 324], strides = [1, 1]} : vector<3x362xf32> to vector<3x324xf32>
    %34 = vector.extract_strided_slice %26 {offsets = [0, 37], sizes = [3, 324], strides = [1, 1]} : vector<3x362xf32> to vector<3x324xf32>
    %35 = vector.extract_strided_slice %26 {offsets = [0, 38], sizes = [3, 324], strides = [1, 1]} : vector<3x362xf32> to vector<3x324xf32>
    %36 = tpu.concatenate %27, %28, %29, %30, %31, %32, %33, %34, %35 in 0 : vector<3x324xf32>, vector<3x324xf32>, vector<3x324xf32>, vector<3x324xf32>, vector<3x324xf32>, vector<3x324xf32>, vector<3x324xf32>, vector<3x324xf32>, vector<3x324xf32> -> vector<27x324xf32>
    %c0_10 = arith.constant 0 : index
    %c0_11 = arith.constant 0 : index
    %37 = vector.load %arg2[%c0_10, %c0_11] : memref<21x27xf32, #tpu.memory_space<vmem>>, vector<21x27xf32>
    %cst_12 = arith.constant dense<0.000000e+00> : vector<21x324xf32>
    %38 = tpu.matmul %37, %36, %cst_12 {dimension_numbers = #tpu.dot_dimension_numbers<[1], [0], [0], [1], [0, 0, 1, 1], [], []>} : vector<21x27xf32>, vector<27x324xf32>, vector<21x324xf32> -> vector<21x324xf32>
    %c0_13 = arith.constant 0 : index
    %c0_14 = arith.constant 0 : index
    %39 = vector.load %arg3[%c0_13, %c0_14] : memref<21x1xf32, #tpu.memory_space<vmem>>, vector<21x1xf32>
    %40 = vector.broadcast %39 : vector<21x1xf32> to vector<21x324xf32>
    %41 = arith.mulf %38, %40 : vector<21x324xf32>
    %c0_15 = arith.constant 0 : index
    %c0_16 = arith.constant 0 : index
    %42 = vector.load %arg4[%c0_15, %c0_16] : memref<21x1xf32, #tpu.memory_space<vmem>>, vector<21x1xf32>
    %43 = vector.broadcast %42 : vector<21x1xf32> to vector<21x324xf32>
    %44 = arith.addf %41, %43 : vector<21x324xf32>
    %cst_17 = arith.constant 0.000000e+00 : f32
    %45 = vector.broadcast %cst_17 : f32 to vector<21x324xf32>
    %46 = arith.maximumf %44, %45 : vector<21x324xf32>
    %c0_18 = arith.constant 0 : index
    %c0_19 = arith.constant 0 : index
    %47 = vector.load %arg5[%c0_18, %c0_19] : memref<3x21xf32, #tpu.memory_space<vmem>>, vector<3x21xf32>
    %cst_20 = arith.constant dense<0.000000e+00> : vector<3x324xf32>
    %48 = tpu.matmul %47, %46, %cst_20 {dimension_numbers = #tpu.dot_dimension_numbers<[1], [0], [0], [1], [0, 0, 1, 1], [], []>} : vector<3x21xf32>, vector<21x324xf32>, vector<3x324xf32> -> vector<3x324xf32>
    %49 = vector.broadcast %22 : vector<1x324xf32> to vector<3x324xf32>
    %50 = arith.mulf %48, %49 : vector<3x324xf32>
    %cst_21 = arith.constant dense<0.000000e+00> : vector<3xf32>
    %51 = vector.multi_reduction <add>, %50, %cst_21 [1] : vector<3x324xf32> to vector<3xf32>
    %52 = vector.shape_cast %51 : vector<3xf32> to vector<3x1xf32>
    %53 = arith.addf %23, %52 : vector<3x1xf32>
    %54 = arith.mulf %50, %48 : vector<3x324xf32>
    %cst_22 = arith.constant dense<0.000000e+00> : vector<3xf32>
    %55 = vector.multi_reduction <add>, %54, %cst_22 [1] : vector<3x324xf32> to vector<3xf32>
    %56 = vector.shape_cast %55 : vector<3xf32> to vector<3x1xf32>
    %57 = arith.addf %24, %56 : vector<3x1xf32>
    %c1 = arith.constant 1 : index
    %c0_23 = arith.constant 0 : index
    %c0_24 = arith.constant 0 : index
    %58 = vector.load %arg1[%c1, %c0_23, %c0_24] : memref<2x3x362xf32, #tpu.memory_space<vmem>>, vector<1x3x362xf32>
    %59 = vector.shape_cast %58 : vector<1x3x362xf32> to vector<3x362xf32>
    %60 = vector.extract_strided_slice %59 {offsets = [0, 0], sizes = [3, 324], strides = [1, 1]} : vector<3x362xf32> to vector<3x324xf32>
    %61 = vector.extract_strided_slice %59 {offsets = [0, 1], sizes = [3, 324], strides = [1, 1]} : vector<3x362xf32> to vector<3x324xf32>
    %62 = vector.extract_strided_slice %59 {offsets = [0, 2], sizes = [3, 324], strides = [1, 1]} : vector<3x362xf32> to vector<3x324xf32>
    %63 = vector.extract_strided_slice %59 {offsets = [0, 18], sizes = [3, 324], strides = [1, 1]} : vector<3x362xf32> to vector<3x324xf32>
    %64 = vector.extract_strided_slice %59 {offsets = [0, 19], sizes = [3, 324], strides = [1, 1]} : vector<3x362xf32> to vector<3x324xf32>
    %65 = vector.extract_strided_slice %59 {offsets = [0, 20], sizes = [3, 324], strides = [1, 1]} : vector<3x362xf32> to vector<3x324xf32>
    %66 = vector.extract_strided_slice %59 {offsets = [0, 36], sizes = [3, 324], strides = [1, 1]} : vector<3x362xf32> to vector<3x324xf32>
    %67 = vector.extract_strided_slice %59 {offsets = [0, 37], sizes = [3, 324], strides = [1, 1]} : vector<3x362xf32> to vector<3x324xf32>
    %68 = vector.extract_strided_slice %59 {offsets = [0, 38], sizes = [3, 324], strides = [1, 1]} : vector<3x362xf32> to vector<3x324xf32>
    %69 = tpu.concatenate %60, %61, %62, %63, %64, %65, %66, %67, %68 in 0 : vector<3x324xf32>, vector<3x324xf32>, vector<3x324xf32>, vector<3x324xf32>, vector<3x324xf32>, vector<3x324xf32>, vector<3x324xf32>, vector<3x324xf32>, vector<3x324xf32> -> vector<27x324xf32>
    %c0_25 = arith.constant 0 : index
    %c0_26 = arith.constant 0 : index
    %70 = vector.load %arg2[%c0_25, %c0_26] : memref<21x27xf32, #tpu.memory_space<vmem>>, vector<21x27xf32>
    %cst_27 = arith.constant dense<0.000000e+00> : vector<21x324xf32>
    %71 = tpu.matmul %70, %69, %cst_27 {dimension_numbers = #tpu.dot_dimension_numbers<[1], [0], [0], [1], [0, 0, 1, 1], [], []>} : vector<21x27xf32>, vector<27x324xf32>, vector<21x324xf32> -> vector<21x324xf32>
    %c0_28 = arith.constant 0 : index
    %c0_29 = arith.constant 0 : index
    %72 = vector.load %arg3[%c0_28, %c0_29] : memref<21x1xf32, #tpu.memory_space<vmem>>, vector<21x1xf32>
    %73 = vector.broadcast %72 : vector<21x1xf32> to vector<21x324xf32>
    %74 = arith.mulf %71, %73 : vector<21x324xf32>
    %c0_30 = arith.constant 0 : index
    %c0_31 = arith.constant 0 : index
    %75 = vector.load %arg4[%c0_30, %c0_31] : memref<21x1xf32, #tpu.memory_space<vmem>>, vector<21x1xf32>
    %76 = vector.broadcast %75 : vector<21x1xf32> to vector<21x324xf32>
    %77 = arith.addf %74, %76 : vector<21x324xf32>
    %cst_32 = arith.constant 0.000000e+00 : f32
    %78 = vector.broadcast %cst_32 : f32 to vector<21x324xf32>
    %79 = arith.maximumf %77, %78 : vector<21x324xf32>
    %c0_33 = arith.constant 0 : index
    %c0_34 = arith.constant 0 : index
    %80 = vector.load %arg5[%c0_33, %c0_34] : memref<3x21xf32, #tpu.memory_space<vmem>>, vector<3x21xf32>
    %cst_35 = arith.constant dense<0.000000e+00> : vector<3x324xf32>
    %81 = tpu.matmul %80, %79, %cst_35 {dimension_numbers = #tpu.dot_dimension_numbers<[1], [0], [0], [1], [0, 0, 1, 1], [], []>} : vector<3x21xf32>, vector<21x324xf32>, vector<3x324xf32> -> vector<3x324xf32>
    %82 = vector.broadcast %22 : vector<1x324xf32> to vector<3x324xf32>
    %83 = arith.mulf %81, %82 : vector<3x324xf32>
    %cst_36 = arith.constant dense<0.000000e+00> : vector<3xf32>
    %84 = vector.multi_reduction <add>, %83, %cst_36 [1] : vector<3x324xf32> to vector<3xf32>
    %85 = vector.shape_cast %84 : vector<3xf32> to vector<3x1xf32>
    %86 = arith.addf %53, %85 : vector<3x1xf32>
    %87 = arith.mulf %83, %81 : vector<3x324xf32>
    %cst_37 = arith.constant dense<0.000000e+00> : vector<3xf32>
    %88 = vector.multi_reduction <add>, %87, %cst_37 [1] : vector<3x324xf32> to vector<3xf32>
    %89 = vector.shape_cast %88 : vector<3xf32> to vector<3x1xf32>
    %90 = arith.addf %57, %89 : vector<3x1xf32>
    %91 = tpu.concatenate %86, %90 in 1 : vector<3x1xf32>, vector<3x1xf32> -> vector<3x2xf32>
    %c0_38 = arith.constant 0 : index
    %c0_39 = arith.constant 0 : index
    %c0_40 = arith.constant 0 : index
    %92 = vector.load %arg6[%c0_38, %c0_39, %c0_40] : memref<1x3x2xf32, #tpu.memory_space<vmem>>, vector<1x3x2xf32>
    %93 = vector.shape_cast %92 : vector<1x3x2xf32> to vector<3x2xf32>
    %94 = vector.shape_cast %91 : vector<3x2xf32> to vector<1x3x2xf32>
    tpu.vector_store %arg6[%c0_38, %c0_39, %c0_40], %94 {strides = array<i32>} : memref<1x3x2xf32, #tpu.memory_space<vmem>>, vector<1x3x2xf32>,
    return
  }
  func.func @transform_0(%arg0: i32) -> (i32, i32, i32) {
    %c0_i32 = arith.constant 0 : i32
    %c0_i32_0 = arith.constant 0 : i32
    %c0_i32_1 = arith.constant 0 : i32
    return %arg0, %c0_i32, %c0_i32_0 : i32, i32, i32
  }
  func.func @transform_1(%arg0: i32) -> (i32, i32) {
    %c0_i32 = arith.constant 0 : i32
    %c0_i32_0 = arith.constant 0 : i32
    %c0_i32_1 = arith.constant 0 : i32
    return %c0_i32, %c0_i32_0 : i32, i32
  }
  func.func @transform_2(%arg0: i32) -> (i32, i32) {
    %c0_i32 = arith.constant 0 : i32
    %c0_i32_0 = arith.constant 0 : i32
    %c0_i32_1 = arith.constant 0 : i32
    return %c0_i32, %c0_i32_0 : i32, i32
  }
  func.func @transform_3(%arg0: i32) -> (i32, i32) {
    %c0_i32 = arith.constant 0 : i32
    %c0_i32_0 = arith.constant 0 : i32
    %c0_i32_1 = arith.constant 0 : i32
    return %c0_i32, %c0_i32_0 : i32, i32
  }
  func.func @transform_4(%arg0: i32) -> (i32, i32) {
    %c0_i32 = arith.constant 0 : i32
    %c0_i32_0 = arith.constant 0 : i32
    %c0_i32_1 = arith.constant 0 : i32
    return %c0_i32, %c0_i32_0 : i32, i32
  }
  func.func @transform_5(%arg0: i32) -> (i32, i32, i32) {
    %c0_i32 = arith.constant 0 : i32
    %c0_i32_0 = arith.constant 0 : i32
    %c0_i32_1 = arith.constant 0 : i32
    return %arg0, %c0_i32, %c0_i32_0 : i32, i32, i32
  }
}

module attributes {stable_mosaic.version = 11 : i64} {
  func.func @_emit_kernel(%arg0: i32, %arg1: memref<2x3x362xf32, #tpu.memory_space<vmem>>, %arg2: memref<21x27xf32, #tpu.memory_space<vmem>>, %arg3: memref<21x1xf32, #tpu.memory_space<vmem>>, %arg4: memref<21x1xf32, #tpu.memory_space<vmem>>, %arg5: memref<3x21xf32, #tpu.memory_space<vmem>>, %arg6: memref<3x1xf32, #tpu.memory_space<vmem>>, %arg7: memref<3x1xf32, #tpu.memory_space<vmem>>, %arg8: memref<2x3x324xf32, #tpu.memory_space<vmem>>) attributes {dimension_semantics = [#tpu.dimension_semantics<parallel>], iteration_bounds = array<i64: 1>, scalar_prefetch = 0 : i64, scratch_operands = 0 : i64, tpu.core_type = #tpu.core_type<tc>, window_params = [{transform_indices = @transform_0, window_bounds = array<i64: 2, 3, 362>}, {pipeline_mode = #tpu.pipeline_mode<synchronous>, transform_indices = @transform_1, window_bounds = array<i64: 21, 27>}, {pipeline_mode = #tpu.pipeline_mode<synchronous>, transform_indices = @transform_2, window_bounds = array<i64: 21, 1>}, {pipeline_mode = #tpu.pipeline_mode<synchronous>, transform_indices = @transform_3, window_bounds = array<i64: 21, 1>}, {pipeline_mode = #tpu.pipeline_mode<synchronous>, transform_indices = @transform_4, window_bounds = array<i64: 3, 21>}, {pipeline_mode = #tpu.pipeline_mode<synchronous>, transform_indices = @transform_5, window_bounds = array<i64: 3, 1>}, {pipeline_mode = #tpu.pipeline_mode<synchronous>, transform_indices = @transform_6, window_bounds = array<i64: 3, 1>}, {transform_indices = @transform_7, window_bounds = array<i64: 2, 3, 324>}]} {
    %c0 = arith.constant 0 : index
    %c0_0 = arith.constant 0 : index
    %c0_1 = arith.constant 0 : index
    %0 = vector.load %arg1[%c0, %c0_0, %c0_1] : memref<2x3x362xf32, #tpu.memory_space<vmem>>, vector<1x3x362xf32>
    %1 = vector.shape_cast %0 : vector<1x3x362xf32> to vector<3x362xf32>
    %2 = vector.extract_strided_slice %1 {offsets = [0, 0], sizes = [3, 324], strides = [1, 1]} : vector<3x362xf32> to vector<3x324xf32>
    %3 = vector.extract_strided_slice %1 {offsets = [0, 1], sizes = [3, 324], strides = [1, 1]} : vector<3x362xf32> to vector<3x324xf32>
    %4 = vector.extract_strided_slice %1 {offsets = [0, 2], sizes = [3, 324], strides = [1, 1]} : vector<3x362xf32> to vector<3x324xf32>
    %5 = vector.extract_strided_slice %1 {offsets = [0, 18], sizes = [3, 324], strides = [1, 1]} : vector<3x362xf32> to vector<3x324xf32>
    %6 = vector.extract_strided_slice %1 {offsets = [0, 19], sizes = [3, 324], strides = [1, 1]} : vector<3x362xf32> to vector<3x324xf32>
    %7 = vector.extract_strided_slice %1 {offsets = [0, 20], sizes = [3, 324], strides = [1, 1]} : vector<3x362xf32> to vector<3x324xf32>
    %8 = vector.extract_strided_slice %1 {offsets = [0, 36], sizes = [3, 324], strides = [1, 1]} : vector<3x362xf32> to vector<3x324xf32>
    %9 = vector.extract_strided_slice %1 {offsets = [0, 37], sizes = [3, 324], strides = [1, 1]} : vector<3x362xf32> to vector<3x324xf32>
    %10 = vector.extract_strided_slice %1 {offsets = [0, 38], sizes = [3, 324], strides = [1, 1]} : vector<3x362xf32> to vector<3x324xf32>
    %11 = tpu.concatenate %2, %3, %4, %5, %6, %7, %8, %9, %10 in 0 : vector<3x324xf32>, vector<3x324xf32>, vector<3x324xf32>, vector<3x324xf32>, vector<3x324xf32>, vector<3x324xf32>, vector<3x324xf32>, vector<3x324xf32>, vector<3x324xf32> -> vector<27x324xf32>
    %c0_2 = arith.constant 0 : index
    %c0_3 = arith.constant 0 : index
    %12 = vector.load %arg2[%c0_2, %c0_3] : memref<21x27xf32, #tpu.memory_space<vmem>>, vector<21x27xf32>
    %cst = arith.constant dense<0.000000e+00> : vector<21x324xf32>
    %13 = tpu.matmul %12, %11, %cst {dimension_numbers = #tpu.dot_dimension_numbers<[1], [0], [0], [1], [0, 0, 1, 1], [], []>} : vector<21x27xf32>, vector<27x324xf32>, vector<21x324xf32> -> vector<21x324xf32>
    %c0_4 = arith.constant 0 : index
    %c0_5 = arith.constant 0 : index
    %14 = vector.load %arg3[%c0_4, %c0_5] : memref<21x1xf32, #tpu.memory_space<vmem>>, vector<21x1xf32>
    %15 = vector.broadcast %14 : vector<21x1xf32> to vector<21x324xf32>
    %16 = arith.mulf %13, %15 : vector<21x324xf32>
    %c0_6 = arith.constant 0 : index
    %c0_7 = arith.constant 0 : index
    %17 = vector.load %arg4[%c0_6, %c0_7] : memref<21x1xf32, #tpu.memory_space<vmem>>, vector<21x1xf32>
    %18 = vector.broadcast %17 : vector<21x1xf32> to vector<21x324xf32>
    %19 = arith.addf %16, %18 : vector<21x324xf32>
    %cst_8 = arith.constant 0.000000e+00 : f32
    %20 = vector.broadcast %cst_8 : f32 to vector<21x324xf32>
    %21 = arith.maximumf %19, %20 : vector<21x324xf32>
    %c0_9 = arith.constant 0 : index
    %c0_10 = arith.constant 0 : index
    %22 = vector.load %arg5[%c0_9, %c0_10] : memref<3x21xf32, #tpu.memory_space<vmem>>, vector<3x21xf32>
    %cst_11 = arith.constant dense<0.000000e+00> : vector<3x324xf32>
    %23 = tpu.matmul %22, %21, %cst_11 {dimension_numbers = #tpu.dot_dimension_numbers<[1], [0], [0], [1], [0, 0, 1, 1], [], []>} : vector<3x21xf32>, vector<21x324xf32>, vector<3x324xf32> -> vector<3x324xf32>
    %c0_12 = arith.constant 0 : index
    %c0_13 = arith.constant 0 : index
    %24 = vector.load %arg6[%c0_12, %c0_13] : memref<3x1xf32, #tpu.memory_space<vmem>>, vector<3x1xf32>
    %25 = vector.broadcast %24 : vector<3x1xf32> to vector<3x324xf32>
    %26 = arith.mulf %23, %25 : vector<3x324xf32>
    %c0_14 = arith.constant 0 : index
    %c0_15 = arith.constant 0 : index
    %27 = vector.load %arg7[%c0_14, %c0_15] : memref<3x1xf32, #tpu.memory_space<vmem>>, vector<3x1xf32>
    %28 = vector.broadcast %27 : vector<3x1xf32> to vector<3x324xf32>
    %29 = arith.addf %26, %28 : vector<3x324xf32>
    %cst_16 = arith.constant 0.000000e+00 : f32
    %30 = vector.broadcast %cst_16 : f32 to vector<3x324xf32>
    %31 = arith.minimumf %29, %30 : vector<3x324xf32>
    %32 = math.exp %31 : vector<3x324xf32>
    %cst_17 = arith.constant 1.000000e+00 : f32
    %33 = vector.broadcast %cst_17 : f32 to vector<3x324xf32>
    %34 = arith.subf %32, %33 : vector<3x324xf32>
    %cst_18 = arith.constant 1.67326319 : f32
    %35 = vector.broadcast %cst_18 : f32 to vector<3x324xf32>
    %36 = arith.mulf %35, %34 : vector<3x324xf32>
    %cst_19 = arith.constant 0.000000e+00 : f32
    %37 = vector.broadcast %cst_19 : f32 to vector<3x324xf32>
    %38 = arith.cmpf ogt, %29, %37 : vector<3x324xf32>
    %39 = arith.select %38, %29, %36 : vector<3x324xi1>, vector<3x324xf32>
    %cst_20 = arith.constant 1.05070102 : f32
    %40 = vector.broadcast %cst_20 : f32 to vector<3x324xf32>
    %41 = arith.mulf %40, %39 : vector<3x324xf32>
    %42 = arith.addf %6, %41 : vector<3x324xf32>
    %c0_21 = arith.constant 0 : index
    %c0_22 = arith.constant 0 : index
    %c0_23 = arith.constant 0 : index
    %43 = vector.load %arg8[%c0_21, %c0_22, %c0_23] : memref<2x3x324xf32, #tpu.memory_space<vmem>>, vector<1x3x324xf32>
    %44 = vector.shape_cast %43 : vector<1x3x324xf32> to vector<3x324xf32>
    %45 = vector.shape_cast %42 : vector<3x324xf32> to vector<1x3x324xf32>
    tpu.vector_store %arg8[%c0_21, %c0_22, %c0_23], %45 {strides = array<i32>} : memref<2x3x324xf32, #tpu.memory_space<vmem>>, vector<1x3x324xf32>,
    %c1 = arith.constant 1 : index
    %c0_24 = arith.constant 0 : index
    %c0_25 = arith.constant 0 : index
    %46 = vector.load %arg1[%c1, %c0_24, %c0_25] : memref<2x3x362xf32, #tpu.memory_space<vmem>>, vector<1x3x362xf32>
    %47 = vector.shape_cast %46 : vector<1x3x362xf32> to vector<3x362xf32>
    %48 = vector.extract_strided_slice %47 {offsets = [0, 0], sizes = [3, 324], strides = [1, 1]} : vector<3x362xf32> to vector<3x324xf32>
    %49 = vector.extract_strided_slice %47 {offsets = [0, 1], sizes = [3, 324], strides = [1, 1]} : vector<3x362xf32> to vector<3x324xf32>
    %50 = vector.extract_strided_slice %47 {offsets = [0, 2], sizes = [3, 324], strides = [1, 1]} : vector<3x362xf32> to vector<3x324xf32>
    %51 = vector.extract_strided_slice %47 {offsets = [0, 18], sizes = [3, 324], strides = [1, 1]} : vector<3x362xf32> to vector<3x324xf32>
    %52 = vector.extract_strided_slice %47 {offsets = [0, 19], sizes = [3, 324], strides = [1, 1]} : vector<3x362xf32> to vector<3x324xf32>
    %53 = vector.extract_strided_slice %47 {offsets = [0, 20], sizes = [3, 324], strides = [1, 1]} : vector<3x362xf32> to vector<3x324xf32>
    %54 = vector.extract_strided_slice %47 {offsets = [0, 36], sizes = [3, 324], strides = [1, 1]} : vector<3x362xf32> to vector<3x324xf32>
    %55 = vector.extract_strided_slice %47 {offsets = [0, 37], sizes = [3, 324], strides = [1, 1]} : vector<3x362xf32> to vector<3x324xf32>
    %56 = vector.extract_strided_slice %47 {offsets = [0, 38], sizes = [3, 324], strides = [1, 1]} : vector<3x362xf32> to vector<3x324xf32>
    %57 = tpu.concatenate %48, %49, %50, %51, %52, %53, %54, %55, %56 in 0 : vector<3x324xf32>, vector<3x324xf32>, vector<3x324xf32>, vector<3x324xf32>, vector<3x324xf32>, vector<3x324xf32>, vector<3x324xf32>, vector<3x324xf32>, vector<3x324xf32> -> vector<27x324xf32>
    %c0_26 = arith.constant 0 : index
    %c0_27 = arith.constant 0 : index
    %58 = vector.load %arg2[%c0_26, %c0_27] : memref<21x27xf32, #tpu.memory_space<vmem>>, vector<21x27xf32>
    %cst_28 = arith.constant dense<0.000000e+00> : vector<21x324xf32>
    %59 = tpu.matmul %58, %57, %cst_28 {dimension_numbers = #tpu.dot_dimension_numbers<[1], [0], [0], [1], [0, 0, 1, 1], [], []>} : vector<21x27xf32>, vector<27x324xf32>, vector<21x324xf32> -> vector<21x324xf32>
    %c0_29 = arith.constant 0 : index
    %c0_30 = arith.constant 0 : index
    %60 = vector.load %arg3[%c0_29, %c0_30] : memref<21x1xf32, #tpu.memory_space<vmem>>, vector<21x1xf32>
    %61 = vector.broadcast %60 : vector<21x1xf32> to vector<21x324xf32>
    %62 = arith.mulf %59, %61 : vector<21x324xf32>
    %c0_31 = arith.constant 0 : index
    %c0_32 = arith.constant 0 : index
    %63 = vector.load %arg4[%c0_31, %c0_32] : memref<21x1xf32, #tpu.memory_space<vmem>>, vector<21x1xf32>
    %64 = vector.broadcast %63 : vector<21x1xf32> to vector<21x324xf32>
    %65 = arith.addf %62, %64 : vector<21x324xf32>
    %cst_33 = arith.constant 0.000000e+00 : f32
    %66 = vector.broadcast %cst_33 : f32 to vector<21x324xf32>
    %67 = arith.maximumf %65, %66 : vector<21x324xf32>
    %c0_34 = arith.constant 0 : index
    %c0_35 = arith.constant 0 : index
    %68 = vector.load %arg5[%c0_34, %c0_35] : memref<3x21xf32, #tpu.memory_space<vmem>>, vector<3x21xf32>
    %cst_36 = arith.constant dense<0.000000e+00> : vector<3x324xf32>
    %69 = tpu.matmul %68, %67, %cst_36 {dimension_numbers = #tpu.dot_dimension_numbers<[1], [0], [0], [1], [0, 0, 1, 1], [], []>} : vector<3x21xf32>, vector<21x324xf32>, vector<3x324xf32> -> vector<3x324xf32>
    %c0_37 = arith.constant 0 : index
    %c0_38 = arith.constant 0 : index
    %70 = vector.load %arg6[%c0_37, %c0_38] : memref<3x1xf32, #tpu.memory_space<vmem>>, vector<3x1xf32>
    %71 = vector.broadcast %70 : vector<3x1xf32> to vector<3x324xf32>
    %72 = arith.mulf %69, %71 : vector<3x324xf32>
    %c0_39 = arith.constant 0 : index
    %c0_40 = arith.constant 0 : index
    %73 = vector.load %arg7[%c0_39, %c0_40] : memref<3x1xf32, #tpu.memory_space<vmem>>, vector<3x1xf32>
    %74 = vector.broadcast %73 : vector<3x1xf32> to vector<3x324xf32>
    %75 = arith.addf %72, %74 : vector<3x324xf32>
    %cst_41 = arith.constant 0.000000e+00 : f32
    %76 = vector.broadcast %cst_41 : f32 to vector<3x324xf32>
    %77 = arith.minimumf %75, %76 : vector<3x324xf32>
    %78 = math.exp %77 : vector<3x324xf32>
    %cst_42 = arith.constant 1.000000e+00 : f32
    %79 = vector.broadcast %cst_42 : f32 to vector<3x324xf32>
    %80 = arith.subf %78, %79 : vector<3x324xf32>
    %cst_43 = arith.constant 1.67326319 : f32
    %81 = vector.broadcast %cst_43 : f32 to vector<3x324xf32>
    %82 = arith.mulf %81, %80 : vector<3x324xf32>
    %cst_44 = arith.constant 0.000000e+00 : f32
    %83 = vector.broadcast %cst_44 : f32 to vector<3x324xf32>
    %84 = arith.cmpf ogt, %75, %83 : vector<3x324xf32>
    %85 = arith.select %84, %75, %82 : vector<3x324xi1>, vector<3x324xf32>
    %cst_45 = arith.constant 1.05070102 : f32
    %86 = vector.broadcast %cst_45 : f32 to vector<3x324xf32>
    %87 = arith.mulf %86, %85 : vector<3x324xf32>
    %88 = arith.addf %52, %87 : vector<3x324xf32>
    %c1_46 = arith.constant 1 : index
    %c0_47 = arith.constant 0 : index
    %c0_48 = arith.constant 0 : index
    %89 = vector.load %arg8[%c1_46, %c0_47, %c0_48] : memref<2x3x324xf32, #tpu.memory_space<vmem>>, vector<1x3x324xf32>
    %90 = vector.shape_cast %89 : vector<1x3x324xf32> to vector<3x324xf32>
    %91 = vector.shape_cast %88 : vector<3x324xf32> to vector<1x3x324xf32>
    tpu.vector_store %arg8[%c1_46, %c0_47, %c0_48], %91 {strides = array<i32>} : memref<2x3x324xf32, #tpu.memory_space<vmem>>, vector<1x3x324xf32>,
    return
  }
  func.func @transform_0(%arg0: i32) -> (i32, i32, i32) {
    %c0_i32 = arith.constant 0 : i32
    %c0_i32_0 = arith.constant 0 : i32
    %c0_i32_1 = arith.constant 0 : i32
    return %arg0, %c0_i32, %c0_i32_0 : i32, i32, i32
  }
  func.func @transform_1(%arg0: i32) -> (i32, i32) {
    %c0_i32 = arith.constant 0 : i32
    %c0_i32_0 = arith.constant 0 : i32
    %c0_i32_1 = arith.constant 0 : i32
    return %c0_i32, %c0_i32_0 : i32, i32
  }
  func.func @transform_2(%arg0: i32) -> (i32, i32) {
    %c0_i32 = arith.constant 0 : i32
    %c0_i32_0 = arith.constant 0 : i32
    %c0_i32_1 = arith.constant 0 : i32
    return %c0_i32, %c0_i32_0 : i32, i32
  }
  func.func @transform_3(%arg0: i32) -> (i32, i32) {
    %c0_i32 = arith.constant 0 : i32
    %c0_i32_0 = arith.constant 0 : i32
    %c0_i32_1 = arith.constant 0 : i32
    return %c0_i32, %c0_i32_0 : i32, i32
  }
  func.func @transform_4(%arg0: i32) -> (i32, i32) {
    %c0_i32 = arith.constant 0 : i32
    %c0_i32_0 = arith.constant 0 : i32
    %c0_i32_1 = arith.constant 0 : i32
    return %c0_i32, %c0_i32_0 : i32, i32
  }
  func.func @transform_5(%arg0: i32) -> (i32, i32) {
    %c0_i32 = arith.constant 0 : i32
    %c0_i32_0 = arith.constant 0 : i32
    %c0_i32_1 = arith.constant 0 : i32
    return %c0_i32, %c0_i32_0 : i32, i32
  }
  func.func @transform_6(%arg0: i32) -> (i32, i32) {
    %c0_i32 = arith.constant 0 : i32
    %c0_i32_0 = arith.constant 0 : i32
    %c0_i32_1 = arith.constant 0 : i32
    return %c0_i32, %c0_i32_0 : i32, i32
  }
  func.func @transform_7(%arg0: i32) -> (i32, i32, i32) {
    %c0_i32 = arith.constant 0 : i32
    %c0_i32_0 = arith.constant 0 : i32
    %c0_i32_1 = arith.constant 0 : i32
    return %arg0, %c0_i32, %c0_i32_0 : i32, i32, i32
  }
}

</mosaic_0001>

<bundles_post_ra>
// kernel: block_forward.3
= control target key start
LH: loop header
LB: loop body
LE: loop exit
PB: predicated region body
PF: predicated region fallthrough
CT: control target
= control target key end

     0   :  { %s1055_s15 = smov 126   ;;  %s1056_s16 = smov 127   ;;  %v1059_v33 = vmov 0.0|0.0   ;;  %v1063_v53 = vmov 0.0   ;;  %vm1065_vm0 = vmmov 0   ;;  %vm105_vm1 = vcmask 900096   ;;  %s1421_s0 = inlined_call_operand.vmem [shape: f32[2,3,362], index: 0, kind: input, shape index: {}]   ;;  %s1422_s1 = inlined_call_operand.vmem [shape: f32[21,27], index: 1, kind: input, shape index: {}]   ;;  %s1423_s2 = inlined_call_operand.vmem [shape: f32[1,21,2], index: 2, kind: output, shape index: {}]  }
   0x1   :  { %v1085_v0 = vld [vmem:[%s1421_s0] sm:$0x77]  ;;  %v1090_v1 = vld [vmem:[%s1421_s0 + $0x8] sm:$0x7]  ;;  %v1095_v2 = vld [vmem:[%s1421_s0 + $0xc] sm:$0x77]  ;;  %903 = vmatprep.subr.bf16.mxu1 %v1059_v33  ;;  %290 = vmatprep.mubr.f32.mxu0 %v1063_v53 }
   0x2   :  { %v1099_v3 = vcombine.high %v1085_v0, %v1085_v0  ;;  %v83_v4 = vrot.slane %v1090_v1, 2  ;;  %v68_v5 = vrot.slane %v1090_v1, 5  ;;  %v98_v6 = vrot.slane %v1090_v1, 7  ;;  %s1057_s17 = smov 110   ;;  %s1058_s18 = smov 109   ;;  %867 = vmatprep.mubr.msk.f32.mxu1 %vm1065_vm0, %v1063_v53 }
   0x3   :  { %v1106_v7 = vcombine.high %v1095_v2, %v1095_v2  ;;  %v81_v11 = vrot.slane %v1085_v0, 2  ;;  %v96_v15 = vrot.slane %v1085_v0, 7  ;;  %v112_v19 = vcombine.low %v1090_v1, %v1090_v1  ;;  %s1060_s19 = smov 108   ;;  %s1061_s20 = smov 92   ;;  %v1150_v44 = vld [vmem:[%s1421_s0 + $0x14] sm:$0x7] }
   0x4   :  { %v82_v8 = vrot.slane %v1099_v3, 2  ;;  %v67_v9 = vrot.slane %v1099_v3, 5  ;;  %v97_v10 = vrot.slane %v1099_v3, 7  ;;  %v66_v20 = vrot.slane %v1085_v0, 5  ;;  %s1062_s23 = smov 91   ;;  %s1064_s0 = smov 90  }
   0x5   :  { %v471_v12 = vrot.slane %v1106_v7, 2  ;;  %v485_v18 = vrot.slane %v1106_v7, 7  ;;  %v457_v21 = vrot.slane %v1106_v7, 5  ;;  %v964_v23 = vpack.i.bf16 %v112_v19, %v1085_v0 }
   0x6   :  { %v939_v13 = vpack.i.bf16 %v83_v4, %v82_v8  ;;  %v949_v14 = vpack.i.bf16 %v68_v5, %v67_v9  ;;  %v944_v16 = vpack.i.bf16 %v98_v6, %v97_v10  ;;  %v111_v24 = vcombine.low %v1085_v0, %v1085_v0 }
   0x7   :  { %v954_v17 = vpack.i.bf16 %v471_v12, %v81_v11  ;;  %v959_v22 = vpack.i.bf16 %v485_v18, %v96_v15  ;;  %v969_v25 = vpack.i.bf16 %v457_v21, %v66_v20  ;;  %v126_v26 = vrot.slane %v1099_v3, 1 }
   0x8   :  { %940 = vrot.lane.b32.xlu0 %v939_v13, %s1055_s15  ;;  %950 = vrot.lane.b32.xlu1 %v949_v14, %s1056_s16  ;;  %v974_v27 = vpack.i.bf16 %v1095_v2, %v111_v24  ;;  %v127_v28 = vrot.slane %v1090_v1, 1  ;;  %v125_v29 = vrot.slane %v1085_v0, 1  ;;  %v512_v30 = vrot.slane %v1106_v7, 1 }
   0x9   :  { %v141_v31 = vrot.slane %v1099_v3, 6  ;;  %v142_v32 = vrot.slane %v1090_v1, 6  ;;  %v140_v36 = vrot.slane %v1085_v0, 6  ;;  %v526_v37 = vrot.slane %v1106_v7, 6 }
   0xa   :  { %v979_v34 = vpack.i.bf16 %v127_v28, %v126_v26  ;;  %v984_v35 = vpack.i.bf16 %v512_v30, %v125_v29  ;;  %v156_v40 = vrot.slane %v1099_v3, 3  ;;  %v157_v41 = vrot.slane %v1090_v1, 3 }
   0xb   :  { %v989_v38 = vpack.i.bf16 %v142_v32, %v141_v31  ;;  %v994_v39 = vpack.i.bf16 %v526_v37, %v140_v36  ;;  %v155_v43 = vrot.slane %v1085_v0, 3  ;;  %v1004_v45 = vpack.i.bf16 %v1090_v1, %v1099_v3 }
   0xc   :  { %945 = vrot.lane.b32.xlu0 %v944_v16, %s1057_s17  ;;  %955 = vrot.lane.b32.xlu1 %v954_v17, %s1055_s15  ;;  %v999_v42 = vpack.i.bf16 %v157_v41, %v156_v40  ;;  %v470_v46 = vrot.slane %v1095_v2, 2  ;;  %v472_v47 = vrot.slane %v1150_v44, 2  ;;  %v484_v48 = vrot.slane %v1095_v2, 7 }
   0xd   :  { %v486_v49 = vrot.slane %v1150_v44, 7  ;;  %v456_v50 = vrot.slane %v1095_v2, 5  ;;  %v458_v51 = vrot.slane %v1150_v44, 5  ;;  %v498_v52 = vcombine.low %v1095_v2, %v1095_v2 }
   0xe   :  { %v1009_v54 = vpack.i.bf16 %v470_v46, %v472_v47  ;;  %v499_v56 = vcombine.low %v1150_v44, %v1150_v44  ;;  %v511_v57 = vrot.slane %v1095_v2, 1  ;;  %v513_v58 = vrot.slane %v1150_v44, 1 }
   0xf   :  { %v1014_v55 = vpack.i.bf16 %v484_v48, %v486_v49  ;;  %v1019_v59 = vpack.i.bf16 %v456_v50, %v458_v51  ;;  %v525_v61 = vrot.slane %v1095_v2, 6  ;;  %v527_v62 = vrot.slane %v1150_v44, 6 }
  0x10   :  { %960 = vrot.lane.b32.xlu0 %v959_v22, %s1057_s17  ;;  %965 = vrot.lane.b32.xlu1 %v964_v23, %s1058_s18  ;;  %v1024_v60 = vpack.i.bf16 %v498_v52, %v499_v56  ;;  %v1029_v63 = vpack.i.bf16 %v511_v57, %v513_v58  ;;  %v540_v5 = vrot.slane %v1106_v7, 3  ;;  %v541_v6 = vrot.slane %v1150_v44, 3 }
  0x11   :  { %v1034_v4 = vpack.i.bf16 %v525_v61, %v527_v62  ;;  %v539_v9 = vrot.slane %v1095_v2, 3  ;;  %v1044_v10 = vpack.i.bf16 %v1150_v44, %v1106_v7  ;;  %vm187_vm2 = vcmask 1040384  }
  0x12   :  { %v1039_v8 = vpack.i.bf16 %v541_v6, %v540_v5  ;;  %vm75_vm3 = vcmask 1039360   ;;  %vm179_vm4 = vcmask 1042432   ;;  %vm90_vm5 = vcmask 1031168  }
  0x13   :  { %vm119_vm6 = vcmask 891904   ;;  %vm183_vm7 = vcmask 1045504   ;;  %vm191_vm8 = vcmask 1043456   ;;  %vm1425_vm9 = vcmask 1046528  }
  0x14   :  { %970 = vrot.lane.b32.xlu0 %v969_v25, %s1056_s16  ;;  %975 = vrot.lane.b32.xlu1 %v974_v27, %s1058_s18  ;;  %vm134_vm10 = vcmask 883712   ;;  %vm1424_vm11 = vcmask 752640   ;;  %vm164_vm12 = vcmask 744448   ;;  %vm199_vm13 = vcmask 1041408  }
  0x15   :  { %vm1426_vm14 = vcmask 1044480   ;;  %vm176_vm15 = vcmask 736256  }
  0x18   :  { %980 = vrot.lane.b32.xlu0 %v979_v34, %s1060_s19  ;;  %985 = vrot.lane.b32.xlu1 %v984_v35, %s1060_s19 }
  0x1c   :  { %990 = vrot.lane.b32.xlu0 %v989_v38, %s1061_s20  ;;  %995 = vrot.lane.b32.xlu1 %v994_v39, %s1061_s20 }
  0x20   :  { %1000 = vrot.lane.b32.xlu0 %v999_v42, %s1062_s23  ;;  %158 = vrot.lane.b32.xlu1 %v155_v43, %s1062_s23 }
  0x24   :  { %1005 = vrot.lane.b32.xlu0 %v1004_v45, %s1064_s0  ;;  %170 = vrot.lane.b32.xlu1 %v1085_v0, %s1064_s0 }
  0x28   :  { %1010 = vrot.lane.b32.xlu0 %v1009_v54, %s1055_s15  ;;  %1015 = vrot.lane.b32.xlu1 %v1014_v55, %s1057_s17 }
  0x2c   :  { %1020 = vrot.lane.b32.xlu0 %v1019_v59, %s1056_s16  ;;  %1025 = vrot.lane.b32.xlu1 %v1024_v60, %s1058_s18 }
  0x30   :  { %1030 = vrot.lane.b32.xlu0 %v1029_v63, %s1060_s19  ;;  %1035 = vrot.lane.b32.xlu1 %v1034_v4, %s1061_s20 }
  0x34   :  { %1040 = vrot.lane.b32.xlu0 %v1039_v8, %s1062_s23  ;;  %542 = vrot.lane.b32.xlu1 %v539_v9, %s1062_s23 }
  0x38   :  { %1045 = vrot.lane.b32.xlu0 %v1044_v10, %s1064_s0  ;;  %553 = vrot.lane.b32.xlu1 %v1095_v2, %s1064_s0 }
  0x7a   :  { %v941_v11 = vpop.permute.xlu0 %940  ;;  %v951_v12 = vpop.permute.xlu1 %950 }
  0x7b   :  { %v953_v15 = vunpack.i.h.bf16 %v951_v12  ;;  %v952_v18 = vunpack.i.l.bf16 %v951_v12  ;;  %v943_v19 = vunpack.i.h.bf16 %v941_v11  ;;  %v942_v20 = vunpack.i.l.bf16 %v941_v11 }
  0x7d   :  { %v182_v29 = vsel %vm179_vm4, %v1090_v1, %v953_v15  ;;  %v77_v32 = vsel %vm75_vm3, %v952_v18, %v953_v15  ;;  %v92_v35 = vsel %vm90_vm5, %v942_v20, %v943_v19 }
  0x7e   :  { %v946_v13 = vpop.permute.xlu0 %945  ;;  %v1188_v14 = vpop.permute.xlu1 %955  ;;  %v186_v1 = vsel %vm183_vm7, %v182_v29, %v943_v19  ;;  %v181_v43 = vsel %vm179_vm4, %v1099_v3, %v77_v32 }
  0x7f   :  { %v948_v21 = vunpack.i.h.bf16 %v946_v13  ;;  %v947_v22 = vunpack.i.l.bf16 %v946_v13  ;;  %v957_v26 = vunpack.i.l.bf16 %v1188_v14 }
  0x81   :  { %v107_v34 = vsel %vm105_vm1, %v947_v22, %v948_v21  ;;  %v190_v39 = vsel %vm187_vm2, %v943_v19, %v948_v21  ;;  %v91_v45 = vsel %vm90_vm5, %v957_v26, %v942_v20 }
  0x82   :  { %v1190_v16 = vpop.permute.xlu0 %960  ;;  %v966_v17 = vpop.permute.xlu1 %965  ;;  %v189_v49 = vsel %vm187_vm2, %v92_v35, %v107_v34 }
  0x83   :  { %v962_v23 = vunpack.i.l.bf16 %v1190_v16  ;;  %v968_v24 = vunpack.i.h.bf16 %v966_v17  ;;  %v967_v25 = vunpack.i.l.bf16 %v966_v17 }
  0x85   :  { %v106_v36 = vsel %vm105_vm1, %v962_v23, %v947_v22  ;;  %v121_v38 = vsel %vm119_vm6, %v967_v25, %v968_v24  ;;  %v194_v50 = vsel %vm191_vm8, %v190_v39, %v968_v24 }
  0x86   :  { %v1194_v27 = vpop.permute.xlu0 %970  ;;  %v1196_v28 = vpop.permute.xlu1 %975  ;;  %v193_v51 = vsel %vm191_vm8, %v189_v49, %v121_v38  ;;  %v188_v54 = vsel %vm187_vm2, %v91_v45, %v106_v36  ;;  %v1265_v49 = vld [vmem:[%s1422_s1] sm:$0xff] }
  0x87   :  { %v972_v30 = vunpack.i.l.bf16 %v1194_v27  ;;  %v977_v31 = vunpack.i.l.bf16 %v1196_v28 }
  0x89   :  { %v76_v37 = vsel %vm75_vm3, %v972_v30, %v952_v18  ;;  %v120_v40 = vsel %vm119_vm6, %v977_v31, %v967_v25  ;;  %v11_v31 = vlaneseq }
  0x8a   :  { %v981_v41 = vpop.permute.xlu0 %980  ;;  %v1211_v42 = vpop.permute.xlu1 %985  ;;  %v180_v52 = vsel %vm179_vm4, %v1085_v0, %v76_v37  ;;  %v192_v57 = vsel %vm191_vm8, %v188_v54, %v120_v40  ;;  %v185_v0 = vsel %vm183_vm7, %v181_v43, %v92_v35 }
  0x8b   :  { %v983_v46 = vunpack.i.h.bf16 %v981_v41  ;;  %v982_v47 = vunpack.i.l.bf16 %v981_v41  ;;  %v987_v48 = vunpack.i.l.bf16 %v1211_v42  ;;  %v184_v63 = vsel %vm183_vm7, %v180_v52, %v91_v45 }
  0x8d   :  { %v198_v55 = vsel %vm1425_vm9, %v194_v50, %v983_v46  ;;  %v136_v3 = vsel %vm134_vm10, %v982_v47, %v983_v46  ;;  %v135_v56 = vsel %vm134_vm10, %v987_v48, %v982_v47  ;;  %v963_v47 = vunpack.i.h.bf16 %v1190_v16 }
  0x8e   :  { %v991_v58 = vpop.permute.xlu0 %990  ;;  %v1227_v59 = vpop.permute.xlu1 %995  ;;  %v904_v60 = vpack.c.bf16 %v198_v55, %v186_v1  ;;  %v197_v61 = vsel %vm1425_vm9, %v193_v51, %v136_v3  ;;  %v196_v62 = vsel %vm1425_vm9, %v192_v57, %v135_v56  ;;  %v973_v48 = vunpack.i.h.bf16 %v1194_v27 }
  0x8f   :  { %v992_v4 = vunpack.i.l.bf16 %v991_v58  ;;  %v997_v5 = vunpack.i.l.bf16 %v1227_v59  ;;  %v893_v6 = vpack.c.bf16 %v197_v61, %v185_v0  ;;  %v895_v8 = vpack.c.bf16 %v196_v62, %v184_v63 }
  0x90   :  { %905 = vmatpush3.bf16.msra.mxu1 %v904_v60  ;;  %v993_v9 = vunpack.i.h.bf16 %v991_v58  ;;  %v978_v57 = vunpack.i.h.bf16 %v1196_v28  ;;  %v988_v58 = vunpack.i.h.bf16 %v1211_v42  ;;  %v998_v60 = vunpack.i.h.bf16 %v1227_v59  ;;  %v1288_v28 = vld [vmem:[%s1422_s1 + $0x8] sm:$0xff] }
  0x91   :  { %906 = vmatprep.subr.bf16.mxu1 %v1059_v33  ;;  %894 = vmatprep.subr.bf16.mxu0 %v893_v6  ;;  %v150_v15 = vsel %vm1424_vm11, %v997_v5, %v992_v4 }
  0x92   :  { %v1001_v10 = vpop.permute.xlu0 %1000  ;;  %v159_v11 = vpop.permute.xlu1 %158  ;;  %896 = vmatpush1.bf16.msra.mxu0 %v895_v8  ;;  %v151_v17 = vsel %vm1424_vm11, %v992_v4, %v993_v9  ;;  %v202_v22 = vsel %vm199_vm13, %v983_v46, %v993_v9  ;;  %v200_v25 = vsel %vm199_vm13, %v135_v56, %v150_v15  ;;  %vm1066_vm11 = vmmov 1  }
  0x93   :  { %v1003_v12 = vunpack.i.h.bf16 %v1001_v10  ;;  %v1002_v13 = vunpack.i.l.bf16 %v1001_v10  ;;  %v201_v26 = vsel %vm199_vm13, %v136_v3, %v151_v17  ;;  %vm1245_vm9 = vmpackc.low %vm179_vm4, %vm1066_vm11  ;;  %v958_v46 = vunpack.i.h.bf16 %v1188_v14 }
  0x94   :  { %vm210_vm11 = vcmask 220160  }
  0x95   :  { %v165_v18 = vsel %vm164_vm12, %v159_v11, %v1002_v13  ;;  %v166_v19 = vsel %vm164_vm12, %v1002_v13, %v1003_v12  ;;  %v206_v29 = vsel %vm1426_vm14, %v202_v22, %v1003_v12 }
  0x96   :  { %v1006_v20 = vpop.permute.xlu0 %1005  ;;  %v171_v21 = vpop.permute.xlu1 %170  ;;  %v204_v30 = vsel %vm1426_vm14, %v200_v25, %v165_v18  ;;  %v205_v36 = vsel %vm1426_vm14, %v201_v26, %v166_v19 }
  0x97   :  { %v1008_v23 = vunpack.i.h.bf16 %v1006_v20  ;;  %v1007_v24 = vunpack.i.l.bf16 %v1006_v20  ;;  %v209_v20 = vld [vmem:[%s1422_s1 + $0x10] sm:$0x1f] }
  0x99   :  { %v907_v32 = vpack.c.bf16 %v1008_v23, %v206_v29  ;;  %v177_v34 = vsel %vm176_vm15, %v171_v21, %v1007_v24  ;;  %v178_v35 = vsel %vm176_vm15, %v1007_v24, %v1008_v23 }
  0x9a   :  { %v900_v37 = vpack.c.bf16 %v177_v34, %v204_v30  ;;  %v1011_v1 = vpop.permute.xlu0 %1010  ;;  %v1016_v38 = vpop.permute.xlu1 %1015  ;;  %v897_v39 = vpack.c.bf16 %v178_v35, %v205_v36 }
  0x9b   :  { %v1013_v40 = vunpack.i.h.bf16 %v1011_v1  ;;  %v1012_v41 = vunpack.i.l.bf16 %v1011_v1  ;;  %v1018_v43 = vunpack.i.h.bf16 %v1016_v38  ;;  %v1017_v45 = vunpack.i.l.bf16 %v1016_v38  ;;  %909 = vmatpush3.bf16.msk.msra.mxu1 %vm1245_vm9, %v907_v32 }
  0x9c   :  { %899 = vmatprep.subr.msk.bf16.mxu0 %vm1245_vm9, %v897_v39  ;;  %920 = vmatprep.subr.bf16.mxu1 %v1059_v33 }
  0x9d   :  { %902 = vmatpush1.bf16.msk.msra.mxu0 %vm1245_vm9, %v900_v37  ;;  %v479_v14 = vsel %vm90_vm5, %v1013_v40, %v958_v46  ;;  %v480_v16 = vsel %vm90_vm5, %v958_v46, %v1012_v41  ;;  %v493_v50 = vsel %vm105_vm1, %v1018_v43, %v963_v47  ;;  %v494_v51 = vsel %vm105_vm1, %v963_v47, %v1017_v45 }
  0x9e   :  { %v1021_v52 = vpop.permute.xlu0 %1020  ;;  %v1026_v54 = vpop.permute.xlu1 %1025  ;;  %868 = vmatmul.mubr.msk.f32.vlgmr.msra.gmra.mrb[0].mxu1 %vm210_vm11, %v1265_v49  ;;  %v567_v42 = vsel %vm187_vm2, %v479_v14, %v493_v50  ;;  %v568_v63 = vsel %vm187_vm2, %v480_v16, %v494_v51  ;;  %v569_v59 = vsel %vm187_vm2, %v1012_v41, %v1017_v45  ;;  %vm1429_vm1 = vcmask 1046528  }
  0x9f   :  { %v1023_v27 = vunpack.i.h.bf16 %v1021_v52  ;;  %v1022_v55 = vunpack.i.l.bf16 %v1021_v52  ;;  %v1028_v3 = vunpack.i.h.bf16 %v1026_v54  ;;  %v1027_v56 = vunpack.i.l.bf16 %v1026_v54  ;;  %870 = vmatprep.mubr.msk.f32.mxu1 %vm1065_vm0, %v1063_v53  ;;  %vm1430_vm2 = vmmov %vm1429_vm1 }
  0xa0   :  { %827 = vmatmul.mubr.msk.f32.vlgmr.msra.gmra.mrb[0].mxu0 %vm210_vm11, %v1265_v49 }
  0xa1   :  { %v465_v61 = vsel %vm75_vm3, %v1023_v27, %v973_v48  ;;  %v466_v62 = vsel %vm75_vm3, %v973_v48, %v1022_v55  ;;  %v563_v0 = vsel %vm179_vm4, %v1150_v44, %v1022_v55  ;;  %296 = vmatprep.mubr.f32.mxu0 %v1063_v53  ;;  %v506_v4 = vsel %vm119_vm6, %v1028_v3, %v978_v57 }
  0xa2   :  { %v1031_v5 = vpop.permute.xlu0 %1030  ;;  %v1036_v6 = vpop.permute.xlu1 %1035  ;;  %871 = vmatmul.mubr.msk.f32.gmra.mrb[2].mxu1 %vm210_vm11, %v1288_v28  ;;  %v561_v44 = vsel %vm179_vm4, %v1095_v2, %v465_v61  ;;  %v507_v8 = vsel %vm119_vm6, %v978_v57, %v1027_v56  ;;  %v572_v11 = vsel %vm191_vm8, %v569_v59, %v1027_v56  ;;  %v566_v12 = vsel %vm183_vm7, %v563_v0, %v1012_v41 }
  0xa3   :  { %v1033_v9 = vunpack.i.h.bf16 %v1031_v5  ;;  %v1032_v10 = vunpack.i.l.bf16 %v1031_v5  ;;  %873 = vmatprep.mubr.msk.f32.mxu1 %vm1065_vm0, %v1063_v53  ;;  %v1037_v13 = vunpack.i.l.bf16 %v1036_v6  ;;  %v562_v15 = vsel %vm179_vm4, %v1106_v7, %v466_v62  ;;  %vm1432_vm4 = vmmov %vm1429_vm1 }
  0xa4   :  { %828 = vmatmul.mubr.msk.f32.gmra.mrb[2].mxu0 %vm210_vm11, %v1288_v28  ;;  %v1038_v19 = vunpack.i.h.bf16 %v1036_v6  ;;  %v570_v21 = vsel %vm191_vm8, %v567_v42, %v506_v4  ;;  %v571_v7 = vsel %vm191_vm8, %v568_v63, %v507_v8  ;;  %v564_v25 = vsel %vm183_vm7, %v561_v44, %v479_v14 }
  0xa5   :  { %v520_v2 = vsel %vm134_vm10, %v1033_v9, %v988_v58  ;;  %v521_v17 = vsel %vm134_vm10, %v988_v58, %v1032_v10  ;;  %v575_v18 = vsel %vm1429_vm1, %v572_v11, %v1032_v10  ;;  %302 = vmatprep.mubr.f32.mxu0 %v1063_v53  ;;  %v565_v30 = vsel %vm183_vm7, %v562_v15, %v480_v16 }
  0xa6   :  { %v921_v22 = vpack.c.bf16 %v575_v18, %v566_v12  ;;  %v1041_v23 = vpop.permute.xlu0 %1040  ;;  %v543_v24 = vpop.permute.xlu1 %542  ;;  %874 = vmatmul.mubr.msk.f32.gmra.mrb[4].mxu1 %vm210_vm11, %v209_v20  ;;  %v574_v32 = vsel %vm1430_vm2, %v571_v7, %v521_v17  ;;  %vm1431_vm3 = vcmask 752640   ;;  %v573_v36 = vsel %vm1432_vm4, %v570_v21, %v520_v2 }
  0xa7   :  { %v1043_v26 = vunpack.i.h.bf16 %v1041_v23  ;;  %v1042_v29 = vunpack.i.l.bf16 %v1041_v23  ;;  %884 = vmatprep.mubr.msk.f32.mxu1 %vm1065_vm0, %v1063_v53  ;;  %v535_v34 = vsel %vm1431_vm3, %v998_v60, %v1037_v13  ;;  %v910_v35 = vpack.c.bf16 %v574_v32, %v565_v30  ;;  %vm1433_vm5 = vmmov %vm1431_vm3 }
  0xa8   :  { %922 = vmatpush3.bf16.msra.mxu1 %v921_v22  ;;  %829 = vmatmul.mubr.msk.f32.gmra.mrb[4].mxu0 %vm210_vm11, %v209_v20  ;;  %v534_v37 = vsel %vm1433_vm5, %v1038_v19, %v998_v60  ;;  %v912_v38 = vpack.c.bf16 %v573_v36, %v564_v25  ;;  %v577_v43 = vsel %vm199_vm13, %v521_v17, %v535_v34  ;;  %v12_v55 = vand.u32 127, %v11_v31 }
  0xa9   :  { %v549_v1 = vsel %vm164_vm12, %v1042_v29, %v1043_v26  ;;  %923 = vmatprep.subr.bf16.mxu1 %v1059_v33  ;;  %v548_v39 = vsel %vm164_vm12, %v543_v24, %v1042_v29  ;;  %911 = vmatprep.subr.bf16.mxu0 %v910_v35  ;;  %v578_v45 = vsel %vm199_vm13, %v1032_v10, %v1037_v13 }
  0xaa   :  { %v1046_v40 = vpop.permute.xlu0 %1045  ;;  %v554_v41 = vpop.permute.xlu1 %553  ;;  %652 = vmatprep.mubr.f32.mxu0 %v1063_v53  ;;  %913 = vmatpush1.bf16.msra.mxu0 %v912_v38  ;;  %v580_v48 = vsel %vm1426_vm14, %v577_v43, %v549_v1  ;;  %v581_v14 = vsel %vm1426_vm14, %v578_v45, %v1043_v26  ;;  %v576_v33 = vsel %vm199_vm13, %v520_v2, %v534_v37  ;;  %v13_v3 = vadd.s32 128, %v12_v55 }
  0xab   :  { %v1048_v46 = vunpack.i.h.bf16 %v1046_v40  ;;  %v1047_v47 = vunpack.i.l.bf16 %v1046_v40  ;;  %v579_v52 = vsel %vm1426_vm14, %v576_v33, %v548_v39  ;;  %v15_v57 = vcvt.s32.f32 %v12_v55 }
  0xac   :  { %v16_v58 = vcvt.s32.f32 %v13_v3 }
  0xad   :  { %v560_v16 = vsel %vm176_vm15, %v1047_v47, %v1048_v46  ;;  %v924_v50 = vpack.c.bf16 %v1048_v46, %v581_v14  ;;  %v559_v51 = vsel %vm176_vm15, %v554_v41, %v1047_v47  ;;  %v18_v61 = vadd.f32 0.5, %v15_v57 }
  0xae   :  { %v914_v54 = vpack.c.bf16 %v560_v16, %v580_v48  ;;  %v917_v27 = vpack.c.bf16 %v559_v51, %v579_v52  ;;  %v19_v62 = vadd.f32 0.5, %v16_v58 }
  0xaf   :  { %926 = vmatpush3.bf16.msk.msra.mxu1 %vm1245_vm9, %v924_v50  ;;  %v21_v42 = vmul.f32 0.055555556, %v18_v61 }
  0xb0   :  { %916 = vmatprep.subr.msk.bf16.mxu0 %vm1245_vm9, %v914_v54  ;;  %v22_v63 = vmul.f32 0.055555556, %v19_v62 }
  0xb1   :  { %919 = vmatpush1.bf16.msk.msra.mxu0 %vm1245_vm9, %v917_v27  ;;  %v24_v59 = vfloor.f32 %v21_v42 }
  0xb2   :  { %885 = vmatmul.mubr.msk.f32.vlgmr.msra.gmra.mrb[6].mxu1 %vm210_vm11, %v1265_v49  ;;  %v25_v4 = vfloor.f32 %v22_v63 }
  0xb3   :  { %887 = vmatprep.mubr.msk.f32.mxu1 %vm1065_vm0, %v1063_v53  ;;  %v27_v6 = vmul.f32 18.0, %v24_v59  ;;  %vm33_vm7 = vcmp.ge.f32.partialorder %v24_v59, 1.0  ;;  %vm36_vm8 = vcmp.le.f32.partialorder %v24_v59, 16.0 }
  0xb4   :  { %838 = vmatmul.mubr.msk.f32.vlgmr.msra.gmra.mrb[6].mxu0 %vm210_vm11, %v1265_v49  ;;  %v14_v49 = vadd.s32 256, %v12_v55  ;;  %v28_v44 = vmul.f32 18.0, %v25_v4  ;;  %vm34_vm9 = vcmp.ge.f32.partialorder %v25_v4, 1.0  ;;  %vm37_vm10 = vcmp.le.f32.partialorder %v25_v4, 16.0  ;;  %vm39_vm15 = vmand %vm33_vm7, %vm36_vm8 }
  0xb5   :  { %658 = vmatprep.mubr.f32.mxu0 %v1063_v53  ;;  %v30_v9 = vsub.f32 %v15_v57, %v27_v6  ;;  %vm40_vm1 = vmand %vm34_vm9, %vm37_vm10  ;;  %vm399_vm10 = vcmask 556032  }
  0xb6   :  { %888 = vmatmul.mubr.msk.f32.gmra.mrb[8].mxu1 %vm210_vm11, %v1288_v28  ;;  %v17_v56 = vcvt.s32.f32 %v14_v49  ;;  %v31_v10 = vsub.f32 %v16_v58, %v28_v44 }
  0xb7   :  { %890 = vmatprep.mubr.msk.f32.mxu1 %vm1065_vm0, %v1063_v53  ;;  %vm48_vm14 = vcmp.le.f32.partialorder %v30_v9, 16.0 }
  0xb8   :  { %839 = vmatmul.mubr.msk.f32.gmra.mrb[8].mxu0 %vm210_vm11, %v1288_v28  ;;  %v20_v60 = vadd.f32 0.5, %v17_v56  ;;  %vm43_vm2 = vcmp.ge.f32.partialorder %v31_v10, 1.0 }
  0xb9   :  { %664 = vmatprep.mubr.f32.mxu0 %v1063_v53 }
  0xba   :  { %891 = vmatmul.mubr.msk.f32.gmra.mrb[10].mxu1 %vm210_vm11, %v209_v20  ;;  %v23_v0 = vmul.f32 0.055555556, %v20_v60 }
  0xbc   :  { %840 = vmatmul.mubr.msk.f32.gmra.mrb[10].mxu0 %vm210_vm11, %v209_v20  ;;  %v26_v28 = vfloor.f32 %v23_v0  ;;  %vm42_vm11 = vcmp.ge.f32.partialorder %v30_v9, 1.0 }
  0xbd   :  { %vm45_vm5 = vmand %vm39_vm15, %vm42_vm11 }
  0xbe   :  { %v29_v5 = vmul.f32 18.0, %v26_v28  ;;  %vm35_vm0 = vcmp.ge.f32.partialorder %v26_v28, 1.0  ;;  %vm38_vm6 = vcmp.le.f32.partialorder %v26_v28, 16.0  ;;  %vm51_vm8 = vmand %vm45_vm5, %vm48_vm14  ;;  %vm412_vm14 = vcmask 552960  }
  0xbf   :  { %vm41_vm12 = vmand %vm35_vm0, %vm38_vm6  ;;  %vm49_vm6 = vcmp.le.f32.partialorder %v31_v10, 16.0  ;;  %v1364_v12 = vsel %vm51_vm8, 1.0, %v1063_v53  ;;  %vm809_vm5 = vcmask 7168  }
  0xc0   :  { %v32_v8 = vsub.f32 %v17_v56, %v29_v5  ;;  %vm46_vm0 = vmand %vm40_vm1, %vm43_vm2 }
  0xc1   :  { %vm52_vm9 = vmand %vm46_vm0, %vm49_vm6  ;;  %vm813_vm0 = vcmask 15360   ;;  %vm816_vm6 = vcmask 12288  }
  0xc2   :  { %vm44_vm13 = vcmp.ge.f32.partialorder %v32_v8, 1.0  ;;  %vm50_vm4 = vcmp.le.f32.partialorder %v32_v8, 16.0  ;;  %v1367_v15 = vsel %vm52_vm9, 1.0, %v1063_v53 }
  0xc3   :  { %vm47_vm3 = vmand %vm41_vm12, %vm44_vm13  ;;  %vm1434_vm12 = vcmask 1044480  }
  0xc4   :  { %vm53_vm7 = vmand %vm47_vm3, %vm50_vm4 }
  0xc5   :  { %v1361_v11 = vsel %vm53_vm7, 1.0, %v1063_v53  ;;  %vm1435_vm13 = vmmov %vm1434_vm12 }
  0xc6   :  { %vm1436_vm15 = vmmov %vm1434_vm12 }
  0xc7   :  { %vm1437_vm11 = vmmov %vm1434_vm12 }
  0xc8   :  { %vm1438_vm1 = vmmov %vm1437_vm11 }
  0xc9   :  { %vm1439_vm2 = vmmov %vm1438_vm1 }
  0xca   :  { %vm1440_vm3 = vmmov %vm1438_vm1 }
  0xcb   :  { %vm1441_vm4 = vmmov %vm1438_vm1 }
 0x171   :  { %v375_v13 = vpop.f32.mrb[0].mxu1 }
 0x172   :  { %v391_v2 = vmul.f32 %v1361_v11, %v375_v13  ;;  %v869_v17 = vpop.f32.mrb[1].mxu1 }
 0x173   :  { %v292_v18 = vpop.f32.mrb[0].mxu0 }
 0x174   :  { %v389_v19 = vmul.f32 %v1364_v12, %v292_v18  ;;  %v294_v20 = vpop.f32.mrb[1].mxu0  ;;  %v422_v21 = vmul.f32 %v391_v2, %v375_v13  ;;  %v400_v25 = vsel %vm399_vm10, %v391_v2, 0.0 }
 0x175   :  { %v390_v22 = vmul.f32 %v1367_v15, %v294_v20  ;;  %v380_v23 = vpop.f32.mrb[2].mxu1 }
 0x176   :  { %v420_v24 = vmul.f32 %v389_v19, %v292_v18  ;;  %v394_v7 = vmul.f32 %v1361_v11, %v380_v23  ;;  %v872_v26 = vpop.f32.mrb[3].mxu1  ;;  %v430_v36 = vsel %vm399_vm10, %v422_v21, 0.0 }
 0x177   :  { %v421_v53 = vmul.f32 %v390_v22, %v294_v20  ;;  %v298_v29 = vpop.f32.mrb[2].mxu0  ;;  %v398_v30 = vadd.f32 %v390_v22, %v389_v19 }
 0x178   :  { %v392_v32 = vmul.f32 %v1364_v12, %v298_v29  ;;  %v300_v34 = vpop.f32.mrb[3].mxu0  ;;  %v425_v35 = vmul.f32 %v394_v7, %v380_v23  ;;  %v405_v41 = vsel %vm399_vm10, %v394_v7, 0.0 }
 0x179   :  { %v393_v37 = vmul.f32 %v1367_v15, %v300_v34  ;;  %v401_v1 = vadd.f32 %v400_v25, %v398_v30  ;;  %v385_v38 = vpop.f32.mrb[4].mxu1  ;;  %v429_v39 = vadd.f32 %v421_v53, %v420_v24 }
 0x17a   :  { %v423_v40 = vmul.f32 %v392_v32, %v298_v29  ;;  %v875_v43 = vpop.f32.mrb[5].mxu1  ;;  %v397_v47 = vmul.f32 %v1361_v11, %v385_v38  ;;  %v435_v50 = vsel %vm399_vm10, %v425_v35, 0.0 }
 0x17b   :  { %v424_v45 = vmul.f32 %v393_v37, %v300_v34  ;;  %v304_v46 = vpop.f32.mrb[4].mxu0  ;;  %402 = vadd.xlane.f32.xlu0 %v401_v1  ;;  %v431_v48 = vadd.f32 %v430_v36, %v429_v39  ;;  %v404_v14 = vadd.f32 %v393_v37, %v392_v32 }
 0x17c   :  { %v395_v33 = vmul.f32 %v1364_v12, %v304_v46  ;;  %v306_v16 = vpop.f32.mrb[5].mxu0  ;;  %v428_v52 = vmul.f32 %v397_v47, %v385_v38  ;;  %v413_v57 = vsel %vm412_vm14, %v397_v47, 0.0 }
 0x17d   :  { %v396_v51 = vmul.f32 %v1367_v15, %v306_v16  ;;  %v406_v54 = vadd.f32 %v405_v41, %v404_v14  ;;  %v434_v27 = vadd.f32 %v424_v45, %v423_v40 }
 0x17e   :  { %v409_v31 = vsel %vm1434_vm12, %v395_v33, 0.0  ;;  %v426_v55 = vmul.f32 %v395_v33, %v304_v46  ;;  %v442_v62 = vsel %vm412_vm14, %v428_v52, 0.0 }
 0x17f   :  { %v410_v49 = vsel %vm1435_vm13, %v396_v51, 0.0  ;;  %v427_v3 = vmul.f32 %v396_v51, %v306_v16  ;;  %432 = vadd.xlane.f32.xlu0 %v431_v48  ;;  %407 = vadd.xlane.f32.xlu1 %v406_v54  ;;  %v436_v56 = vadd.f32 %v435_v50, %v434_v27 }
 0x180   :  { %v439_v58 = vsel %vm1436_vm15, %v426_v55, 0.0  ;;  %v411_v60 = vadd.f32 %v410_v49, %v409_v31 }
 0x181   :  { %v440_v61 = vsel %vm1437_vm11, %v427_v3, 0.0 }
 0x182   :  { %v414_v0 = vadd.f32 %v413_v57, %v411_v60  ;;  %v441_v42 = vadd.f32 %v440_v61, %v439_v58 }
 0x183   :  { %437 = vadd.xlane.f32.xlu1 %v436_v56 }
 0x184   :  { %415 = vadd.xlane.f32.xlu0 %v414_v0  ;;  %v443_v63 = vadd.f32 %v442_v62, %v441_v42 }
 0x185   :  { %v737_v28 = vpop.f32.mrb[6].mxu1 }
 0x186   :  { %v753_v59 = vmul.f32 %v1361_v11, %v737_v28  ;;  %v886_v4 = vpop.f32.mrb[7].mxu1 }
 0x187   :  { %v654_v5 = vpop.f32.mrb[6].mxu0 }
 0x188   :  { %v751_v6 = vmul.f32 %v1364_v12, %v654_v5  ;;  %v656_v44 = vpop.f32.mrb[7].mxu0  ;;  %v782_v8 = vmul.f32 %v753_v59, %v737_v28  ;;  %444 = vadd.xlane.f32.xlu0 %v443_v63  ;;  %v761_v17 = vsel %vm399_vm10, %v753_v59, 0.0 }
 0x189   :  { %v752_v9 = vmul.f32 %v1367_v15, %v656_v44  ;;  %v742_v10 = vpop.f32.mrb[8].mxu1 }
 0x18a   :  { %v780_v13 = vmul.f32 %v751_v6, %v654_v5  ;;  %v756_v2 = vmul.f32 %v1361_v11, %v742_v10  ;;  %v889_v18 = vpop.f32.mrb[9].mxu1  ;;  %v790_v7 = vsel %vm399_vm10, %v782_v8, 0.0 }
 0x18b   :  { %v781_v19 = vmul.f32 %v752_v9, %v656_v44  ;;  %v660_v20 = vpop.f32.mrb[8].mxu0  ;;  %v760_v21 = vadd.f32 %v752_v9, %v751_v6 }
 0x18c   :  { %v754_v22 = vmul.f32 %v1364_v12, %v660_v20  ;;  %v662_v23 = vpop.f32.mrb[9].mxu0  ;;  %v785_v24 = vmul.f32 %v756_v2, %v742_v10  ;;  %v766_v35 = vsel %vm399_vm10, %v756_v2, 0.0 }
 0x18d   :  { %v755_v25 = vmul.f32 %v1367_v15, %v662_v23  ;;  %v762_v26 = vadd.f32 %v761_v17, %v760_v21  ;;  %v789_v53 = vadd.f32 %v781_v19, %v780_v13  ;;  %v747_v29 = vpop.f32.mrb[10].mxu1 }
 0x18e   :  { %v783_v30 = vmul.f32 %v754_v22, %v660_v20  ;;  %v759_v32 = vmul.f32 %v1361_v11, %v747_v29  ;;  %v892_v34 = vpop.f32.mrb[11].mxu1  ;;  %v795_v41 = vsel %vm399_vm10, %v785_v24, 0.0 }
 0x18f   :  { %v784_v36 = vmul.f32 %v755_v25, %v662_v23  ;;  %763 = vadd.xlane.f32.xlu1 %v762_v26  ;;  %v666_v37 = vpop.f32.mrb[10].mxu0  ;;  %v791_v1 = vadd.f32 %v790_v7, %v789_v53  ;;  %v765_v38 = vadd.f32 %v755_v25, %v754_v22 }
 0x190   :  { %v757_v39 = vmul.f32 %v1364_v12, %v666_v37  ;;  %v668_v40 = vpop.f32.mrb[11].mxu0  ;;  %v788_v48 = vmul.f32 %v759_v32, %v747_v29  ;;  %v773_v16 = vsel %vm412_vm14, %v759_v32, 0.0 }
 0x191   :  { %v758_v43 = vmul.f32 %v1367_v15, %v668_v40  ;;  %792 = vadd.xlane.f32.xlu0 %v791_v1  ;;  %v767_v45 = vadd.f32 %v766_v35, %v765_v38  ;;  %v794_v46 = vadd.f32 %v784_v36, %v783_v30 }
 0x192   :  { %v770_v11 = vsel %vm1438_vm1, %v757_v39, 0.0  ;;  %v786_v47 = vmul.f32 %v757_v39, %v666_v37  ;;  %v802_v27 = vsel %vm412_vm14, %v788_v48, 0.0 }
 0x193   :  { %v771_v14 = vsel %vm1439_vm2, %v758_v43, 0.0  ;;  %v787_v33 = vmul.f32 %v758_v43, %v668_v40  ;;  %v796_v50 = vadd.f32 %v795_v41, %v794_v46 }
 0x194   :  { %v799_v12 = vsel %vm1440_vm3, %v786_v47, 0.0  ;;  %v772_v51 = vadd.f32 %v771_v14, %v770_v11 }
 0x195   :  { %v800_v52 = vsel %vm1441_vm4, %v787_v33, 0.0  ;;  %768 = vadd.xlane.f32.xlu0 %v767_v45 }
 0x196   :  { %v774_v15 = vadd.f32 %v773_v16, %v772_v51  ;;  %v801_v54 = vadd.f32 %v800_v52, %v799_v12 }
 0x198   :  { %775 = vadd.xlane.f32.xlu1 %v774_v15  ;;  %v803_v31 = vadd.f32 %v802_v27, %v801_v54 }
 0x19a   :  { %804 = vadd.xlane.f32.xlu0 %v803_v31 }
 0x19c   :  { %797 = vadd.xlane.f32.xlu1 %v796_v50 }
 0x208   :  { %v403_v55 = vpop.xlane.xlu0 %402 }
 0x20c   :  { %v433_v49 = vpop.xlane.xlu0 %432  ;;  %v408_v3 = vpop.xlane.xlu1 %407 }
 0x210   :  { %v438_v57 = vpop.xlane.xlu1 %437 }
 0x211   :  { %v416_v56 = vpop.xlane.xlu0 %415 }
 0x215   :  { %v445_v58 = vpop.xlane.xlu0 %444 }
 0x21c   :  { %v764_v60 = vpop.xlane.xlu1 %763 }
 0x21d   :  { %v777_v62 = vadd.f32 %v764_v60, %v403_v55 }
 0x21e   :  { %v793_v61 = vpop.xlane.xlu0 %792 }
 0x21f   :  { %v806_v0 = vadd.f32 %v793_v61, %v433_v49 }
 0x221   :  { %v810_v42 = vsel %vm809_vm5, %v777_v62, %v806_v0 }
 0x222   :  { %814 = vst.msk [vmem:[%s1423_s2] sm:$0xff] %vm813_vm0, %v810_v42  ;;  %v769_v63 = vpop.xlane.xlu0 %768 }
 0x223   :  { %v778_v44 = vadd.f32 %v769_v63, %v408_v3 }
 0x225   :  { %v776_v28 = vpop.xlane.xlu1 %775 }
 0x226   :  { %v779_v4 = vadd.f32 %v776_v28, %v416_v56 }
 0x227   :  { %v805_v59 = vpop.xlane.xlu0 %804 }
 0x228   :  { %v808_v5 = vadd.f32 %v805_v59, %v445_v58 }
 0x229   :  { %v798_v6 = vpop.xlane.xlu1 %797 }
 0x22a   :  { %v812_v8 = vsel %vm809_vm5, %v779_v4, %v808_v5  ;;  %v807_v9 = vadd.f32 %v798_v6, %v438_v57 }
 0x22b   :  { %817 = vst.msk [vmem:[%s1423_s2 + $0x10] sm:$0x1f] %vm816_vm6, %v812_v8 }
 0x22c   :  { %v811_v10 = vsel %vm809_vm5, %v778_v44, %v807_v9 }
 0x22d   :  { %815 = vst.msk [vmem:[%s1423_s2 + $0x8] sm:$0xff] %vm813_vm0, %v811_v10 }

// kernel: block_forward.5
= control target key start
LH: loop header
LB: loop body
LE: loop exit
PB: predicated region body
PF: predicated region fallthrough
CT: control target
= control target key end

     0   :  { %s1529_s28 = smov 126   ;;  %s1530_s29 = smov 127   ;;  %v1533_v17 = vmov 0.0|0.0   ;;  %vm1537_vm0 = vmmov 0   ;;  %v1538_v31 = vmov 0.0   ;;  %v1540_v33 = vmov 0   ;;  %s2079_s0 = inlined_call_operand.vmem [shape: f32[2,3,362], index: 0, kind: input, shape index: {}]   ;;  %s2080_s2 = inlined_call_operand.vmem [shape: f32[21,1], index: 2, kind: input, shape index: {}]   ;;  %s2081_s3 = inlined_call_operand.vmem [shape: f32[21,1], index: 3, kind: input, shape index: {}]   ;;  %s2082_s5 = inlined_call_operand.vmem [shape: f32[3,1], index: 5, kind: input, shape index: {}]   ;;  %s2083_s6 = inlined_call_operand.vmem [shape: f32[3,1], index: 6, kind: input, shape index: {}]   ;;  %s2084_s1 = inlined_call_operand.vmem [shape: f32[21,27], index: 1, kind: input, shape index: {}]   ;;  %s2085_s4 = inlined_call_operand.vmem [shape: f32[3,21], index: 4, kind: input, shape index: {}]   ;;  %s2086_s7 = inlined_call_operand.vmem [shape: f32[2,3,324], index: 7, kind: output, shape index: {}]  }
   0x1   :  { %v1586_v0 = vld [vmem:[%s2079_s0] sm:$0x77]  ;;  %v1591_v1 = vld [vmem:[%s2079_s0 + $0x8] sm:$0x7]  ;;  %s1531_s30 = smov 110   ;;  %s1532_s8 = smov 109   ;;  %1375 = vmatprep.subr.bf16.mxu1 %v1533_v17  ;;  %1321 = vmatprep.mubr.msk.f32.mxu1 %vm1537_vm0, %v1538_v31 }
   0x2   :  { %v47_v2 = vrot.slane %v1586_v0, 2  ;;  %v1596_v3 = vcombine.high %v1586_v0, %v1586_v0  ;;  %v49_v4 = vrot.slane %v1591_v1, 2  ;;  %v34_v5 = vrot.slane %v1591_v1, 5  ;;  %s1534_s9 = smov 108   ;;  %s1535_s10 = smov 92   ;;  %256 = vmatprep.mubr.f32.mxu0 %v1538_v31  ;;  %1468 = vset.pattern.permute.xlu1 %v1540_v33  ;;  %v356_v34 = vld [vmem:[%s2080_s2 + $0x8] sm:$0xff] }
   0x3   :  { %v64_v6 = vrot.slane %v1591_v1, 7  ;;  %v78_v10 = vcombine.low %v1591_v1, %v1591_v1  ;;  %v62_v15 = vrot.slane %v1586_v0, 7  ;;  %v77_v16 = vcombine.low %v1586_v0, %v1586_v0  ;;  %s1536_s11 = smov 91   ;;  %s1539_s12 = smov 90   ;;  %1467 = vset.pattern.permute.xlu0 %v1540_v33  ;;  %v1649_v35 = vld [vmem:[%s2079_s0 + $0xc] sm:$0x77] }
   0x4   :  { %50 = vrot.lane.b32.xlu1 %v47_v2, %s1529_s28  ;;  %v48_v7 = vrot.slane %v1596_v3, 2  ;;  %v33_v8 = vrot.slane %v1596_v3, 5  ;;  %v63_v9 = vrot.slane %v1596_v3, 7  ;;  %v32_v18 = vrot.slane %v1586_v0, 5  ;;  %v355_v36 = vld [vmem:[%s2080_s2] sm:$0xff]  ;;  %v383_v39 = vld [vmem:[%s2081_s3 + $0x8] sm:$0xff] }
   0x5   :  { %v1442_v14 = vpack.i.bf16 %v78_v10, %v1586_v0  ;;  %v92_v19 = vrot.slane %v1596_v3, 1  ;;  %v93_v20 = vrot.slane %v1591_v1, 1  ;;  %v91_v21 = vrot.slane %v1586_v0, 1  ;;  %v382_v37 = vld [vmem:[%s2081_s3] sm:$0xff]  ;;  %v357_v40 = vld [vmem:[%s2080_s2 + $0x10] sm:$0x1f] }
   0x6   :  { %v1427_v11 = vpack.i.bf16 %v49_v4, %v48_v7  ;;  %v1437_v12 = vpack.i.bf16 %v34_v5, %v33_v8  ;;  %v1432_v13 = vpack.i.bf16 %v64_v6, %v63_v9  ;;  %v107_v23 = vrot.slane %v1596_v3, 6  ;;  %v1670_v41 = vld [vmem:[%s2079_s0 + $0x14] sm:$0x7] }
   0x7   :  { %v1447_v22 = vpack.i.bf16 %v93_v20, %v92_v19  ;;  %v108_v24 = vrot.slane %v1591_v1, 6  ;;  %v106_v25 = vrot.slane %v1586_v0, 6  ;;  %v122_v27 = vrot.slane %v1596_v3, 3  ;;  %v384_v49 = vld [vmem:[%s2081_s3 + $0x10] sm:$0x1f] }
   0x8   :  { %1428 = vrot.lane.b32.xlu0 %v1427_v11, %s1529_s28  ;;  %1438 = vrot.lane.b32.xlu1 %v1437_v12, %s1530_s29  ;;  %v123_v28 = vrot.slane %v1591_v1, 3  ;;  %v121_v29 = vrot.slane %v1586_v0, 3  ;;  %v1462_v32 = vpack.i.bf16 %v1591_v1, %v1596_v3  ;;  %v1659_v38 = vcombine.high %v1649_v35, %v1649_v35  ;;  %v962_v10 = vld [vmem:[%s2080_s2 + $0x10] sm:$0x1f]  ;;  %v573_v12 = vld [vmem:[%s2082_s5] sm:$0x7] }
   0x9   :  { %v1452_v26 = vpack.i.bf16 %v108_v24, %v107_v23  ;;  %v669_v43 = vrot.slane %v1670_v41, 2  ;;  %v683_v46 = vrot.slane %v1670_v41, 7  ;;  %v655_v48 = vrot.slane %v1670_v41, 5  ;;  %v989_v11 = vld [vmem:[%s2081_s3 + $0x10] sm:$0x1f] }
   0xa   :  { %v1457_v30 = vpack.i.bf16 %v123_v28, %v122_v27  ;;  %v668_v42 = vrot.slane %v1659_v38, 2  ;;  %v682_v44 = vrot.slane %v1659_v38, 7  ;;  %v654_v47 = vrot.slane %v1659_v38, 5 }
   0xb   :  { %v667_v52 = vrot.slane %v1649_v35, 2  ;;  %v681_v53 = vrot.slane %v1649_v35, 7  ;;  %v696_v54 = vcombine.low %v1670_v41, %v1670_v41  ;;  %v653_v56 = vrot.slane %v1649_v35, 5 }
   0xc   :  { %1433 = vrot.lane.b32.xlu0 %v1432_v13, %s1531_s30  ;;  %1443 = vrot.lane.b32.xlu1 %v1442_v14, %s1532_s8  ;;  %v1469_v45 = vpack.i.bf16 %v669_v43, %v668_v42  ;;  %v1474_v50 = vpack.i.bf16 %v683_v46, %v682_v44  ;;  %v1479_v51 = vpack.i.bf16 %v655_v48, %v654_v47  ;;  %v709_v57 = vrot.slane %v1659_v38, 1  ;;  %v1177_v13 = vld [vmem:[%s2082_s5] sm:$0x7] }
   0xd   :  { %v1484_v55 = vpack.i.bf16 %v696_v54, %v1649_v35  ;;  %v710_v58 = vrot.slane %v1670_v41, 1  ;;  %v695_v59 = vcombine.low %v1649_v35, %v1649_v35  ;;  %v723_v61 = vrot.slane %v1659_v38, 6  ;;  %v582_v14 = vld [vmem:[%s2083_s6] sm:$0x7] }
   0xe   :  { %v724_v62 = vrot.slane %v1670_v41, 6  ;;  %v708_v63 = vrot.slane %v1649_v35, 1  ;;  %v737_v4 = vrot.slane %v1659_v38, 3  ;;  %v738_v5 = vrot.slane %v1670_v41, 3 }
   0xf   :  { %v1489_v60 = vpack.i.bf16 %v710_v58, %v709_v57  ;;  %v722_v6 = vrot.slane %v1649_v35, 6  ;;  %v736_v8 = vrot.slane %v1649_v35, 3  ;;  %v1504_v9 = vpack.i.bf16 %v1670_v41, %v1659_v38 }
  0x10   :  { %65 = vrot.lane.b32.xlu0 %v62_v15, %s1531_s30  ;;  %79 = vrot.lane.b32.xlu1 %v77_v16, %s1532_s8  ;;  %v1494_v2 = vpack.i.bf16 %v724_v62, %v723_v61  ;;  %v1499_v7 = vpack.i.bf16 %v738_v5, %v737_v4  ;;  %v1186_v15 = vld [vmem:[%s2083_s6] sm:$0x7]  ;;  %vm71_vm1 = vcmask 900096   ;;  %vm41_vm2 = vcmask 1039360  }
  0x11   :  { %vm56_vm3 = vcmask 1031168   ;;  %vm145_vm4 = vcmask 1042432   ;;  %vm153_vm5 = vcmask 1040384   ;;  %vm85_vm6 = vcmask 891904  }
  0x12   :  { %vm157_vm7 = vcmask 1043456   ;;  %vm149_vm8 = vcmask 1045504   ;;  %vm100_vm9 = vcmask 883712   ;;  %vm2088_vm10 = vcmask 1046528  }
  0x13   :  { %vm2087_vm11 = vcmask 752640   ;;  %vm130_vm12 = vcmask 744448   ;;  %vm165_vm13 = vcmask 1041408   ;;  %vm169_vm14 = vcmask 1044480  }
  0x14   :  { %35 = vrot.lane.b32.xlu0 %v32_v18, %s1530_s29  ;;  %94 = vrot.lane.b32.xlu1 %v91_v21, %s1534_s9  ;;  %vm142_vm15 = vcmask 736256  }
  0x18   :  { %1448 = vrot.lane.b32.xlu0 %v1447_v22, %s1534_s9  ;;  %109 = vrot.lane.b32.xlu1 %v106_v25, %s1535_s10 }
  0x1c   :  { %1453 = vrot.lane.b32.xlu0 %v1452_v26, %s1535_s10  ;;  %124 = vrot.lane.b32.xlu1 %v121_v29, %s1536_s11 }
  0x20   :  { %1458 = vrot.lane.b32.xlu0 %v1457_v30, %s1536_s11  ;;  %136 = vrot.lane.b32.xlu1 %v1586_v0, %s1539_s12 }
  0x24   :  { %1463 = vrot.lane.b32.xlu0 %v1462_v32, %s1539_s12  ;;  %365 = vperm.xlu1 %1468, %v356_v34  }
  0x28   :  { %360 = vperm.xlu0 %1467, %v355_v36   ;;  %387 = vperm.xlu1 %1468, %v382_v37  }
  0x2c   :  { %392 = vperm.xlu0 %1467, %v383_v39   ;;  %370 = vperm.xlu1 %1468, %v357_v40  }
  0x30   :  { %397 = vperm.xlu0 %1467, %v384_v49   ;;  %1470 = vrot.lane.b32.xlu1 %v1469_v45, %s1529_s28 }
  0x34   :  { %1475 = vrot.lane.b32.xlu0 %v1474_v50, %s1531_s30  ;;  %1480 = vrot.lane.b32.xlu1 %v1479_v51, %s1530_s29 }
  0x38   :  { %670 = vrot.lane.b32.xlu0 %v667_v52, %s1529_s28  ;;  %684 = vrot.lane.b32.xlu1 %v681_v53, %s1531_s30 }
  0x3c   :  { %1485 = vrot.lane.b32.xlu0 %v1484_v55, %s1532_s8  ;;  %656 = vrot.lane.b32.xlu1 %v653_v56, %s1530_s29 }
  0x40   :  { %697 = vrot.lane.b32.xlu0 %v695_v59, %s1532_s8  ;;  %1490 = vrot.lane.b32.xlu1 %v1489_v60, %s1534_s9 }
  0x44   :  { %711 = vrot.lane.b32.xlu0 %v708_v63, %s1534_s9  ;;  %1495 = vrot.lane.b32.xlu1 %v1494_v2, %s1535_s10 }
  0x48   :  { %725 = vrot.lane.b32.xlu0 %v722_v6, %s1535_s10  ;;  %1500 = vrot.lane.b32.xlu1 %v1499_v7, %s1536_s11 }
  0x4c   :  { %739 = vrot.lane.b32.xlu0 %v736_v8, %s1536_s11  ;;  %1505 = vrot.lane.b32.xlu1 %v1504_v9, %s1539_s12 }
  0x50   :  { %750 = vrot.lane.b32.xlu0 %v1649_v35, %s1539_s12  ;;  %965 = vperm.xlu1 %1468, %v355_v36  }
  0x54   :  { %970 = vperm.xlu0 %1467, %v356_v34   ;;  %992 = vperm.xlu1 %1468, %v382_v37  }
  0x58   :  { %997 = vperm.xlu0 %1467, %v383_v39   ;;  %975 = vperm.xlu1 %1468, %v962_v10  }
  0x5c   :  { %1002 = vperm.xlu0 %1467, %v989_v11   ;;  %576 = vperm.xlu1 %1468, %v573_v12  }
  0x60   :  { %1180 = vperm.xlu0 %1467, %v1177_v13   ;;  %585 = vperm.xlu1 %1468, %v582_v14  }
  0x64   :  { %1189 = vperm.xlu0 %1467, %v1186_v15  }
  0x76   :  { %v51_v16 = vpop.permute.xlu1 %50 }
  0x7a   :  { %v1429_v18 = vpop.permute.xlu0 %1428  ;;  %v1439_v19 = vpop.permute.xlu1 %1438 }
  0x7b   :  { %v1441_v22 = vunpack.i.h.bf16 %v1439_v19  ;;  %v1440_v23 = vunpack.i.l.bf16 %v1439_v19  ;;  %v1431_v28 = vunpack.i.h.bf16 %v1429_v18  ;;  %v1430_v29 = vunpack.i.l.bf16 %v1429_v18 }
  0x7d   :  { %v43_v36 = vsel %vm41_vm2, %v1440_v23, %v1441_v22  ;;  %v57_v40 = vsel %vm56_vm3, %v51_v16, %v1430_v29  ;;  %v148_v43 = vsel %vm145_vm4, %v1591_v1, %v1441_v22  ;;  %v58_v44 = vsel %vm56_vm3, %v1430_v29, %v1431_v28 }
  0x7e   :  { %v1434_v20 = vpop.permute.xlu0 %1433  ;;  %v1444_v21 = vpop.permute.xlu1 %1443  ;;  %v147_v47 = vsel %vm145_vm4, %v1596_v3, %v43_v36  ;;  %v152_v55 = vsel %vm149_vm8, %v148_v43, %v1431_v28  ;;  %v1786_v36 = vld [vmem:[%s2084_s1] sm:$0xff] }
  0x7f   :  { %v1436_v24 = vunpack.i.h.bf16 %v1434_v20  ;;  %v1435_v25 = vunpack.i.l.bf16 %v1434_v20  ;;  %v1446_v30 = vunpack.i.h.bf16 %v1444_v21  ;;  %v1445_v32 = vunpack.i.l.bf16 %v1444_v21 }
  0x80   :  { %v151_v3 = vsel %vm149_vm8, %v147_v47, %v58_v44 }
  0x81   :  { %v73_v37 = vsel %vm71_vm1, %v1435_v25, %v1436_v24  ;;  %v156_v45 = vsel %vm153_vm5, %v1431_v28, %v1436_v24  ;;  %v87_v46 = vsel %vm85_vm6, %v1445_v32, %v1446_v30 }
  0x82   :  { %v66_v26 = vpop.permute.xlu0 %65  ;;  %v80_v27 = vpop.permute.xlu1 %79  ;;  %v155_v48 = vsel %vm153_vm5, %v58_v44, %v73_v37  ;;  %v160_v56 = vsel %vm157_vm7, %v156_v45, %v1446_v30  ;;  %v1800_v37 = vld [vmem:[%s2084_s1 + $0x8] sm:$0xff] }
  0x83   :  { %v72_v39 = vsel %vm71_vm1, %v66_v26, %v1435_v25  ;;  %v86_v50 = vsel %vm85_vm6, %v80_v27, %v1445_v32  ;;  %v159_v57 = vsel %vm157_vm7, %v155_v48, %v87_v46 }
  0x84   :  { %v154_v49 = vsel %vm153_vm5, %v57_v40, %v72_v39  ;;  %v175_v39 = vld [vmem:[%s2084_s1 + $0x10] sm:$0x1f] }
  0x85   :  { %v158_v58 = vsel %vm157_vm7, %v154_v49, %v86_v50 }
  0x86   :  { %v36_v33 = vpop.permute.xlu0 %35  ;;  %v95_v34 = vpop.permute.xlu1 %94 }
  0x87   :  { %v42_v42 = vsel %vm41_vm2, %v36_v33, %v1440_v23 }
  0x88   :  { %v146_v1 = vsel %vm145_vm4, %v1586_v0, %v42_v42 }
  0x89   :  { %v150_v2 = vsel %vm149_vm8, %v146_v1, %v57_v40 }
  0x8a   :  { %v1449_v51 = vpop.permute.xlu0 %1448  ;;  %v110_v52 = vpop.permute.xlu1 %109 }
  0x8b   :  { %v1451_v53 = vunpack.i.h.bf16 %v1449_v51  ;;  %v1450_v54 = vunpack.i.l.bf16 %v1449_v51 }
  0x8d   :  { %v101_v59 = vsel %vm100_vm9, %v95_v34, %v1450_v54  ;;  %v164_v60 = vsel %vm2088_vm10, %v160_v56, %v1451_v53  ;;  %v102_v61 = vsel %vm100_vm9, %v1450_v54, %v1451_v53 }
  0x8e   :  { %v1454_v62 = vpop.permute.xlu0 %1453  ;;  %v1376_v0 = vpack.c.bf16 %v164_v60, %v152_v55  ;;  %v163_v63 = vsel %vm2088_vm10, %v159_v57, %v102_v61  ;;  %v162_v4 = vsel %vm2088_vm10, %v158_v58, %v101_v59  ;;  %v125_v8 = vpop.permute.xlu1 %124 }
  0x8f   :  { %v1365_v5 = vpack.c.bf16 %v163_v63, %v151_v3  ;;  %v1367_v6 = vpack.c.bf16 %v162_v4, %v150_v2  ;;  %v1455_v7 = vunpack.i.l.bf16 %v1454_v62  ;;  %v1456_v9 = vunpack.i.h.bf16 %v1454_v62 }
  0x90   :  { %1377 = vmatpush3.bf16.msra.mxu1 %v1376_v0 }
  0x91   :  { %1366 = vmatprep.subr.bf16.mxu0 %v1365_v5  ;;  %1378 = vmatprep.subr.bf16.mxu1 %v1533_v17  ;;  %v116_v13 = vsel %vm2087_vm11, %v110_v52, %v1455_v7  ;;  %v117_v14 = vsel %vm2087_vm11, %v1455_v7, %v1456_v9  ;;  %v168_v20 = vsel %vm165_vm13, %v1451_v53, %v1456_v9  ;;  %vm1541_vm11 = vmmov 1  }
  0x92   :  { %v1459_v10 = vpop.permute.xlu0 %1458  ;;  %1368 = vmatpush1.bf16.msra.mxu0 %v1367_v6  ;;  %v137_v19 = vpop.permute.xlu1 %136  ;;  %v166_v21 = vsel %vm165_vm13, %v101_v59, %v116_v13  ;;  %v167_v24 = vsel %vm165_vm13, %v102_v61, %v117_v14  ;;  %vm1774_vm10 = vmpackc.low %vm145_vm4, %vm1541_vm11  ;;  %vm2089_vm11 = vcmask 220160  }
  0x93   :  { %v1461_v11 = vunpack.i.h.bf16 %v1459_v10  ;;  %v1460_v12 = vunpack.i.l.bf16 %v1459_v10 }
  0x95   :  { %v131_v15 = vsel %vm130_vm12, %v125_v8, %v1460_v12  ;;  %v132_v16 = vsel %vm130_vm12, %v1460_v12, %v1461_v11  ;;  %v172_v25 = vsel %vm169_vm14, %v168_v20, %v1461_v11 }
  0x96   :  { %v1464_v18 = vpop.permute.xlu0 %1463  ;;  %v170_v26 = vsel %vm169_vm14, %v166_v21, %v131_v15  ;;  %v171_v32 = vsel %vm169_vm14, %v167_v24, %v132_v16 }
  0x97   :  { %v1466_v22 = vunpack.i.h.bf16 %v1464_v18  ;;  %v1465_v23 = vunpack.i.l.bf16 %v1464_v18 }
  0x99   :  { %v1379_v28 = vpack.c.bf16 %v1466_v22, %v172_v25  ;;  %v143_v29 = vsel %vm142_vm15, %v137_v19, %v1465_v23  ;;  %v144_v30 = vsel %vm142_vm15, %v1465_v23, %v1466_v22 }
  0x9a   :  { %v1372_v33 = vpack.c.bf16 %v143_v29, %v170_v26  ;;  %v1369_v34 = vpack.c.bf16 %v144_v30, %v171_v32 }
  0x9b   :  { %1381 = vmatpush3.bf16.msk.msra.mxu1 %vm1774_vm10, %v1379_v28 }
  0x9c   :  { %1371 = vmatprep.subr.msk.bf16.mxu0 %vm1774_vm10, %v1369_v34  ;;  %1386 = vmatprep.subr.bf16.mxu1 %v1533_v17 }
  0x9d   :  { %1374 = vmatpush1.bf16.msk.msra.mxu0 %vm1774_vm10, %v1372_v33 }
  0x9e   :  { %1322 = vmatmul.mubr.msk.f32.vlgmr.msra.gmra.mrb[0].mxu1 %vm2089_vm11, %v1786_v36 }
  0x9f   :  { %1324 = vmatprep.mubr.msk.f32.mxu1 %vm1537_vm0, %v1538_v31 }
  0xa0   :  { %1255 = vmatmul.mubr.msk.f32.vlgmr.msra.gmra.mrb[0].mxu0 %vm2089_vm11, %v1786_v36 }
  0xa1   :  { %262 = vmatprep.mubr.f32.mxu0 %v1538_v31 }
  0xa2   :  { %1325 = vmatmul.mubr.msk.f32.gmra.mrb[2].mxu1 %vm2089_vm11, %v1800_v37 }
  0xa3   :  { %1327 = vmatprep.mubr.msk.f32.mxu1 %vm1537_vm0, %v1538_v31  ;;  %v1812_v40 = vpop.permute.xlu1 %365 }
  0xa4   :  { %1256 = vmatmul.mubr.msk.f32.gmra.mrb[2].mxu0 %vm2089_vm11, %v1800_v37 }
  0xa5   :  { %268 = vmatprep.mubr.f32.mxu0 %v1538_v31 }
  0xa6   :  { %1328 = vmatmul.mubr.msk.f32.gmra.mrb[4].mxu1 %vm2089_vm11, %v175_v39 }
  0xa7   :  { %v1818_v42 = vpop.permute.xlu0 %360  ;;  %v1820_v43 = vpop.permute.xlu1 %387  ;;  %1336 = vmatprep.mubr.msk.f32.mxu1 %vm1537_vm0, %v1538_v31 }
  0xa8   :  { %1257 = vmatmul.mubr.msk.f32.gmra.mrb[4].mxu0 %vm2089_vm11, %v175_v39 }
  0xa9   :  { %496 = vmatprep.mubr.f32.mxu0 %v1538_v31 }
  0xab   :  { %v1826_v44 = vpop.permute.xlu0 %392  ;;  %v1828_v45 = vpop.permute.xlu1 %370 }
  0xaf   :  { %v1830_v46 = vpop.permute.xlu0 %397  ;;  %v1471_v47 = vpop.permute.xlu1 %1470 }
  0xb0   :  { %v1832_v48 = vunpack.i.h.bf16 %v1471_v47  ;;  %v1472_v49 = vunpack.i.l.bf16 %v1471_v47 }
  0xb2   :  { %v677_v52 = vsel %vm56_vm3, %v1472_v49, %v1832_v48 }
  0xb3   :  { %v1834_v50 = vpop.permute.xlu0 %1475  ;;  %v1836_v51 = vpop.permute.xlu1 %1480 }
  0xb4   :  { %v1478_v1 = vunpack.i.h.bf16 %v1834_v50  ;;  %v1477_v53 = vunpack.i.l.bf16 %v1834_v50  ;;  %v1482_v57 = vunpack.i.l.bf16 %v1836_v51 }
  0xb6   :  { %v691_v54 = vsel %vm71_vm1, %v1477_v53, %v1478_v1 }
  0xb7   :  { %v765_v55 = vsel %vm153_vm5, %v677_v52, %v691_v54  ;;  %v671_v56 = vpop.permute.xlu0 %670  ;;  %v685_v3 = vpop.permute.xlu1 %684 }
  0xb8   :  { %v676_v58 = vsel %vm56_vm3, %v671_v56, %v1472_v49  ;;  %v690_v59 = vsel %vm71_vm1, %v685_v3, %v1477_v53  ;;  %vm2092_vm1 = vcmask 1046528   ;;  %vm2093_vm3 = vcmask 752640  }
  0xb9   :  { %v764_v60 = vsel %vm153_vm5, %v676_v58, %v690_v59  ;;  %vm2094_vm11 = vmmov %vm2093_vm3  ;;  %v1483_v59 = vunpack.i.h.bf16 %v1836_v51 }
  0xbb   :  { %v1850_v61 = vpop.permute.xlu0 %1485  ;;  %v657_v62 = vpop.permute.xlu1 %656 }
  0xbc   :  { %v1487_v0 = vunpack.i.l.bf16 %v1850_v61  ;;  %v662_v63 = vsel %vm41_vm2, %v657_v62, %v1482_v57  ;;  %v663_v62 = vsel %vm41_vm2, %v1482_v57, %v1483_v59  ;;  %vm2096_vm2 = vmmov %vm2092_vm1 }
  0xbd   :  { %v758_v2 = vsel %vm145_vm4, %v1649_v35, %v662_v63 }
  0xbe   :  { %v1857_v4 = vsel %vm149_vm8, %v758_v2, %v676_v58  ;;  %v759_v2 = vsel %vm145_vm4, %v1659_v38, %v663_v62 }
  0xbf   :  { %v698_v5 = vpop.permute.xlu0 %697  ;;  %v1491_v6 = vpop.permute.xlu1 %1490 }
  0xc0   :  { %v703_v7 = vsel %vm85_vm6, %v698_v5, %v1487_v0  ;;  %v1492_v8 = vunpack.i.l.bf16 %v1491_v6  ;;  %v1861_v10 = vunpack.i.h.bf16 %v1491_v6  ;;  %v1919_v6 = vsel %vm149_vm8, %v759_v2, %v677_v52 }
  0xc1   :  { %v767_v9 = vsel %vm157_vm7, %v764_v60, %v703_v7  ;;  %v1488_v60 = vunpack.i.h.bf16 %v1850_v61 }
  0xc2   :  { %v718_v18 = vsel %vm100_vm9, %v1492_v8, %v1861_v10 }
  0xc3   :  { %v712_v11 = vpop.permute.xlu0 %711  ;;  %v1863_v12 = vpop.permute.xlu1 %1495  ;;  %v704_v63 = vsel %vm85_vm6, %v1487_v0, %v1488_v60 }
  0xc4   :  { %v717_v13 = vsel %vm100_vm9, %v712_v11, %v1492_v8  ;;  %v1498_v14 = vunpack.i.h.bf16 %v1863_v12  ;;  %v1497_v15 = vunpack.i.l.bf16 %v1863_v12  ;;  %v768_v5 = vsel %vm157_vm7, %v765_v55, %v704_v63  ;;  %vm2095_vm9 = vmmov %vm2092_vm1 }
  0xc5   :  { %v1869_v16 = vsel %vm2092_vm1, %v767_v9, %v717_v13  ;;  %v1922_v7 = vsel %vm2095_vm9, %v768_v5, %v718_v18  ;;  %v760_v63 = vsel %vm145_vm4, %v1670_v41, %v1483_v59  ;;  %vm419_vm4 = vcmask 171008  }
  0xc6   :  { %v1391_v19 = vpack.c.bf16 %v1869_v16, %v1857_v4  ;;  %v732_v20 = vsel %vm2093_vm3, %v1497_v15, %v1498_v14  ;;  %v1389_v51 = vpack.c.bf16 %v1922_v7, %v1919_v6  ;;  %v763_v59 = vsel %vm149_vm8, %v760_v63, %v1832_v48 }
  0xc7   :  { %v774_v21 = vsel %vm165_vm13, %v718_v18, %v732_v20  ;;  %v726_v22 = vpop.permute.xlu0 %725  ;;  %v1879_v23 = vpop.permute.xlu1 %1500  ;;  %vm624_vm3 = vcmask 154624  }
  0xc8   :  { %v731_v24 = vsel %vm2094_vm11, %v726_v22, %v1497_v15  ;;  %v1503_v25 = vunpack.i.h.bf16 %v1879_v23  ;;  %v1502_v26 = vunpack.i.l.bf16 %v1879_v23 }
  0xc9   :  { %v773_v28 = vsel %vm165_vm13, %v717_v13, %v731_v24 }
  0xca   :  { %v746_v29 = vsel %vm130_vm12, %v1502_v26, %v1503_v25 }
  0xcb   :  { %v740_v30 = vpop.permute.xlu0 %739  ;;  %v1888_v32 = vpop.permute.xlu1 %1505  ;;  %v1891_v33 = vsel %vm169_vm14, %v774_v21, %v746_v29 }
  0xcc   :  { %v745_v34 = vsel %vm130_vm12, %v740_v30, %v1502_v26  ;;  %v1508_v39 = vunpack.i.h.bf16 %v1888_v32  ;;  %v1507_v47 = vunpack.i.l.bf16 %v1888_v32  ;;  %v766_v26 = vsel %vm153_vm5, %v1832_v48, %v1478_v1 }
  0xcd   :  { %v1897_v49 = vsel %vm169_vm14, %v773_v28, %v745_v34  ;;  %v775_v48 = vsel %vm165_vm13, %v1861_v10, %v1498_v14  ;;  %vm2097_vm5 = vcmask 220160  }
  0xce   :  { %v1902_v53 = vsel %vm142_vm15, %v1507_v47, %v1508_v39  ;;  %vm2098_vm8 = vmmov %vm2097_vm5 }
  0xcf   :  { %v1393_v54 = vpack.c.bf16 %v1902_v53, %v1891_v33  ;;  %v751_v56 = vpop.permute.xlu0 %750  ;;  %vm2099_vm12 = vmmov %vm2097_vm5  ;;  %v966_v27 = vpop.permute.xlu1 %965 }
  0xd0   :  { %v1907_v3 = vsel %vm142_vm15, %v751_v56, %v1507_v47  ;;  %vm2101_vm13 = vmmov %vm2097_vm5 }
  0xd1   :  { %v1396_v58 = vpack.c.bf16 %v1907_v3, %v1897_v49  ;;  %vm2102_vm15 = vmmov %vm2097_vm5 }
  0xd3   :  { %v971_v49 = vpop.permute.xlu0 %970 }
 0x171   :  { %v341_v8 = vpop.f32.mrb[0].mxu1 }
 0x172   :  { %v375_v61 = vmul.f32 %v1818_v42, %v341_v8  ;;  %v1323_v57 = vpop.f32.mrb[1].mxu1 }
 0x173   :  { %v258_v9 = vpop.f32.mrb[0].mxu0  ;;  %v769_v57 = vsel %vm157_vm7, %v766_v26, %v1488_v60  ;;  %v998_v26 = vpop.permute.xlu0 %997 }
 0x174   :  { %v373_v0 = vmul.f32 %v1818_v42, %v258_v9  ;;  %v260_v11 = vpop.f32.mrb[1].mxu0  ;;  %v402_v52 = vadd.f32 %v1820_v43, %v375_v61 }
 0x175   :  { %v374_v38 = vmul.f32 %v1818_v42, %v260_v11  ;;  %v346_v55 = vpop.f32.mrb[2].mxu1 }
 0x176   :  { %v378_v13 = vmul.f32 %v1812_v40, %v346_v55  ;;  %v1326_v15 = vpop.f32.mrb[3].mxu1  ;;  %v400_v18 = vadd.f32 %v1820_v43, %v373_v0  ;;  %v411_v30 = vmax.f32 %v402_v52, 0.0  ;;  %v772_v52 = vsel %vm2096_vm2, %v769_v57, %v1861_v10 }
 0x177   :  { %v264_v20 = vpop.f32.mrb[2].mxu0  ;;  %v401_v42 = vadd.f32 %v1820_v43, %v374_v38 }
 0x178   :  { %v405_v21 = vadd.f32 %v1826_v44, %v378_v13  ;;  %v376_v22 = vmul.f32 %v1812_v40, %v264_v20  ;;  %v266_v24 = vpop.f32.mrb[3].mxu0  ;;  %v409_v2 = vmax.f32 %v400_v18, 0.0  ;;  %v1400_v18 = vpack.c.bf16 %v772_v52, %v763_v59 }
 0x179   :  { %v377_v28 = vmul.f32 %v1812_v40, %v266_v24  ;;  %v351_v29 = vpop.f32.mrb[4].mxu1  ;;  %v410_v9 = vmax.f32 %v401_v42, 0.0 }
 0x17a   :  { %v414_v34 = vmax.f32 %v405_v21, 0.0  ;;  %v403_v47 = vadd.f32 %v1826_v44, %v376_v22  ;;  %v381_v56 = vmul.f32 %v1828_v45, %v351_v29  ;;  %v1329_v62 = vpop.f32.mrb[5].mxu1 }
 0x17b   :  { %v404_v50 = vadd.f32 %v1826_v44, %v377_v28  ;;  %v270_v5 = vpop.f32.mrb[4].mxu0 }
 0x17c   :  { %v1387_v1 = vpack.c.bf16 %v414_v34, %v411_v30  ;;  %v412_v8 = vmax.f32 %v403_v47, 0.0  ;;  %v408_v43 = vadd.f32 %v1830_v46, %v381_v56  ;;  %v379_v40 = vmul.f32 %v1828_v45, %v270_v5  ;;  %v272_v61 = vpop.f32.mrb[5].mxu0 }
 0x17d   :  { %v413_v0 = vmax.f32 %v404_v50, 0.0  ;;  %v380_v11 = vmul.f32 %v1828_v45, %v272_v61  ;;  %v418_v45 = vld [vmem:[%s2085_s4] sm:$0x7] }
 0x17e   :  { %v1384_v38 = vpack.c.bf16 %v412_v8, %v409_v2  ;;  %1388 = vmatpush3.bf16.msra.mxu1 %v1387_v1  ;;  %v417_v13 = vmax.f32 %v408_v43, 0.0  ;;  %v406_v60 = vadd.f32 %v1830_v46, %v379_v40 }
 0x17f   :  { %v407_v44 = vadd.f32 %v1830_v46, %v380_v11  ;;  %v1382_v55 = vpack.c.bf16 %v413_v0, %v410_v9  ;;  %1334 = vmatprep.subr.mxu1 %v1538_v31  ;;  %v778_v46 = vsel %vm169_vm14, %v775_v48, %v1503_v25 }
 0x180   :  { %v415_v20 = vmax.f32 %v406_v60, 0.0  ;;  %v1403_v10 = vpack.c.bf16 %v1508_v39, %v778_v46 }
 0x181   :  { %v416_v15 = vmax.f32 %v407_v44, 0.0  ;;  %1383 = vmatprep.subr.bf16.mxu0 %v1382_v55 }
 0x182   :  { %1385 = vmatpush1.bf16.msra.mxu0 %v1384_v38  ;;  %1335 = vmatpush3.msk.msra.mxu1 %vm169_vm14, %v417_v13  ;;  %v1003_v38 = vpop.permute.xlu0 %1002 }
 0x183   :  { %1262 = vmatprep.subr.msk.mxu0 %vm169_vm14, %v416_v15  ;;  %1337 = vmatmul.mubr.msk.f32.vlgmr.msra.gmra.mrb[6].mxu1 %vm419_vm4, %v418_v45 }
 0x184   :  { %1399 = vmatprep.subr.bf16.mxu1 %v1533_v17  ;;  %1347 = vmatprep.mubr.msk.f32.mxu1 %vm1537_vm0, %v1538_v31 }
 0x185   :  { %1401 = vmatpush3.bf16.msra.mxu1 %v1400_v18 }
 0x186   :  { %1263 = vmatpush1.msk.msra.mxu0 %vm169_vm14, %v415_v20  ;;  %1402 = vmatprep.subr.bf16.mxu1 %v1533_v17 }
 0x187   :  { %1264 = vmatmul.mubr.msk.f32.vlgmr.msra.gmra.mrb[6].mxu0 %vm419_vm4, %v418_v45  ;;  %1390 = vmatprep.subr.bf16.mxu0 %v1389_v51 }
 0x188   :  { %1392 = vmatpush1.bf16.msra.mxu0 %v1391_v19  ;;  %861 = vmatprep.mubr.f32.mxu0 %v1538_v31 }
 0x189   :  { %1405 = vmatpush3.bf16.msk.msra.mxu1 %vm1774_vm10, %v1403_v10  ;;  %1395 = vmatprep.subr.msk.bf16.mxu0 %vm1774_vm10, %v1393_v54 }
 0x18a   :  { %1410 = vmatprep.subr.bf16.mxu1 %v1533_v17  ;;  %v781_v17 = vld [vmem:[%s2084_s1 + $0x10] sm:$0x1f] }
 0x18c   :  { %1348 = vmatmul.mubr.msk.f32.vlgmr.msra.gmra.mrb[8].mxu1 %vm2097_vm5, %v1786_v36  ;;  %1398 = vmatpush1.bf16.msk.msra.mxu0 %vm1774_vm10, %v1396_v58  ;;  %vm2100_vm10 = vmmov %vm2097_vm5 }
 0x18d   :  { %1350 = vmatprep.mubr.msk.f32.mxu1 %vm1537_vm0, %v1538_v31 }
 0x18f   :  { %1274 = vmatmul.mubr.msk.f32.vlgmr.msra.gmra.mrb[8].mxu0 %vm2098_vm8, %v1786_v36  ;;  %v993_v36 = vpop.permute.xlu1 %992 }
 0x190   :  { %1351 = vmatmul.mubr.msk.f32.gmra.mrb[10].mxu1 %vm2099_vm12, %v1800_v37  ;;  %867 = vmatprep.mubr.f32.mxu0 %v1538_v31 }
 0x191   :  { %1353 = vmatprep.mubr.msk.f32.mxu1 %vm1537_vm0, %v1538_v31 }
 0x193   :  { %1275 = vmatmul.mubr.msk.f32.gmra.mrb[10].mxu0 %vm2100_vm10, %v1800_v37  ;;  %v976_v4 = vpop.permute.xlu1 %975 }
 0x194   :  { %1354 = vmatmul.mubr.msk.f32.gmra.mrb[12].mxu1 %vm2101_vm13, %v781_v17  ;;  %873 = vmatprep.mubr.f32.mxu0 %v1538_v31 }
 0x195   :  { %1362 = vmatprep.mubr.msk.f32.mxu1 %vm1537_vm0, %v1538_v31 }
 0x197   :  { %1276 = vmatmul.mubr.msk.f32.gmra.mrb[12].mxu0 %vm2102_vm15, %v781_v17  ;;  %v577_v12 = vpop.permute.xlu1 %576 }
 0x198   :  { %1100 = vmatprep.mubr.f32.mxu0 %v1538_v31 }
 0x19b   :  { %v586_v23 = vpop.permute.xlu1 %585 }
 0x256   :  { %v569_v14 = vpop.f32.mrb[6].mxu1 }
 0x257   :  { %v581_v16 = vmul.f32 %v577_v12, %v569_v14  ;;  %v1338_v19 = vpop.f32.mrb[7].mxu1 }
 0x259   :  { %v2019_v37 = vadd.f32 %v586_v23, %v581_v16 }
 0x25a   :  { %v498_v25 = vpop.f32.mrb[6].mxu0 }
 0x25b   :  { %v593_v32 = vmin.f32 %v2019_v37, 0.0  ;;  %v579_v33 = vmul.f32 %v577_v12, %v498_v25  ;;  %v500_v39 = vpop.f32.mrb[7].mxu0  ;;  %vm608_vm1 = vcmp.gt.f32.partialorder %v2019_v37, 0.0 }
 0x25c   :  { %v580_v53 = vmul.f32 %v577_v12, %v500_v39 }
 0x25d   :  { %v2022_v54 = vadd.f32 %v586_v23, %v579_v33  ;;  %v598_v3 = vmul.f32 1.442695, %v593_v32 }
 0x25e   :  { %v2024_v58 = vadd.f32 %v586_v23, %v580_v53  ;;  %v1023_v23 = vld [vmem:[%s2085_s4] sm:$0x7]  ;;  %s1542_s4 = smov 19  }
 0x25f   :  { %v591_v6 = vmin.f32 %v2022_v54, 0.0  ;;  %v946_v7 = vpop.f32.mrb[8].mxu1  ;;  %1515 = vpow2.f32 %v598_v3  ;;  %vm606_vm0 = vcmp.gt.f32.partialorder %v2022_v54, 0.0 }
 0x260   :  { %v592_v51 = vmin.f32 %v2024_v58, 0.0  ;;  %v980_v21 = vmul.f32 %v966_v27, %v946_v7  ;;  %v1349_v22 = vpop.f32.mrb[9].mxu1  ;;  %vm607_vm11 = vcmp.gt.f32.partialorder %v2024_v58, 0.0 }
 0x261   :  { %v594_v24 = vmul.f32 1.442695, %v591_v6 }
 0x262   :  { %v596_v42 = vmul.f32 1.442695, %v592_v51  ;;  %v863_v28 = vpop.f32.mrb[8].mxu0  ;;  %v1007_v29 = vadd.f32 %v993_v36, %v980_v21 }
 0x263   :  { %1517 = vpow2.f32 %v594_v24  ;;  %v978_v30 = vmul.f32 %v966_v27, %v863_v28  ;;  %v951_v34 = vpop.f32.mrb[10].mxu1  ;;  %v865_v47 = vpop.f32.mrb[9].mxu0 }
 0x264   :  { %1519 = vpow2.f32 %v596_v42  ;;  %v983_v56 = vmul.f32 %v971_v49, %v951_v34  ;;  %v979_v62 = vmul.f32 %v966_v27, %v865_v47  ;;  %v1352_v63 = vpop.f32.mrb[11].mxu1  ;;  %v1016_v5 = vmax.f32 %v1007_v29, 0.0  ;;  %v1527_v42 = vld [vmem:[%s2079_s0] sm:$0x77]  ;;  %v1181_v29 = vpop.permute.xlu0 %1180 }
 0x265   :  { %v1005_v1 = vadd.f32 %v993_v36, %v978_v30 }
 0x266   :  { %v1010_v2 = vadd.f32 %v998_v26, %v983_v56  ;;  %v869_v50 = vpop.f32.mrb[10].mxu0  ;;  %v1006_v57 = vadd.f32 %v993_v36, %v979_v62 }
 0x267   :  { %v981_v8 = vmul.f32 %v971_v49, %v869_v50  ;;  %v956_v43 = vpop.f32.mrb[12].mxu1  ;;  %v871_v40 = vpop.f32.mrb[11].mxu0  ;;  %v1014_v60 = vmax.f32 %v1005_v1, 0.0 }
 0x268   :  { %v1019_v61 = vmax.f32 %v1010_v2, 0.0  ;;  %v986_v9 = vmul.f32 %v976_v4, %v956_v43  ;;  %v982_v0 = vmul.f32 %v971_v49, %v871_v40  ;;  %v1355_v11 = vpop.f32.mrb[13].mxu1  ;;  %v1015_v46 = vmax.f32 %v1006_v57, 0.0  ;;  %v1190_v47 = vpop.permute.xlu0 %1189 }
 0x269   :  { %v1008_v59 = vadd.f32 %v998_v26, %v981_v8  ;;  %v1516_v18 = vpop.eup %1515 }
 0x26a   :  { %v1411_v44 = vpack.c.bf16 %v1019_v61, %v1016_v5  ;;  %v1013_v55 = vadd.f32 %v1003_v38, %v986_v9  ;;  %v1009_v52 = vadd.f32 %v998_v26, %v982_v0  ;;  %v875_v13 = vpop.f32.mrb[12].mxu0  ;;  %v1269_v33 = vadd.f32 -1.0, %v1516_v18 }
 0x26b   :  { %v1017_v45 = vmax.f32 %v1008_v59, 0.0  ;;  %v984_v48 = vmul.f32 %v976_v4, %v875_v13  ;;  %v877_v15 = vpop.f32.mrb[13].mxu0 }
 0x26c   :  { %v1018_v20 = vmax.f32 %v1009_v52, 0.0  ;;  %v985_v10 = vmul.f32 %v976_v4, %v877_v15  ;;  %1412 = vmatpush3.bf16.msra.mxu1 %v1411_v44  ;;  %v1022_v14 = vmax.f32 %v1013_v55, 0.0  ;;  %v605_v7 = vmul.f32 1.6732632, %v1269_v33 }
 0x26d   :  { %v1518_v17 = vpop.eup %1517  ;;  %v1408_v27 = vpack.c.bf16 %v1017_v45, %v1014_v60  ;;  %1360 = vmatprep.subr.mxu1 %v1538_v31  ;;  %v1011_v32 = vadd.f32 %v1003_v38, %v984_v48 }
 0x26e   :  { %v1520_v36 = vpop.eup %1519  ;;  %v1267_v12 = vadd.f32 -1.0, %v1518_v17  ;;  %v1012_v16 = vadd.f32 %v1003_v38, %v985_v10  ;;  %v1406_v19 = vpack.c.bf16 %v1018_v20, %v1015_v46  ;;  %v611_v22 = vsel %vm608_vm1, %v2019_v37, %v605_v7 }
 0x26f   :  { %v1268_v25 = vadd.f32 -1.0, %v1520_v36  ;;  %v1020_v53 = vmax.f32 %v1011_v32, 0.0  ;;  %v614_v24 = vmul.f32 1.050701, %v611_v22  ;;  %v1528_v36 = vld [vmem:[%s2079_s0 + $0x8] sm:$0x7] }
 0x270   :  { %v1021_v39 = vmax.f32 %v1012_v16, 0.0  ;;  %1361 = vmatpush3.msk.msra.mxu1 %vm169_vm14, %v1022_v14  ;;  %1407 = vmatprep.subr.bf16.mxu0 %v1406_v19  ;;  %v603_v4 = vmul.f32 1.6732632, %v1267_v12 }
 0x271   :  { %1363 = vmatmul.mubr.msk.f32.vlgmr.msra.gmra.mrb[14].mxu1 %vm419_vm4, %v1023_v23  ;;  %1409 = vmatpush1.bf16.msra.mxu0 %v1408_v27  ;;  %v604_v31 = vmul.f32 1.6732632, %v1268_v25 }
 0x272   :  { %1281 = vmatprep.subr.msk.mxu0 %vm169_vm14, %v1021_v39  ;;  %v609_v49 = vsel %vm606_vm0, %v2022_v54, %v603_v4 }
 0x273   :  { %v610_v3 = vsel %vm607_vm11, %v2024_v58, %v604_v31  ;;  %v612_v6 = vmul.f32 1.050701, %v609_v49 }
 0x274   :  { %v613_v51 = vmul.f32 1.050701, %v610_v3 }
 0x275   :  { %1282 = vmatpush1.msk.msra.mxu0 %vm169_vm14, %v1020_v53 }
 0x276   :  { %1283 = vmatmul.mubr.msk.f32.vlgmr.msra.gmra.mrb[14].mxu0 %vm419_vm4, %v1023_v23  ;;  %v618_v21 = vcombine.low %v612_v6, %v613_v51  ;;  %vm644_vm4 = vcmask 550912  }
 0x278   :  { %619 = vrot.lane.b32.xlu1 %v618_v21, %s1542_s4 }
 0x27c   :  { %621 = vrot.lane.b32.xlu1 %v614_v24, %s1542_s4 }
 0x2ea   :  { %v620_v54 = vpop.permute.xlu1 %619 }
 0x2eb   :  { %v623_v58 = vrot.slane %v620_v54, 4 }
 0x2ed   :  { %v625_v26 = vsel %vm624_vm3, %v623_v58, %v620_v54 }
 0x2ee   :  { %v629_v28 = vadd.f32 %v1527_v42, %v625_v26  ;;  %v622_v10 = vpop.permute.xlu1 %621 }
 0x2ef   :  { %v626_v27 = vsel %vm624_vm3, %v623_v58, %v622_v10 }
 0x2f0   :  { %633 = vrot.lane.b32.xlu1 %v629_v28, %s1532_s8  ;;  %v630_v12 = vadd.f32 %v1528_v36, %v626_v27 }
 0x344   :  { %v1173_v37 = vpop.f32.mrb[14].mxu1 }
 0x345   :  { %v1185_v30 = vmul.f32 %v1181_v29, %v1173_v37  ;;  %v1364_v34 = vpop.f32.mrb[15].mxu1 }
 0x347   :  { %v1194_v56 = vadd.f32 %v1190_v47, %v1185_v30 }
 0x349   :  { %v1197_v62 = vmin.f32 %v1194_v56, 0.0  ;;  %v1102_v63 = vpop.f32.mrb[14].mxu0  ;;  %vm1212_vm2 = vcmp.gt.f32.partialorder %v1194_v56, 0.0 }
 0x34a   :  { %v1183_v2 = vmul.f32 %v1181_v29, %v1102_v63  ;;  %v1104_v50 = vpop.f32.mrb[15].mxu0 }
 0x34b   :  { %v1184_v5 = vmul.f32 %v1181_v29, %v1104_v50  ;;  %v1202_v8 = vmul.f32 1.442695, %v1197_v62 }
 0x34c   :  { %v1192_v1 = vadd.f32 %v1190_v47, %v1183_v2 }
 0x34d   :  { %v1193_v43 = vadd.f32 %v1190_v47, %v1184_v5  ;;  %1521 = vpow2.f32 %v1202_v8 }
 0x34e   :  { %v1195_v40 = vmin.f32 %v1192_v1, 0.0  ;;  %vm1210_vm14 = vcmp.gt.f32.partialorder %v1192_v1, 0.0 }
 0x34f   :  { %v1196_v61 = vmin.f32 %v1193_v43, 0.0  ;;  %vm1211_vm9 = vcmp.gt.f32.partialorder %v1193_v43, 0.0 }
 0x350   :  { %v1198_v57 = vmul.f32 1.442695, %v1195_v40 }
 0x351   :  { %v1200_v9 = vmul.f32 1.442695, %v1196_v61 }
 0x352   :  { %1523 = vpow2.f32 %v1198_v57 }
 0x353   :  { %1525 = vpow2.f32 %v1200_v9 }
 0x357   :  { %v1522_v0 = vpop.eup %1521 }
 0x358   :  { %v1288_v55 = vadd.f32 -1.0, %v1522_v0 }
 0x35a   :  { %v1209_v15 = vmul.f32 1.6732632, %v1288_v55 }
 0x35c   :  { %v1524_v11 = vpop.eup %1523  ;;  %v1215_v20 = vsel %vm1212_vm2, %v1194_v56, %v1209_v15 }
 0x35d   :  { %v1526_v38 = vpop.eup %1525  ;;  %v1286_v59 = vadd.f32 -1.0, %v1524_v11  ;;  %v1218_v17 = vmul.f32 1.050701, %v1215_v20 }
 0x35e   :  { %v1287_v44 = vadd.f32 -1.0, %v1526_v38 }
 0x35f   :  { %v1207_v52 = vmul.f32 1.6732632, %v1286_v59 }
 0x360   :  { %v1208_v13 = vmul.f32 1.6732632, %v1287_v44 }
 0x361   :  { %v1213_v60 = vsel %vm1210_vm14, %v1192_v1, %v1207_v52 }
 0x362   :  { %v1214_v45 = vsel %vm1211_vm9, %v1193_v43, %v1208_v13  ;;  %v1216_v48 = vmul.f32 1.050701, %v1213_v60  ;;  %v634_v33 = vpop.permute.xlu1 %633 }
 0x363   :  { %v1217_v18 = vmul.f32 1.050701, %v1214_v45  ;;  %v637_v31 = vrot.slane %v634_v33, 4 }
 0x365   :  { %v1222_v46 = vcombine.low %v1216_v48, %v1217_v18 }
 0x367   :  { %1223 = vrot.lane.b32.xlu0 %v1222_v46, %s1542_s4 }
 0x36b   :  { %1225 = vrot.lane.b32.xlu0 %v1218_v17, %s1542_s4 }
 0x36f   :  { %635 = vrot.lane.b32.xlu0 %v630_v12, %s1532_s8 }
 0x3d9   :  { %v1224_v14 = vpop.permute.xlu0 %1223 }
 0x3da   :  { %v1227_v16 = vrot.slane %v1224_v14, 4 }
 0x3dc   :  { %v1228_v19 = vsel %vm624_vm3, %v1227_v16, %v1224_v14 }
 0x3dd   :  { %v1232_v23 = vadd.f32 %v1649_v35, %v1228_v19  ;;  %v1226_v25 = vpop.permute.xlu0 %1225 }
 0x3de   :  { %v1229_v32 = vsel %vm624_vm3, %v1227_v16, %v1226_v25 }
 0x3df   :  { %v1233_v39 = vadd.f32 %v1670_v41, %v1229_v32  ;;  %1236 = vrot.lane.b32.xlu1 %v1232_v23, %s1532_s8 }
 0x3e1   :  { %1238 = vrot.lane.b32.xlu0 %v1233_v39, %s1532_s8  ;;  %v636_v4 = vpop.permute.xlu0 %635 }
 0x3e2   :  { %v638_v49 = vrot.slane %v636_v4, 4  ;;  %645 = vst.msk [vmem:[%s2086_s7 + $0x8] sm:$0x7] %vm644_vm4, %v636_v4 }
 0x3e4   :  { %v639_v35 = vsel %vm157_vm7, %v637_v31, %v638_v49 }
 0x3e5   :  { %v640_v53 = vsel %vm85_vm6, %v634_v33, %v639_v35 }
 0x3e6   :  { %643 = vst [vmem:[%s2086_s7] sm:$0x77] %v640_v53 }
 0x451   :  { %v1237_v41 = vpop.permute.xlu1 %1236 }
 0x452   :  { %v1240_v6 = vrot.slane %v1237_v41, 4 }
 0x453   :  { %v1239_v3 = vpop.permute.xlu0 %1238 }
 0x454   :  { %v1241_v7 = vrot.slane %v1239_v3, 4  ;;  %1290 = vst.msk [vmem:[%s2086_s7 + $0x14] sm:$0x7] %vm644_vm4, %v1239_v3 }
 0x456   :  { %v1242_v51 = vsel %vm157_vm7, %v1240_v6, %v1241_v7 }
 0x457   :  { %v1243_v21 = vsel %vm85_vm6, %v1237_v41, %v1242_v51 }
 0x458   :  { %1289 = vst [vmem:[%s2086_s7 + $0xc] sm:$0x77] %v1243_v21 }

// kernel: block_forward.4
= control target key start
LH: loop header
LB: loop body
LE: loop exit
PB: predicated region body
PF: predicated region fallthrough
CT: control target
= control target key end

     0   :  { %s1404_s22 = smov 126   ;;  %s1405_s23 = smov 127   ;;  %v1408_v17 = vmov 0.0|0.0   ;;  %vm1412_vm0 = vmmov 0   ;;  %v1413_v31 = vmov 0.0   ;;  %v1415_v34 = vmov 0   ;;  %s1882_s0 = inlined_call_operand.vmem [shape: f32[2,3,362], index: 0, kind: input, shape index: {}]   ;;  %s1883_s2 = inlined_call_operand.vmem [shape: f32[21,1], index: 2, kind: input, shape index: {}]   ;;  %s1884_s3 = inlined_call_operand.vmem [shape: f32[21,1], index: 3, kind: input, shape index: {}]   ;;  %s1885_s1 = inlined_call_operand.vmem [shape: f32[21,27], index: 1, kind: input, shape index: {}]   ;;  %s1886_s4 = inlined_call_operand.vmem [shape: f32[3,21], index: 4, kind: input, shape index: {}]   ;;  %s1887_s5 = inlined_call_operand.vmem [shape: f32[1,3,2], index: 5, kind: output, shape index: {}]  }
   0x1   :  { %v1450_v0 = vld [vmem:[%s1882_s0] sm:$0x77]  ;;  %v1455_v1 = vld [vmem:[%s1882_s0 + $0x8] sm:$0x7]  ;;  %s1406_s24 = smov 110   ;;  %s1407_s25 = smov 109   ;;  %1265 = vmatprep.subr.bf16.mxu1 %v1408_v17  ;;  %1211 = vmatprep.mubr.msk.f32.mxu1 %vm1412_vm0, %v1413_v31 }
   0x2   :  { %v90_v2 = vrot.slane %v1450_v0, 2  ;;  %v1460_v3 = vcombine.high %v1450_v0, %v1450_v0  ;;  %v92_v4 = vrot.slane %v1455_v1, 2  ;;  %v77_v5 = vrot.slane %v1455_v1, 5  ;;  %s1409_s26 = smov 108   ;;  %s1410_s27 = smov 92   ;;  %299 = vmatprep.mubr.f32.mxu0 %v1413_v31  ;;  %1357 = vset.pattern.permute.xlu1 %v1415_v34  ;;  %v399_v35 = vld [vmem:[%s1883_s2 + $0x8] sm:$0xff] }
   0x3   :  { %v107_v6 = vrot.slane %v1455_v1, 7  ;;  %v121_v10 = vcombine.low %v1455_v1, %v1455_v1  ;;  %v105_v15 = vrot.slane %v1450_v0, 7  ;;  %v120_v16 = vcombine.low %v1450_v0, %v1450_v0  ;;  %s1411_s28 = smov 91   ;;  %s1414_s29 = smov 90   ;;  %v1510_v33 = vld [vmem:[%s1882_s0 + $0xc] sm:$0x77]  ;;  %1356 = vset.pattern.permute.xlu0 %v1415_v34 }
   0x4   :  { %93 = vrot.lane.b32.xlu1 %v90_v2, %s1404_s22  ;;  %v91_v7 = vrot.slane %v1460_v3, 2  ;;  %v76_v8 = vrot.slane %v1460_v3, 5  ;;  %v106_v9 = vrot.slane %v1460_v3, 7  ;;  %v75_v18 = vrot.slane %v1450_v0, 5  ;;  %v398_v36 = vld [vmem:[%s1883_s2] sm:$0xff]  ;;  %v426_v39 = vld [vmem:[%s1884_s3 + $0x8] sm:$0xff] }
   0x5   :  { %v1331_v14 = vpack.i.bf16 %v121_v10, %v1450_v0  ;;  %v135_v19 = vrot.slane %v1460_v3, 1  ;;  %v136_v20 = vrot.slane %v1455_v1, 1  ;;  %v134_v21 = vrot.slane %v1450_v0, 1  ;;  %v425_v38 = vld [vmem:[%s1884_s3] sm:$0xff]  ;;  %v1531_v40 = vld [vmem:[%s1882_s0 + $0x14] sm:$0x7] }
   0x6   :  { %v1316_v11 = vpack.i.bf16 %v92_v4, %v91_v7  ;;  %v1326_v12 = vpack.i.bf16 %v77_v5, %v76_v8  ;;  %v1321_v13 = vpack.i.bf16 %v107_v6, %v106_v9  ;;  %v150_v23 = vrot.slane %v1460_v3, 6  ;;  %v400_v45 = vld [vmem:[%s1883_s2 + $0x10] sm:$0x1f] }
   0x7   :  { %v1336_v22 = vpack.i.bf16 %v136_v20, %v135_v19  ;;  %v151_v24 = vrot.slane %v1455_v1, 6  ;;  %v149_v25 = vrot.slane %v1450_v0, 6  ;;  %v165_v27 = vrot.slane %v1460_v3, 3  ;;  %v427_v46 = vld [vmem:[%s1884_s3 + $0x10] sm:$0x1f] }
   0x8   :  { %1317 = vrot.lane.b32.xlu0 %v1316_v11, %s1404_s22  ;;  %1327 = vrot.lane.b32.xlu1 %v1326_v12, %s1405_s23  ;;  %v166_v28 = vrot.slane %v1455_v1, 3  ;;  %v164_v29 = vrot.slane %v1450_v0, 3  ;;  %v1351_v32 = vpack.i.bf16 %v1455_v1, %v1460_v3  ;;  %v1520_v37 = vcombine.high %v1510_v33, %v1510_v33 }
   0x9   :  { %v1341_v26 = vpack.i.bf16 %v151_v24, %v150_v23  ;;  %v662_v42 = vrot.slane %v1531_v40, 2  ;;  %v676_v44 = vrot.slane %v1531_v40, 7  ;;  %v648_v50 = vrot.slane %v1531_v40, 5 }
   0xa   :  { %v1346_v30 = vpack.i.bf16 %v166_v28, %v165_v27  ;;  %v661_v41 = vrot.slane %v1520_v37, 2  ;;  %v675_v43 = vrot.slane %v1520_v37, 7  ;;  %v647_v49 = vrot.slane %v1520_v37, 5 }
   0xb   :  { %v660_v52 = vrot.slane %v1510_v33, 2  ;;  %v689_v53 = vcombine.low %v1531_v40, %v1531_v40  ;;  %v674_v54 = vrot.slane %v1510_v33, 7  ;;  %v646_v56 = vrot.slane %v1510_v33, 5 }
   0xc   :  { %1322 = vrot.lane.b32.xlu0 %v1321_v13, %s1406_s24  ;;  %1332 = vrot.lane.b32.xlu1 %v1331_v14, %s1407_s25  ;;  %v1358_v47 = vpack.i.bf16 %v662_v42, %v661_v41  ;;  %v1363_v48 = vpack.i.bf16 %v676_v44, %v675_v43  ;;  %v1368_v51 = vpack.i.bf16 %v648_v50, %v647_v49  ;;  %v702_v58 = vrot.slane %v1520_v37, 1 }
   0xd   :  { %v1373_v55 = vpack.i.bf16 %v689_v53, %v1510_v33  ;;  %v688_v57 = vcombine.low %v1510_v33, %v1510_v33  ;;  %v703_v59 = vrot.slane %v1531_v40, 1  ;;  %v701_v61 = vrot.slane %v1510_v33, 1 }
   0xe   :  { %v716_v62 = vrot.slane %v1520_v37, 6  ;;  %v717_v63 = vrot.slane %v1531_v40, 6  ;;  %v715_v4 = vrot.slane %v1510_v33, 6  ;;  %v730_v5 = vrot.slane %v1520_v37, 3 }
   0xf   :  { %v1378_v60 = vpack.i.bf16 %v703_v59, %v702_v58  ;;  %v731_v6 = vrot.slane %v1531_v40, 3  ;;  %v729_v8 = vrot.slane %v1510_v33, 3  ;;  %v1393_v9 = vpack.i.bf16 %v1531_v40, %v1520_v37 }
  0x10   :  { %108 = vrot.lane.b32.xlu0 %v105_v15, %s1406_s24  ;;  %122 = vrot.lane.b32.xlu1 %v120_v16, %s1407_s25  ;;  %v1383_v2 = vpack.i.bf16 %v717_v63, %v716_v62  ;;  %vm114_vm1 = vcmask 900096   ;;  %vm84_vm2 = vcmask 1039360   ;;  %vm99_vm3 = vcmask 1031168  }
  0x11   :  { %v1388_v7 = vpack.i.bf16 %v731_v6, %v730_v5  ;;  %vm1892_vm4 = vcmask 1042432   ;;  %vm196_vm5 = vcmask 1040384   ;;  %vm128_vm6 = vcmask 891904  }
  0x12   :  { %vm200_vm7 = vcmask 1043456   ;;  %vm192_vm8 = vcmask 1045504   ;;  %vm143_vm9 = vcmask 883712   ;;  %vm1889_vm10 = vcmask 1046528  }
  0x13   :  { %vm1888_vm11 = vcmask 752640   ;;  %vm173_vm12 = vcmask 744448   ;;  %vm208_vm13 = vcmask 1041408   ;;  %vm1891_vm14 = vcmask 1044480  }
  0x14   :  { %78 = vrot.lane.b32.xlu0 %v75_v18, %s1405_s23  ;;  %137 = vrot.lane.b32.xlu1 %v134_v21, %s1409_s26  ;;  %vm185_vm15 = vcmask 736256  }
  0x18   :  { %1337 = vrot.lane.b32.xlu0 %v1336_v22, %s1409_s26  ;;  %152 = vrot.lane.b32.xlu1 %v149_v25, %s1410_s27 }
  0x1c   :  { %1342 = vrot.lane.b32.xlu0 %v1341_v26, %s1410_s27  ;;  %167 = vrot.lane.b32.xlu1 %v164_v29, %s1411_s28 }
  0x20   :  { %1347 = vrot.lane.b32.xlu0 %v1346_v30, %s1411_s28  ;;  %179 = vrot.lane.b32.xlu1 %v1450_v0, %s1414_s29 }
  0x24   :  { %1352 = vrot.lane.b32.xlu0 %v1351_v32, %s1414_s29  ;;  %408 = vperm.xlu1 %1357, %v399_v35  }
  0x28   :  { %403 = vperm.xlu0 %1356, %v398_v36   ;;  %430 = vperm.xlu1 %1357, %v425_v38  }
  0x2c   :  { %435 = vperm.xlu0 %1356, %v426_v39   ;;  %413 = vperm.xlu1 %1357, %v400_v45  }
  0x30   :  { %440 = vperm.xlu0 %1356, %v427_v46   ;;  %1359 = vrot.lane.b32.xlu1 %v1358_v47, %s1404_s22 }
  0x34   :  { %1364 = vrot.lane.b32.xlu0 %v1363_v48, %s1406_s24  ;;  %1369 = vrot.lane.b32.xlu1 %v1368_v51, %s1405_s23 }
  0x38   :  { %663 = vrot.lane.b32.xlu0 %v660_v52, %s1404_s22  ;;  %677 = vrot.lane.b32.xlu1 %v674_v54, %s1406_s24 }
  0x3c   :  { %1374 = vrot.lane.b32.xlu0 %v1373_v55, %s1407_s25  ;;  %649 = vrot.lane.b32.xlu1 %v646_v56, %s1405_s23 }
  0x40   :  { %690 = vrot.lane.b32.xlu0 %v688_v57, %s1407_s25  ;;  %1379 = vrot.lane.b32.xlu1 %v1378_v60, %s1409_s26 }
  0x44   :  { %704 = vrot.lane.b32.xlu0 %v701_v61, %s1409_s26  ;;  %1384 = vrot.lane.b32.xlu1 %v1383_v2, %s1410_s27 }
  0x48   :  { %718 = vrot.lane.b32.xlu0 %v715_v4, %s1410_s27  ;;  %1389 = vrot.lane.b32.xlu1 %v1388_v7, %s1411_s28 }
  0x4c   :  { %732 = vrot.lane.b32.xlu0 %v729_v8, %s1411_s28  ;;  %1394 = vrot.lane.b32.xlu1 %v1393_v9, %s1414_s29 }
  0x50   :  { %743 = vrot.lane.b32.xlu0 %v1510_v33, %s1414_s29 }
  0x76   :  { %v94_v10 = vpop.permute.xlu1 %93 }
  0x7a   :  { %v1318_v11 = vpop.permute.xlu0 %1317  ;;  %v1328_v12 = vpop.permute.xlu1 %1327 }
  0x7b   :  { %v1330_v15 = vunpack.i.h.bf16 %v1328_v12  ;;  %v1329_v16 = vunpack.i.l.bf16 %v1328_v12  ;;  %v1320_v22 = vunpack.i.h.bf16 %v1318_v11  ;;  %v1319_v23 = vunpack.i.l.bf16 %v1318_v11 }
  0x7d   :  { %v86_v28 = vsel %vm84_vm2, %v1329_v16, %v1330_v15  ;;  %v100_v32 = vsel %vm99_vm3, %v94_v10, %v1319_v23  ;;  %v191_v35 = vsel %vm1892_vm4, %v1455_v1, %v1330_v15  ;;  %v101_v36 = vsel %vm99_vm3, %v1319_v23, %v1320_v22 }
  0x7e   :  { %v1323_v13 = vpop.permute.xlu0 %1322  ;;  %v1333_v14 = vpop.permute.xlu1 %1332  ;;  %v190_v41 = vsel %vm1892_vm4, %v1460_v3, %v86_v28  ;;  %v195_v49 = vsel %vm192_vm8, %v191_v35, %v1320_v22  ;;  %v1632_v28 = vld [vmem:[%s1885_s1] sm:$0xff] }
  0x7f   :  { %v1325_v18 = vunpack.i.h.bf16 %v1323_v13  ;;  %v1324_v19 = vunpack.i.l.bf16 %v1323_v13  ;;  %v1335_v24 = vunpack.i.h.bf16 %v1333_v14  ;;  %v1334_v25 = vunpack.i.l.bf16 %v1333_v14 }
  0x80   :  { %v194_v3 = vsel %vm192_vm8, %v190_v41, %v101_v36 }
  0x81   :  { %v116_v29 = vsel %vm114_vm1, %v1324_v19, %v1325_v18  ;;  %v199_v38 = vsel %vm196_vm5, %v1320_v22, %v1325_v18  ;;  %v130_v39 = vsel %vm128_vm6, %v1334_v25, %v1335_v24 }
  0x82   :  { %v109_v20 = vpop.permute.xlu0 %108  ;;  %v123_v21 = vpop.permute.xlu1 %122  ;;  %v198_v42 = vsel %vm196_vm5, %v101_v36, %v116_v29  ;;  %v203_v50 = vsel %vm200_vm7, %v199_v38, %v1335_v24  ;;  %v1646_v29 = vld [vmem:[%s1885_s1 + $0x8] sm:$0xff] }
  0x83   :  { %v115_v30 = vsel %vm114_vm1, %v109_v20, %v1324_v19  ;;  %v129_v44 = vsel %vm128_vm6, %v123_v21, %v1334_v25  ;;  %v202_v51 = vsel %vm200_vm7, %v198_v42, %v130_v39 }
  0x84   :  { %v197_v43 = vsel %vm196_vm5, %v100_v32, %v115_v30  ;;  %v1658_v30 = vld [vmem:[%s1885_s1 + $0x10] sm:$0x1f] }
  0x85   :  { %v201_v52 = vsel %vm200_vm7, %v197_v43, %v129_v44 }
  0x86   :  { %v79_v26 = vpop.permute.xlu0 %78  ;;  %v138_v27 = vpop.permute.xlu1 %137 }
  0x87   :  { %v85_v34 = vsel %vm84_vm2, %v79_v26, %v1329_v16 }
  0x88   :  { %v189_v1 = vsel %vm1892_vm4, %v1450_v0, %v85_v34 }
  0x89   :  { %v193_v58 = vsel %vm192_vm8, %v189_v1, %v100_v32 }
  0x8a   :  { %v1338_v45 = vpop.permute.xlu0 %1337  ;;  %v153_v46 = vpop.permute.xlu1 %152 }
  0x8b   :  { %v1340_v47 = vunpack.i.h.bf16 %v1338_v45  ;;  %v1339_v48 = vunpack.i.l.bf16 %v1338_v45 }
  0x8d   :  { %v144_v53 = vsel %vm143_vm9, %v138_v27, %v1339_v48  ;;  %v207_v54 = vsel %vm1889_vm10, %v203_v50, %v1340_v47  ;;  %v145_v55 = vsel %vm143_vm9, %v1339_v48, %v1340_v47 }
  0x8e   :  { %v1343_v56 = vpop.permute.xlu0 %1342  ;;  %v1266_v0 = vpack.c.bf16 %v207_v54, %v195_v49  ;;  %v206_v57 = vsel %vm1889_vm10, %v202_v51, %v145_v55  ;;  %v205_v59 = vsel %vm1889_vm10, %v201_v52, %v144_v53  ;;  %v168_v63 = vpop.permute.xlu1 %167 }
  0x8f   :  { %v1255_v60 = vpack.c.bf16 %v206_v57, %v194_v3  ;;  %v1257_v61 = vpack.c.bf16 %v205_v59, %v193_v58  ;;  %v1344_v62 = vunpack.i.l.bf16 %v1343_v56  ;;  %v1345_v2 = vunpack.i.h.bf16 %v1343_v56 }
  0x90   :  { %1267 = vmatpush3.bf16.msra.mxu1 %v1266_v0 }
  0x91   :  { %1256 = vmatprep.subr.bf16.mxu0 %v1255_v60  ;;  %1268 = vmatprep.subr.bf16.mxu1 %v1408_v17  ;;  %v159_v7 = vsel %vm1888_vm11, %v153_v46, %v1344_v62  ;;  %v160_v8 = vsel %vm1888_vm11, %v1344_v62, %v1345_v2  ;;  %v211_v13 = vsel %vm208_vm13, %v1340_v47, %v1345_v2  ;;  %vm1416_vm11 = vmmov 1  }
  0x92   :  { %v1348_v4 = vpop.permute.xlu0 %1347  ;;  %1258 = vmatpush1.bf16.msra.mxu0 %v1257_v61  ;;  %v180_v12 = vpop.permute.xlu1 %179  ;;  %v209_v14 = vsel %vm208_vm13, %v144_v53, %v159_v7  ;;  %v210_v18 = vsel %vm208_vm13, %v145_v55, %v160_v8  ;;  %vm1620_vm10 = vmpackc.low %vm1892_vm4, %vm1416_vm11  ;;  %vm219_vm11 = vcmask 220160  }
  0x93   :  { %v1350_v5 = vunpack.i.h.bf16 %v1348_v4  ;;  %v1349_v6 = vunpack.i.l.bf16 %v1348_v4 }
  0x95   :  { %v174_v9 = vsel %vm173_vm12, %v168_v63, %v1349_v6  ;;  %v175_v10 = vsel %vm173_vm12, %v1349_v6, %v1350_v5  ;;  %v215_v19 = vsel %vm1891_vm14, %v211_v13, %v1350_v5 }
  0x96   :  { %v1353_v11 = vpop.permute.xlu0 %1352  ;;  %v213_v20 = vsel %vm1891_vm14, %v209_v14, %v174_v9  ;;  %v214_v25 = vsel %vm1891_vm14, %v210_v18, %v175_v10 }
  0x97   :  { %v1355_v15 = vunpack.i.h.bf16 %v1353_v11  ;;  %v1354_v16 = vunpack.i.l.bf16 %v1353_v11 }
  0x99   :  { %v1269_v22 = vpack.c.bf16 %v1355_v15, %v215_v19  ;;  %v186_v23 = vsel %vm185_vm15, %v180_v12, %v1354_v16  ;;  %v187_v24 = vsel %vm185_vm15, %v1354_v16, %v1355_v15 }
  0x9a   :  { %v1262_v26 = vpack.c.bf16 %v186_v23, %v213_v20  ;;  %v1259_v27 = vpack.c.bf16 %v187_v24, %v214_v25 }
  0x9b   :  { %1271 = vmatpush3.bf16.msk.msra.mxu1 %vm1620_vm10, %v1269_v22 }
  0x9c   :  { %1261 = vmatprep.subr.msk.bf16.mxu0 %vm1620_vm10, %v1259_v27  ;;  %1276 = vmatprep.subr.bf16.mxu1 %v1408_v17 }
  0x9d   :  { %1264 = vmatpush1.bf16.msk.msra.mxu0 %vm1620_vm10, %v1262_v26 }
  0x9e   :  { %1212 = vmatmul.mubr.msk.f32.vlgmr.msra.gmra.mrb[0].mxu1 %vm219_vm11, %v1632_v28 }
  0x9f   :  { %1214 = vmatprep.mubr.msk.f32.mxu1 %vm1412_vm0, %v1413_v31 }
  0xa0   :  { %1153 = vmatmul.mubr.msk.f32.vlgmr.msra.gmra.mrb[0].mxu0 %vm219_vm11, %v1632_v28 }
  0xa1   :  { %305 = vmatprep.mubr.f32.mxu0 %v1413_v31 }
  0xa2   :  { %1215 = vmatmul.mubr.msk.f32.gmra.mrb[2].mxu1 %vm219_vm11, %v1646_v29 }
  0xa3   :  { %1217 = vmatprep.mubr.msk.f32.mxu1 %vm1412_vm0, %v1413_v31  ;;  %v1669_v32 = vpop.permute.xlu1 %408 }
  0xa4   :  { %1154 = vmatmul.mubr.msk.f32.gmra.mrb[2].mxu0 %vm219_vm11, %v1646_v29 }
  0xa5   :  { %311 = vmatprep.mubr.f32.mxu0 %v1413_v31 }
  0xa6   :  { %1218 = vmatmul.mubr.msk.f32.gmra.mrb[4].mxu1 %vm219_vm11, %v1658_v30 }
  0xa7   :  { %1226 = vmatprep.mubr.msk.f32.mxu1 %vm1412_vm0, %v1413_v31  ;;  %v1671_v34 = vpop.permute.xlu0 %403  ;;  %v1674_v35 = vpop.permute.xlu1 %430 }
  0xa8   :  { %1155 = vmatmul.mubr.msk.f32.gmra.mrb[4].mxu0 %vm219_vm11, %v1658_v30 }
  0xa9   :  { %539 = vmatprep.mubr.f32.mxu0 %v1413_v31 }
  0xab   :  { %v1676_v36 = vpop.permute.xlu0 %435  ;;  %v1678_v38 = vpop.permute.xlu1 %413 }
  0xaf   :  { %v1680_v39 = vpop.permute.xlu0 %440  ;;  %v1360_v41 = vpop.permute.xlu1 %1359 }
  0xb0   :  { %v1682_v43 = vunpack.i.h.bf16 %v1360_v41  ;;  %v1361_v44 = vunpack.i.l.bf16 %v1360_v41 }
  0xb2   :  { %v670_v1 = vsel %vm99_vm3, %v1361_v44, %v1682_v43 }
  0xb3   :  { %v1365_v42 = vpop.permute.xlu0 %1364  ;;  %v1370_v49 = vpop.permute.xlu1 %1369 }
  0xb4   :  { %v1367_v45 = vunpack.i.h.bf16 %v1365_v42  ;;  %v1366_v46 = vunpack.i.l.bf16 %v1365_v42  ;;  %v1371_v53 = vunpack.i.l.bf16 %v1370_v49  ;;  %v1372_v8 = vunpack.i.h.bf16 %v1370_v49 }
  0xb6   :  { %v684_v47 = vsel %vm114_vm1, %v1366_v46, %v1367_v45  ;;  %v656_v10 = vsel %vm84_vm2, %v1371_v53, %v1372_v8  ;;  %v753_v49 = vsel %vm1892_vm4, %v1531_v40, %v1372_v8 }
  0xb7   :  { %v758_v48 = vsel %vm196_vm5, %v670_v1, %v684_v47  ;;  %v664_v50 = vpop.permute.xlu0 %663  ;;  %v678_v51 = vpop.permute.xlu1 %677  ;;  %v752_v13 = vsel %vm1892_vm4, %v1520_v37, %v656_v10 }
  0xb8   :  { %v669_v3 = vsel %vm99_vm3, %v664_v50, %v1361_v44  ;;  %v683_v54 = vsel %vm114_vm1, %v678_v51, %v1366_v46  ;;  %vm1895_vm1 = vcmask 1046528   ;;  %v1720_v15 = vsel %vm192_vm8, %v752_v13, %v670_v1 }
  0xb9   :  { %v757_v55 = vsel %vm196_vm5, %v669_v3, %v683_v54  ;;  %vm1896_vm3 = vmmov %vm1895_vm1 }
  0xbb   :  { %v1375_v52 = vpop.permute.xlu0 %1374  ;;  %v650_v0 = vpop.permute.xlu1 %649 }
  0xbc   :  { %v1376_v56 = vunpack.i.l.bf16 %v1375_v52  ;;  %v655_v58 = vsel %vm84_vm2, %v650_v0, %v1371_v53  ;;  %vm1897_vm2 = vmmov %vm1895_vm1 }
  0xbd   :  { %v751_v60 = vsel %vm1892_vm4, %v1510_v33, %v655_v58  ;;  %v1377_v33 = vunpack.i.h.bf16 %v1375_v52 }
  0xbe   :  { %v1697_v4 = vsel %vm192_vm8, %v751_v60, %v669_v3 }
  0xbf   :  { %v691_v57 = vpop.permute.xlu0 %690  ;;  %v1380_v61 = vpop.permute.xlu1 %1379  ;;  %v697_v11 = vsel %vm128_vm6, %v1376_v56, %v1377_v33 }
  0xc0   :  { %v696_v59 = vsel %vm128_vm6, %v691_v57, %v1376_v56  ;;  %v1381_v2 = vunpack.i.l.bf16 %v1380_v61  ;;  %v1708_v9 = vunpack.i.h.bf16 %v1380_v61  ;;  %v761_v14 = vsel %vm200_vm7, %v758_v48, %v697_v11 }
  0xc1   :  { %v760_v63 = vsel %vm200_vm7, %v757_v55, %v696_v59  ;;  %v759_v48 = vsel %vm196_vm5, %v1682_v43, %v1367_v45  ;;  %vm1898_vm5 = vcmask 752640  }
  0xc2   :  { %v1714_v12 = vsel %vm143_vm9, %v1381_v2, %v1708_v9  ;;  %v762_v60 = vsel %vm200_vm7, %v759_v48, %v1377_v33  ;;  %vm1899_vm6 = vmmov %vm1898_vm5  ;;  %vm1890_vm7 = vcmask 171008  }
  0xc3   :  { %v705_v62 = vpop.permute.xlu0 %704  ;;  %v1724_v16 = vsel %vm1896_vm3, %v761_v14, %v1714_v12  ;;  %v1385_v20 = vpop.permute.xlu1 %1384 }
  0xc4   :  { %v1700_v5 = vsel %vm143_vm9, %v705_v62, %v1381_v2  ;;  %v1279_v18 = vpack.c.bf16 %v1724_v16, %v1720_v15  ;;  %v1387_v53 = vunpack.i.h.bf16 %v1385_v20  ;;  %v1386_v54 = vunpack.i.l.bf16 %v1385_v20 }
  0xc5   :  { %v1704_v6 = vsel %vm1895_vm1, %v760_v63, %v1700_v5 }
  0xc6   :  { %v1281_v7 = vpack.c.bf16 %v1704_v6, %v1697_v4 }
  0xc7   :  { %v1734_v1 = vpop.permute.xlu1 %1389  ;;  %v719_v50 = vpop.permute.xlu0 %718 }
  0xc8   :  { %v1392_v62 = vunpack.i.h.bf16 %v1734_v1  ;;  %v1391_v20 = vunpack.i.l.bf16 %v1734_v1 }
 0x171   :  { %v384_v19 = vpop.f32.mrb[0].mxu1 }
 0x172   :  { %v418_v22 = vmul.f32 %v1671_v34, %v384_v19  ;;  %v1213_v23 = vpop.f32.mrb[1].mxu1 }
 0x173   :  { %v301_v24 = vpop.f32.mrb[0].mxu0  ;;  %v1395_v23 = vpop.permute.xlu1 %1394 }
 0x174   :  { %v416_v37 = vmul.f32 %v1671_v34, %v301_v24  ;;  %v303_v25 = vpop.f32.mrb[1].mxu0  ;;  %v445_v41 = vadd.f32 %v1674_v35, %v418_v22  ;;  %v756_v24 = vsel %vm192_vm8, %v753_v49, %v1682_v43  ;;  %v1397_v43 = vunpack.i.h.bf16 %v1395_v23 }
 0x175   :  { %v417_v26 = vmul.f32 %v1671_v34, %v303_v25  ;;  %v389_v27 = vpop.f32.mrb[2].mxu1  ;;  %v725_v25 = vsel %vm1898_vm5, %v1386_v54, %v1387_v53 }
 0x176   :  { %v421_v42 = vmul.f32 %v1669_v32, %v389_v27  ;;  %v1216_v44 = vpop.f32.mrb[3].mxu1  ;;  %v443_v46 = vadd.f32 %v1674_v35, %v416_v37  ;;  %v454_v57 = vmax.f32 %v445_v41, 0.0  ;;  %v765_v37 = vsel %vm1897_vm2, %v762_v60, %v1708_v9  ;;  %v733_v27 = vpop.permute.xlu0 %732 }
 0x177   :  { %v307_v47 = vpop.f32.mrb[2].mxu0  ;;  %v444_v55 = vadd.f32 %v1674_v35, %v417_v26  ;;  %v768_v41 = vsel %vm208_vm13, %v1708_v9, %v1387_v53  ;;  %v767_v49 = vsel %vm208_vm13, %v1714_v12, %v725_v25  ;;  %v1770_v9 = vld [vmem:[%s1886_s4] sm:$0x7]  ;;  %v738_v12 = vsel %vm173_vm12, %v733_v27, %v1391_v20 }
 0x178   :  { %v448_v3 = vadd.f32 %v1676_v36, %v421_v42  ;;  %v419_v51 = vmul.f32 %v1669_v32, %v307_v47  ;;  %v309_v52 = vpop.f32.mrb[3].mxu0  ;;  %v452_v61 = vmax.f32 %v443_v46, 0.0  ;;  %v724_v42 = vsel %vm1899_vm6, %v719_v50, %v1386_v54 }
 0x179   :  { %v420_v56 = vmul.f32 %v1669_v32, %v309_v52  ;;  %v394_v0 = vpop.f32.mrb[4].mxu1  ;;  %v453_v19 = vmax.f32 %v444_v55, 0.0  ;;  %v1396_v47 = vunpack.i.l.bf16 %v1395_v23  ;;  %v1290_v50 = vpack.c.bf16 %v765_v37, %v756_v24 }
 0x17a   :  { %v457_v58 = vmax.f32 %v448_v3, 0.0  ;;  %v446_v45 = vadd.f32 %v1676_v36, %v419_v51  ;;  %v424_v59 = vmul.f32 %v1678_v38, %v394_v0  ;;  %v1219_v40 = vpop.f32.mrb[5].mxu1  ;;  %v739_v3 = vsel %vm173_vm12, %v1391_v20, %v1392_v62  ;;  %v744_v0 = vpop.permute.xlu0 %743 }
 0x17b   :  { %v447_v63 = vadd.f32 %v1676_v36, %v420_v56  ;;  %v313_v2 = vpop.f32.mrb[4].mxu0  ;;  %v766_v52 = vsel %vm208_vm13, %v1700_v5, %v724_v42  ;;  %v771_v53 = vsel %vm1891_vm14, %v768_v41, %v1392_v62  ;;  %v750_v54 = vsel %vm185_vm15, %v1396_v47, %v1397_v43 }
 0x17c   :  { %v1277_v8 = vpack.c.bf16 %v457_v58, %v454_v57  ;;  %v455_v10 = vmax.f32 %v446_v45, 0.0  ;;  %v451_v11 = vadd.f32 %v1680_v39, %v424_v59  ;;  %v422_v13 = vmul.f32 %v1678_v38, %v313_v2  ;;  %v315_v14 = vpop.f32.mrb[5].mxu0 }
 0x17d   :  { %v456_v22 = vmax.f32 %v447_v63, 0.0  ;;  %v423_v33 = vmul.f32 %v1678_v38, %v315_v14  ;;  %v770_v55 = vsel %vm1891_vm14, %v767_v49, %v739_v3  ;;  %v1293_v5 = vpack.c.bf16 %v1397_v43, %v771_v53 }
 0x17e   :  { %v1274_v26 = vpack.c.bf16 %v455_v10, %v452_v61  ;;  %1278 = vmatpush3.bf16.msra.mxu1 %v1277_v8  ;;  %v460_v1 = vmax.f32 %v451_v11, 0.0  ;;  %v449_v48 = vadd.f32 %v1680_v39, %v422_v13  ;;  %v1283_v57 = vpack.c.bf16 %v750_v54, %v770_v55 }
 0x17f   :  { %v450_v44 = vadd.f32 %v1680_v39, %v423_v33  ;;  %v1272_v46 = vpack.c.bf16 %v456_v22, %v453_v19  ;;  %1224 = vmatprep.subr.mxu1 %v1413_v31  ;;  %v749_v58 = vsel %vm185_vm15, %v744_v0, %v1396_v47  ;;  %v769_v45 = vsel %vm1891_vm14, %v766_v52, %v738_v12 }
 0x180   :  { %v458_v56 = vmax.f32 %v449_v48, 0.0  ;;  %v1286_v59 = vpack.c.bf16 %v749_v58, %v769_v45 }
 0x181   :  { %v459_v51 = vmax.f32 %v450_v44, 0.0  ;;  %1273 = vmatprep.subr.bf16.mxu0 %v1272_v46 }
 0x182   :  { %1275 = vmatpush1.bf16.msra.mxu0 %v1274_v26  ;;  %1225 = vmatpush3.msk.msra.mxu1 %vm1891_vm14, %v460_v1 }
 0x183   :  { %1160 = vmatprep.subr.msk.mxu0 %vm1891_vm14, %v459_v51  ;;  %1289 = vmatprep.subr.bf16.mxu1 %v1408_v17 }
 0x184   :  { %1227 = vmatmul.mubr.msk.f32.vlgmr.msra.gmra.mrb[6].mxu1 %vm1890_vm7, %v1770_v9 }
 0x185   :  { %1291 = vmatpush3.bf16.msra.mxu1 %v1290_v50  ;;  %1237 = vmatprep.mubr.msk.f32.mxu1 %vm1412_vm0, %v1413_v31 }
 0x186   :  { %1161 = vmatpush1.msk.msra.mxu0 %vm1891_vm14, %v458_v56  ;;  %1292 = vmatprep.subr.bf16.mxu1 %v1408_v17 }
 0x187   :  { %1162 = vmatmul.mubr.msk.f32.vlgmr.msra.gmra.mrb[6].mxu0 %vm1890_vm7, %v1770_v9  ;;  %1280 = vmatprep.subr.bf16.mxu0 %v1279_v18 }
 0x188   :  { %1282 = vmatpush1.bf16.msra.mxu0 %v1281_v7  ;;  %842 = vmatprep.mubr.f32.mxu0 %v1413_v31 }
 0x189   :  { %1295 = vmatpush3.bf16.msk.msra.mxu1 %vm1620_vm10, %v1293_v5  ;;  %1285 = vmatprep.subr.msk.bf16.mxu0 %vm1620_vm10, %v1283_v57 }
 0x18a   :  { %1300 = vmatprep.subr.bf16.mxu1 %v1408_v17  ;;  %v20_v17 = vlaneseq }
 0x18c   :  { %1238 = vmatmul.mubr.msk.f32.vlgmr.msra.gmra.mrb[8].mxu1 %vm219_vm11, %v1632_v28  ;;  %1288 = vmatpush1.bf16.msk.msra.mxu0 %vm1620_vm10, %v1286_v59  ;;  %v21_v21 = vand.u32 127, %v20_v17 }
 0x18d   :  { %1240 = vmatprep.mubr.msk.f32.mxu1 %vm1412_vm0, %v1413_v31 }
 0x18e   :  { %v22_v4 = vadd.s32 128, %v21_v21  ;;  %v24_v7 = vcvt.s32.f32 %v21_v21 }
 0x18f   :  { %1169 = vmatmul.mubr.msk.f32.vlgmr.msra.gmra.mrb[8].mxu0 %vm219_vm11, %v1632_v28  ;;  %v23_v28 = vadd.s32 256, %v21_v21 }
 0x190   :  { %1241 = vmatmul.mubr.msk.f32.gmra.mrb[10].mxu1 %vm219_vm11, %v1646_v29  ;;  %848 = vmatprep.mubr.f32.mxu0 %v1413_v31  ;;  %v27_v16 = vadd.f32 0.5, %v24_v7 }
 0x191   :  { %1243 = vmatprep.mubr.msk.f32.mxu1 %vm1412_vm0, %v1413_v31  ;;  %v26_v6 = vcvt.s32.f32 %v23_v28 }
 0x192   :  { %v30_v60 = vmul.f32 0.055555556, %v27_v16 }
 0x193   :  { %1170 = vmatmul.mubr.msk.f32.gmra.mrb[10].mxu0 %vm219_vm11, %v1646_v29  ;;  %v25_v29 = vcvt.s32.f32 %v22_v4  ;;  %v29_v15 = vadd.f32 0.5, %v26_v6 }
 0x194   :  { %1244 = vmatmul.mubr.msk.f32.gmra.mrb[12].mxu1 %vm219_vm11, %v1658_v30  ;;  %854 = vmatprep.mubr.f32.mxu0 %v1413_v31  ;;  %v33_v63 = vfloor.f32 %v30_v60 }
 0x195   :  { %1252 = vmatprep.mubr.msk.f32.mxu1 %vm1412_vm0, %v1413_v31  ;;  %v28_v18 = vadd.f32 0.5, %v25_v29  ;;  %v32_v40 = vmul.f32 0.055555556, %v29_v15 }
 0x196   :  { %vm42_vm9 = vcmp.ge.f32.partialorder %v33_v63, 1.0  ;;  %vm45_vm10 = vcmp.le.f32.partialorder %v33_v63, 16.0 }
 0x197   :  { %1171 = vmatmul.mubr.msk.f32.gmra.mrb[12].mxu0 %vm219_vm11, %v1658_v30  ;;  %v31_v61 = vmul.f32 0.055555556, %v28_v18  ;;  %v35_v62 = vfloor.f32 %v32_v40  ;;  %v36_v30 = vmul.f32 18.0, %v33_v63  ;;  %vm48_vm1 = vmand %vm42_vm9, %vm45_vm10 }
 0x198   :  { %1041 = vmatprep.mubr.f32.mxu0 %v1413_v31 }
 0x199   :  { %v34_v2 = vfloor.f32 %v31_v61  ;;  %v38_v8 = vmul.f32 18.0, %v35_v62  ;;  %vm44_vm0 = vcmp.ge.f32.partialorder %v35_v62, 1.0  ;;  %vm47_vm8 = vcmp.le.f32.partialorder %v35_v62, 16.0 }
 0x19a   :  { %v39_v13 = vsub.f32 %v24_v7, %v36_v30  ;;  %vm50_vm12 = vmand %vm44_vm0, %vm47_vm8 }
 0x19b   :  { %v37_v10 = vmul.f32 18.0, %v34_v2  ;;  %v41_v11 = vsub.f32 %v26_v6, %v38_v8  ;;  %vm43_vm15 = vcmp.ge.f32.partialorder %v34_v2, 1.0  ;;  %vm46_vm11 = vcmp.le.f32.partialorder %v34_v2, 16.0 }
 0x19c   :  { %vm51_vm3 = vcmp.ge.f32.partialorder %v39_v13, 1.0  ;;  %vm49_vm6 = vmand %vm43_vm15, %vm46_vm11  ;;  %vm57_vm4 = vcmp.le.f32.partialorder %v39_v13, 16.0  ;;  %vm1904_vm11 = vcmask 1044480  }
 0x19d   :  { %v40_v14 = vsub.f32 %v25_v29, %v37_v10  ;;  %vm53_vm13 = vcmp.ge.f32.partialorder %v41_v11, 1.0  ;;  %vm59_vm5 = vcmp.le.f32.partialorder %v41_v11, 16.0  ;;  %vm54_vm14 = vmand %vm48_vm1, %vm51_vm3  ;;  %vm1905_vm1 = vcmask 171008  }
 0x19e   :  { %vm56_vm2 = vmand %vm50_vm12, %vm53_vm13 }
 0x19f   :  { %vm52_vm7 = vcmp.ge.f32.partialorder %v40_v14, 1.0  ;;  %vm62_vm0 = vmand %vm56_vm2, %vm59_vm5  ;;  %vm58_vm9 = vcmp.le.f32.partialorder %v40_v14, 16.0 }
 0x1a0   :  { %vm55_vm8 = vmand %vm49_vm6, %vm52_vm7  ;;  %v1827_v19 = vsel %vm62_vm0, 1.0, %v1413_v31  ;;  %vm622_vm7 = vcmask 550912  }
 0x1a1   :  { %vm60_vm10 = vmand %vm54_vm14, %vm57_vm4  ;;  %vm1900_vm4 = vcmask 1042432  }
 0x1a2   :  { %vm61_vm12 = vmand %vm55_vm8, %vm58_vm9  ;;  %v1830_v22 = vsel %vm60_vm10, 1.0, %v1413_v31  ;;  %vm1140_vm10 = vcmask 7168  }
 0x1a3   :  { %v1834_v24 = vsel %vm61_vm12, 1.0, %v1413_v31  ;;  %vm1901_vm14 = vmmov %vm1900_vm4  ;;  %vm1142_vm12 = vcmask 10240  }
 0x1a4   :  { %vm1902_vm13 = vmmov %vm1900_vm4 }
 0x1a5   :  { %vm1903_vm15 = vmmov %vm1900_vm4 }
 0x1a6   :  { %vm1906_vm3 = vmmov %vm1904_vm11 }
 0x1a7   :  { %vm1907_vm2 = vmmov %vm1906_vm3 }
 0x1a8   :  { %vm1908_vm5 = vmmov %vm1905_vm1 }
 0x1a9   :  { %vm1909_vm6 = vmmov %vm1900_vm4 }
 0x1aa   :  { %vm1910_vm0 = vmmov %vm1900_vm4 }
 0x1ab   :  { %vm1911_vm8 = vmmov %vm1910_vm0 }
 0x1ac   :  { %vm1912_vm9 = vmmov %vm1910_vm0 }
 0x257   :  { %v612_v20 = vpop.f32.mrb[6].mxu1 }
 0x258   :  { %v618_v23 = vmul.f32 %v1827_v19, %v612_v20  ;;  %v1228_v33 = vpop.f32.mrb[7].mxu1 }
 0x25a   :  { %v541_v37 = vpop.f32.mrb[6].mxu0  ;;  %v630_v41 = vmul.f32 %v618_v23, %v612_v20  ;;  %v623_v43 = vsel %vm622_vm7, %v618_v23, 0.0 }
 0x25b   :  { %v616_v25 = vmul.f32 %v1830_v22, %v541_v37  ;;  %v543_v26 = vpop.f32.mrb[7].mxu0 }
 0x25c   :  { %v617_v27 = vmul.f32 %v1834_v24, %v543_v26  ;;  %v634_v52 = vsel %vm622_vm7, %v630_v41, 0.0 }
 0x25d   :  { %v619_v42 = vsel %vm1900_vm4, %v616_v25, 0.0  ;;  %v628_v44 = vmul.f32 %v616_v25, %v541_v37 }
 0x25e   :  { %v620_v46 = vsel %vm1901_vm14, %v617_v27, 0.0  ;;  %v629_v1 = vmul.f32 %v617_v27, %v543_v26 }
 0x25f   :  { %v631_v47 = vsel %vm1902_vm13, %v628_v44, 0.0  ;;  %v927_v48 = vpop.f32.mrb[8].mxu1  ;;  %v621_v49 = vadd.f32 %v620_v46, %v619_v42 }
 0x260   :  { %v632_v3 = vsel %vm1903_vm15, %v629_v1, 0.0  ;;  %v943_v51 = vmul.f32 %v927_v48, %v1671_v34  ;;  %v1239_v50 = vpop.f32.mrb[9].mxu1 }
 0x261   :  { %v624_v53 = vadd.f32 %v623_v43, %v621_v49  ;;  %v633_v12 = vadd.f32 %v632_v3, %v631_v47 }
 0x262   :  { %v844_v54 = vpop.f32.mrb[8].mxu0  ;;  %v952_v55 = vadd.f32 %v943_v51, %v1674_v35 }
 0x263   :  { %v941_v56 = vmul.f32 %v844_v54, %v1671_v34  ;;  %v932_v0 = vpop.f32.mrb[10].mxu1  ;;  %v846_v5 = vpop.f32.mrb[9].mxu0  ;;  %625 = vadd.xlane.f32.xlu1 %v624_v53  ;;  %v635_v57 = vadd.f32 %v634_v52, %v633_v12 }
 0x264   :  { %v946_v58 = vmul.f32 %v932_v0, %v1669_v32  ;;  %v942_v45 = vmul.f32 %v846_v5, %v1671_v34  ;;  %v1242_v59 = vpop.f32.mrb[11].mxu1  ;;  %v961_v28 = vmax.f32 %v952_v55, 0.0 }
 0x265   :  { %636 = vadd.xlane.f32.xlu0 %v635_v57  ;;  %v950_v4 = vadd.f32 %v941_v56, %v1674_v35 }
 0x266   :  { %v955_v17 = vadd.f32 %v946_v58, %v1676_v36  ;;  %v850_v21 = vpop.f32.mrb[10].mxu0  ;;  %v951_v16 = vadd.f32 %v942_v45, %v1674_v35 }
 0x267   :  { %v944_v6 = vmul.f32 %v850_v21, %v1669_v32  ;;  %v937_v7 = vpop.f32.mrb[12].mxu1  ;;  %v852_v29 = vpop.f32.mrb[11].mxu0  ;;  %v959_v8 = vmax.f32 %v950_v4, 0.0 }
 0x268   :  { %v964_v15 = vmax.f32 %v955_v17, 0.0  ;;  %v949_v18 = vmul.f32 %v937_v7, %v1678_v38  ;;  %v945_v40 = vmul.f32 %v852_v29, %v1669_v32  ;;  %v1245_v34 = vpop.f32.mrb[13].mxu1  ;;  %v960_v13 = vmax.f32 %v951_v16, 0.0 }
 0x269   :  { %v953_v60 = vadd.f32 %v944_v6, %v1676_v36 }
 0x26a   :  { %v1301_v61 = vpack.c.bf16 %v964_v15, %v961_v28  ;;  %v958_v62 = vadd.f32 %v949_v18, %v1680_v39  ;;  %v954_v63 = vadd.f32 %v945_v40, %v1676_v36  ;;  %v856_v2 = vpop.f32.mrb[12].mxu0 }
 0x26b   :  { %v962_v30 = vmax.f32 %v953_v60, 0.0  ;;  %v947_v10 = vmul.f32 %v856_v2, %v1678_v38  ;;  %v858_v11 = vpop.f32.mrb[13].mxu0 }
 0x26c   :  { %v963_v35 = vmax.f32 %v954_v63, 0.0  ;;  %v948_v14 = vmul.f32 %v858_v11, %v1678_v38  ;;  %1302 = vmatpush3.bf16.msra.mxu1 %v1301_v61  ;;  %v967_v20 = vmax.f32 %v958_v62, 0.0 }
 0x26d   :  { %v1298_v32 = vpack.c.bf16 %v962_v30, %v959_v8  ;;  %1250 = vmatprep.subr.mxu1 %v1413_v31  ;;  %v956_v36 = vadd.f32 %v947_v10, %v1680_v39 }
 0x26e   :  { %v957_v23 = vadd.f32 %v948_v14, %v1680_v39  ;;  %v1296_v33 = vpack.c.bf16 %v963_v35, %v960_v13 }
 0x26f   :  { %v965_v38 = vmax.f32 %v956_v36, 0.0 }
 0x270   :  { %v966_v37 = vmax.f32 %v957_v23, 0.0  ;;  %1251 = vmatpush3.msk.msra.mxu1 %vm1904_vm11, %v967_v20  ;;  %1297 = vmatprep.subr.bf16.mxu0 %v1296_v33 }
 0x271   :  { %1299 = vmatpush1.bf16.msra.mxu0 %v1298_v32  ;;  %1253 = vmatmul.mubr.msk.f32.vlgmr.msra.gmra.mrb[14].mxu1 %vm1905_vm1, %v1770_v9 }
 0x272   :  { %1176 = vmatprep.subr.msk.mxu0 %vm1906_vm3, %v966_v37 }
 0x275   :  { %1177 = vmatpush1.msk.msra.mxu0 %vm1907_vm2, %v965_v38 }
 0x276   :  { %1178 = vmatmul.mubr.msk.f32.vlgmr.msra.gmra.mrb[14].mxu0 %vm1908_vm5, %v1770_v9 }
 0x2f0   :  { %v626_v52 = vpop.xlane.xlu1 %625 }
 0x2f2   :  { %v637_v50 = vpop.xlane.xlu0 %636 }
 0x344   :  { %v1114_v31 = vpop.f32.mrb[14].mxu1 }
 0x345   :  { %v1254_v25 = vpop.f32.mrb[15].mxu1  ;;  %v1120_v39 = vmul.f32 %v1827_v19, %v1114_v31 }
 0x347   :  { %v1131_v47 = vmul.f32 %v1120_v39, %v1114_v31  ;;  %v1124_v48 = vsel %vm622_vm7, %v1120_v39, 0.0 }
 0x349   :  { %v1043_v26 = vpop.f32.mrb[14].mxu0 }
 0x34a   :  { %v1118_v27 = vmul.f32 %v1830_v22, %v1043_v26  ;;  %v1045_v41 = vpop.f32.mrb[15].mxu0  ;;  %v1135_v22 = vsel %vm622_vm7, %v1131_v47, 0.0 }
 0x34b   :  { %v1119_v42 = vmul.f32 %v1834_v24, %v1045_v41 }
 0x34c   :  { %v1121_v44 = vsel %vm1909_vm6, %v1118_v27, 0.0  ;;  %v1129_v46 = vmul.f32 %v1118_v27, %v1043_v26 }
 0x34d   :  { %v1122_v1 = vsel %vm1910_vm0, %v1119_v42, 0.0  ;;  %v1130_v43 = vmul.f32 %v1119_v42, %v1045_v41 }
 0x34e   :  { %v1132_v9 = vsel %vm1911_vm8, %v1129_v46, 0.0  ;;  %v1123_v49 = vadd.f32 %v1122_v1, %v1121_v44 }
 0x34f   :  { %v1133_v3 = vsel %vm1912_vm9, %v1130_v43, 0.0 }
 0x350   :  { %v1125_v19 = vadd.f32 %v1124_v48, %v1123_v49  ;;  %v1134_v51 = vadd.f32 %v1133_v3, %v1132_v9 }
 0x352   :  { %1126 = vadd.xlane.f32.xlu0 %v1125_v19  ;;  %v1136_v24 = vadd.f32 %v1135_v22, %v1134_v51 }
 0x354   :  { %1137 = vadd.xlane.f32.xlu1 %v1136_v24 }
 0x3df   :  { %v1127_v53 = vpop.xlane.xlu0 %1126 }
 0x3e0   :  { %v1128_v54 = vadd.f32 %v1127_v53, %v626_v52 }
 0x3e1   :  { %v1138_v12 = vpop.xlane.xlu1 %1137 }
 0x3e2   :  { %v1139_v55 = vadd.f32 %v1138_v12, %v637_v50 }
 0x3e4   :  { %v1141_v56 = vsel %vm1140_vm10, %v1128_v54, %v1139_v55 }
 0x3e5   :  { %1143 = vst.msk [vmem:[%s1887_s5] sm:$0x7] %vm1142_vm12, %v1141_v56 }

</bundles_post_ra>
